<compile_context>
chip_gen: v7x
topology: tpu7x:2x2x1
jax: 0.10.0
libtpu: 0.0.40
codegen_flags: <defaults>
</compile_context>

<pallas_src>
import jax
import jax.numpy as jnp
from jax import lax
from jax.experimental import pallas as pl
from jax.experimental.pallas import tpu as pltpu

HIDDEN = 256
LANE = 128

# lhs non-transposed, rhs transposed: contract both operands on their dim 1.
_NT_DIM_NUMBERS = (((1,), (1,)), ((), ()))


def mlp_kernel(x_ref,
               w1_ref, b1_ref,
               w2_ref, b2_ref,
               w3_ref, b3_ref,
               w4t_ref, b4_ref,
               o_ref):
    """Fused 4-layer MLP on one (block_batch, d_in) tile.

    Matmuls run on the MXU with f32 accumulation; bias-add / ReLU on the VPU
    in f32; inter-layer activations are downcast to the compute dtype (bf16
    default) right after the ReLU.  fc4 is computed transposed so the output
    tile is (num_classes, block_batch): batch lives on lanes -> lane-dense,
    unmasked stores even for num_classes == 1.
    """
    cd = w1_ref.dtype  # compute dtype fed to the MXU (bf16 or f32)

    h = jnp.dot(x_ref[...].astype(cd), w1_ref[...],
                preferred_element_type=jnp.float32) + b1_ref[...]
    h = jnp.maximum(h, 0.0).astype(cd)

    h = jnp.dot(h, w2_ref[...], preferred_element_type=jnp.float32) + b2_ref[...]
    h = jnp.maximum(h, 0.0).astype(cd)

    h = jnp.dot(h, w3_ref[...], preferred_element_type=jnp.float32) + b3_ref[...]
    h = jnp.maximum(h, 0.0).astype(cd)

    # (num_classes, HIDDEN) x (block_batch, HIDDEN)^T -> (num_classes, block_batch)
    out_t = lax.dot_general(w4t_ref[...], h, _NT_DIM_NUMBERS,
                            preferred_element_type=jnp.float32)
    o_ref[...] = (out_t + b4_ref[...]).astype(o_ref.dtype)


def init_params(key, input_size, num_classes):
    """f32 reference parameters, PyTorch-default init
    (uniform(-1/sqrt(fan_in), 1/sqrt(fan_in))).  Weights stored as (in, out)."""
    dims = [(input_size, HIDDEN), (HIDDEN, HIDDEN), (HIDDEN, HIDDEN),
            (HIDDEN, num_classes)]
    params = {}
    for idx, (fan_in, fan_out) in enumerate(dims, start=1):
        key, kw, kb = jax.random.split(key, 3)
        bound = 1.0 / (fan_in ** 0.5)
        params[f"w{idx}"] = jax.random.uniform(
            kw, (fan_in, fan_out), jnp.float32, -bound, bound)
        params[f"b{idx}"] = jax.random.uniform(
            kb, (fan_out,), jnp.float32, -bound, bound)
    return params


def prepare_params(params, compute_dtype=jnp.bfloat16):
    """One-time layout/dtype prep for the kernel (no per-forward casts):
    w1..w3 (in, out) in compute dtype; w4 transposed to (num_classes, HIDDEN);
    biases kept f32 (added to the f32 accumulator), shaped for broadcasting."""
    num_classes = params["w4"].shape[1]
    return {
        "w1": params["w1"].astype(compute_dtype),
        "b1": params["b1"].reshape(1, HIDDEN),
        "w2": params["w2"].astype(compute_dtype),
        "b2": params["b2"].reshape(1, HIDDEN),
        "w3": params["w3"].astype(compute_dtype),
        "b3": params["b3"].reshape(1, HIDDEN),
        "w4t": params["w4"].T.astype(compute_dtype),      # (num_classes, HIDDEN)
        "b4": params["b4"].reshape(num_classes, 1),        # (num_classes, 1)
    }


def mlp_forward(x, kparams, *, block_batch=256):
    """x: (B, d_in) f32. kparams: output of prepare_params(). Returns (B, num_classes)."""
    B, d_in = x.shape
    assert block_batch % LANE == 0, "block_batch must be a multiple of 128"

    w1, b1 = kparams["w1"], kparams["b1"]
    w2, b2 = kparams["w2"], kparams["b2"]
    w3, b3 = kparams["w3"], kparams["b3"]
    w4t, b4 = kparams["w4t"], kparams["b4"]
    num_classes = w4t.shape[0]

    num_blocks = pl.cdiv(B, block_batch)   # partial final block handled by Pallas
    weights = (w1, b1, w2, b2, w3, b3, w4t, b4)

    flops = 2 * B * (d_in * HIDDEN + 2 * HIDDEN * HIDDEN + HIDDEN * num_classes)
    bytes_accessed = (x.size * x.dtype.itemsize
                      + sum(a.size * a.dtype.itemsize for a in weights)
                      + B * num_classes * 4)

    def build(untiled_weights):
        if untiled_weights:
            # Whole array resident in VMEM: single copy, no per-step DMA,
            # no double-buffering of constant operands.
            def wspec(a):
                return pl.BlockSpec(memory_space=pltpu.MemorySpace.VMEM)
        else:
            # Fallback: full-array block with a constant index_map (the
            # pipeline skips re-copies since the block index never changes).
            def wspec(a):
                return pl.BlockSpec(a.shape, lambda i: (0, 0))

        return pl.pallas_call(
            mlp_kernel,
            out_shape=jax.ShapeDtypeStruct((num_classes, B), jnp.float32),
            grid_spec=pltpu.PrefetchScalarGridSpec(
                num_scalar_prefetch=0,
                grid=(num_blocks,),
                in_specs=[
                    pl.BlockSpec((block_batch, d_in), lambda i: (i, 0)),  # x
                    wspec(w1), wspec(b1),
                    wspec(w2), wspec(b2),
                    wspec(w3), wspec(b3),
                    wspec(w4t), wspec(b4),
                ],
                # Batch on lanes: (num_classes, block_batch) is lane-dense.
                out_specs=pl.BlockSpec((num_classes, block_batch),
                                       lambda i: (0, i)),
            ),
            compiler_params=pltpu.CompilerParams(
                dimension_semantics=("parallel",)),
            cost_estimate=pl.CostEstimate(
                flops=int(flops), transcendentals=0,
                bytes_accessed=int(bytes_accessed)),
        )

    args = (x, *weights)
    try:
        out_t = build(True)(*args)
    except Exception:
        out_t = build(False)(*args)

    # (num_classes, B) -> (B, num_classes).  For num_classes == 1 this is a
    # pure relabeling (same row-major layout), effectively free.
    return out_t.T


def mlp_reference(x, params):
    h = jnp.maximum(x @ params["w1"] + params["b1"], 0.0)
    h = jnp.maximum(h @ params["w2"] + params["b2"], 0.0)
    h = jnp.maximum(h @ params["w3"] + params["b3"], 0.0)
    return h @ params["w4"] + params["b4"]


if __name__ == "__main__":
    key = jax.random.PRNGKey(0)
    input_size = 32     # stands in for DataNN.shape[1] - 1
    num_classes = 1

    key, kx, kp = jax.random.split(key, 3)
    params = init_params(kp, input_size, num_classes)

    # batch=512 with block_batch=256 -> 2 parallel grid steps (keeps both v7x
    # TensorCores busy; on v5e/v6e with larger batches raise block_batch).
    batch = 512
    x = jax.random.normal(kx, (batch, input_size), jnp.float32)
    ref = mlp_reference(x, params)

    # bf16 MXU path (default): weights pre-cast exactly once here.
    kparams_bf16 = prepare_params(params, jnp.bfloat16)
    out = jax.block_until_ready(mlp_forward(x, kparams_bf16, block_batch=256))
    assert out.shape == (batch, num_classes)
    assert jnp.allclose(out, ref, atol=5e-2, rtol=5e-2), "bf16 mismatch vs reference"

    # f32 opt-in path: much tighter vs the f32 reference.
    kparams_f32 = prepare_params(params, jnp.float32)
    out_f32 = jax.block_until_ready(mlp_forward(x, kparams_f32, block_batch=256))
    assert jnp.allclose(out_f32, ref, atol=1e-3, rtol=1e-3), "f32 mismatch vs reference"

    # Ragged batch exercises the partial-final-block path (no padding anywhere).
    x2 = x[:37]
    out2 = jax.block_until_ready(mlp_forward(x2, kparams_bf16, block_batch=256))
    assert out2.shape == (37, num_classes)
    assert jnp.allclose(out2, mlp_reference(x2, params), atol=5e-2, rtol=5e-2), \
        "ragged-batch mismatch vs reference"

    print("KERNEL_OK")
</pallas_src>

<mosaic_0001>
module attributes {stable_mosaic.version = 11 : i64} {
  func.func @mlp_kernel(%arg0: i32, %arg1: memref<256x32xf32, #tpu.memory_space<vmem>>, %arg2: memref<32x256xbf16, #tpu.memory_space<vmem>>, %arg3: memref<1x256xf32, #tpu.memory_space<vmem>>, %arg4: memref<256x256xbf16, #tpu.memory_space<vmem>>, %arg5: memref<1x256xf32, #tpu.memory_space<vmem>>, %arg6: memref<256x256xbf16, #tpu.memory_space<vmem>>, %arg7: memref<1x256xf32, #tpu.memory_space<vmem>>, %arg8: memref<1x256xbf16, #tpu.memory_space<vmem>>, %arg9: memref<1x1xf32, #tpu.memory_space<vmem>>, %arg10: memref<1x256xf32, #tpu.memory_space<vmem>>) attributes {dimension_semantics = [#tpu.dimension_semantics<parallel>], iteration_bounds = array<i64: 2>, scalar_prefetch = 0 : i64, scratch_operands = 0 : i64, tpu.core_type = #tpu.core_type<tc>, window_params = [{transform_indices = @transform_0, window_bounds = array<i64: 256, 32>}, {pipeline_mode = #tpu.pipeline_mode<synchronous>, transform_indices = @transform_1, window_bounds = array<i64: 32, 256>}, {pipeline_mode = #tpu.pipeline_mode<synchronous>, transform_indices = @transform_2, window_bounds = array<i64: 1, 256>}, {pipeline_mode = #tpu.pipeline_mode<synchronous>, transform_indices = @transform_3, window_bounds = array<i64: 256, 256>}, {pipeline_mode = #tpu.pipeline_mode<synchronous>, transform_indices = @transform_4, window_bounds = array<i64: 1, 256>}, {pipeline_mode = #tpu.pipeline_mode<synchronous>, transform_indices = @transform_5, window_bounds = array<i64: 256, 256>}, {pipeline_mode = #tpu.pipeline_mode<synchronous>, transform_indices = @transform_6, window_bounds = array<i64: 1, 256>}, {pipeline_mode = #tpu.pipeline_mode<synchronous>, transform_indices = @transform_7, window_bounds = array<i64: 1, 256>}, {pipeline_mode = #tpu.pipeline_mode<synchronous>, transform_indices = @transform_8, window_bounds = array<i64: 1, 1>}, {transform_indices = @transform_9, window_bounds = array<i64: 1, 256>}]} {
    %c0 = arith.constant 0 : index
    %c0_0 = arith.constant 0 : index
    %0 = vector.load %arg1[%c0, %c0_0] : memref<256x32xf32, #tpu.memory_space<vmem>>, vector<256x32xf32>
    %1 = arith.truncf %0 : vector<256x32xf32> to vector<256x32xbf16>
    %c0_1 = arith.constant 0 : index
    %c0_2 = arith.constant 0 : index
    %2 = vector.load %arg2[%c0_1, %c0_2] : memref<32x256xbf16, #tpu.memory_space<vmem>>, vector<32x256xbf16>
    %cst = arith.constant dense<0.000000e+00> : vector<256x256xf32>
    %3 = tpu.matmul %1, %2, %cst {dimension_numbers = #tpu.dot_dimension_numbers<[1], [0], [0], [1], [0, 0, 1, 1], [], []>} : vector<256x32xbf16>, vector<32x256xbf16>, vector<256x256xf32> -> vector<256x256xf32>
    %c0_3 = arith.constant 0 : index
    %c0_4 = arith.constant 0 : index
    %4 = vector.load %arg3[%c0_3, %c0_4] : memref<1x256xf32, #tpu.memory_space<vmem>>, vector<1x256xf32>
    %5 = vector.broadcast %4 : vector<1x256xf32> to vector<256x256xf32>
    %6 = arith.addf %3, %5 : vector<256x256xf32>
    %cst_5 = arith.constant 0.000000e+00 : f32
    %7 = vector.broadcast %cst_5 : f32 to vector<256x256xf32>
    %8 = arith.maximumf %6, %7 : vector<256x256xf32>
    %9 = arith.truncf %8 : vector<256x256xf32> to vector<256x256xbf16>
    %c0_6 = arith.constant 0 : index
    %c0_7 = arith.constant 0 : index
    %10 = vector.load %arg4[%c0_6, %c0_7] : memref<256x256xbf16, #tpu.memory_space<vmem>>, vector<256x256xbf16>
    %cst_8 = arith.constant dense<0.000000e+00> : vector<256x256xf32>
    %11 = tpu.matmul %9, %10, %cst_8 {dimension_numbers = #tpu.dot_dimension_numbers<[1], [0], [0], [1], [0, 0, 1, 1], [], []>} : vector<256x256xbf16>, vector<256x256xbf16>, vector<256x256xf32> -> vector<256x256xf32>
    %c0_9 = arith.constant 0 : index
    %c0_10 = arith.constant 0 : index
    %12 = vector.load %arg5[%c0_9, %c0_10] : memref<1x256xf32, #tpu.memory_space<vmem>>, vector<1x256xf32>
    %13 = vector.broadcast %12 : vector<1x256xf32> to vector<256x256xf32>
    %14 = arith.addf %11, %13 : vector<256x256xf32>
    %cst_11 = arith.constant 0.000000e+00 : f32
    %15 = vector.broadcast %cst_11 : f32 to vector<256x256xf32>
    %16 = arith.maximumf %14, %15 : vector<256x256xf32>
    %17 = arith.truncf %16 : vector<256x256xf32> to vector<256x256xbf16>
    %c0_12 = arith.constant 0 : index
    %c0_13 = arith.constant 0 : index
    %18 = vector.load %arg6[%c0_12, %c0_13] : memref<256x256xbf16, #tpu.memory_space<vmem>>, vector<256x256xbf16>
    %cst_14 = arith.constant dense<0.000000e+00> : vector<256x256xf32>
    %19 = tpu.matmul %17, %18, %cst_14 {dimension_numbers = #tpu.dot_dimension_numbers<[1], [0], [0], [1], [0, 0, 1, 1], [], []>} : vector<256x256xbf16>, vector<256x256xbf16>, vector<256x256xf32> -> vector<256x256xf32>
    %c0_15 = arith.constant 0 : index
    %c0_16 = arith.constant 0 : index
    %20 = vector.load %arg7[%c0_15, %c0_16] : memref<1x256xf32, #tpu.memory_space<vmem>>, vector<1x256xf32>
    %21 = vector.broadcast %20 : vector<1x256xf32> to vector<256x256xf32>
    %22 = arith.addf %19, %21 : vector<256x256xf32>
    %cst_17 = arith.constant 0.000000e+00 : f32
    %23 = vector.broadcast %cst_17 : f32 to vector<256x256xf32>
    %24 = arith.maximumf %22, %23 : vector<256x256xf32>
    %25 = arith.truncf %24 : vector<256x256xf32> to vector<256x256xbf16>
    %c0_18 = arith.constant 0 : index
    %c0_19 = arith.constant 0 : index
    %26 = vector.load %arg8[%c0_18, %c0_19] : memref<1x256xbf16, #tpu.memory_space<vmem>>, vector<1x256xbf16>
    %cst_20 = arith.constant dense<0.000000e+00> : vector<1x256xf32>
    %27 = tpu.matmul %26, %25, %cst_20 {dimension_numbers = #tpu.dot_dimension_numbers<[1], [1], [0], [0], [0, 0, 1, 0], [], []>} : vector<1x256xbf16>, vector<256x256xbf16>, vector<1x256xf32> -> vector<1x256xf32>
    %c0_21 = arith.constant 0 : index
    %c0_22 = arith.constant 0 : index
    %28 = vector.load %arg9[%c0_21, %c0_22] : memref<1x1xf32, #tpu.memory_space<vmem>>, vector<1x1xf32>
    %29 = vector.broadcast %28 : vector<1x1xf32> to vector<1x256xf32>
    %30 = arith.addf %27, %29 : vector<1x256xf32>
    %c0_23 = arith.constant 0 : index
    %c0_24 = arith.constant 0 : index
    %31 = vector.load %arg10[%c0_23, %c0_24] : memref<1x256xf32, #tpu.memory_space<vmem>>, vector<1x256xf32>
    tpu.vector_store %arg10[%c0_23, %c0_24], %30 {strides = array<i32>} : memref<1x256xf32, #tpu.memory_space<vmem>>, vector<1x256xf32>,
    return
  }
  func.func @transform_0(%arg0: i32) -> (i32, i32) {
    %c0_i32 = arith.constant 0 : i32
    %c0_i32_0 = arith.constant 0 : i32
    return %arg0, %c0_i32 : i32, i32
  }
  func.func @transform_1(%arg0: i32) -> (i32, i32) {
    %c0_i32 = arith.constant 0 : i32
    %c0_i32_0 = arith.constant 0 : i32
    %c0_i32_1 = arith.constant 0 : i32
    return %c0_i32, %c0_i32_0 : i32, i32
  }
  func.func @transform_2(%arg0: i32) -> (i32, i32) {
    %c0_i32 = arith.constant 0 : i32
    %c0_i32_0 = arith.constant 0 : i32
    %c0_i32_1 = arith.constant 0 : i32
    return %c0_i32, %c0_i32_0 : i32, i32
  }
  func.func @transform_3(%arg0: i32) -> (i32, i32) {
    %c0_i32 = arith.constant 0 : i32
    %c0_i32_0 = arith.constant 0 : i32
    %c0_i32_1 = arith.constant 0 : i32
    return %c0_i32, %c0_i32_0 : i32, i32
  }
  func.func @transform_4(%arg0: i32) -> (i32, i32) {
    %c0_i32 = arith.constant 0 : i32
    %c0_i32_0 = arith.constant 0 : i32
    %c0_i32_1 = arith.constant 0 : i32
    return %c0_i32, %c0_i32_0 : i32, i32
  }
  func.func @transform_5(%arg0: i32) -> (i32, i32) {
    %c0_i32 = arith.constant 0 : i32
    %c0_i32_0 = arith.constant 0 : i32
    %c0_i32_1 = arith.constant 0 : i32
    return %c0_i32, %c0_i32_0 : i32, i32
  }
  func.func @transform_6(%arg0: i32) -> (i32, i32) {
    %c0_i32 = arith.constant 0 : i32
    %c0_i32_0 = arith.constant 0 : i32
    %c0_i32_1 = arith.constant 0 : i32
    return %c0_i32, %c0_i32_0 : i32, i32
  }
  func.func @transform_7(%arg0: i32) -> (i32, i32) {
    %c0_i32 = arith.constant 0 : i32
    %c0_i32_0 = arith.constant 0 : i32
    %c0_i32_1 = arith.constant 0 : i32
    return %c0_i32, %c0_i32_0 : i32, i32
  }
  func.func @transform_8(%arg0: i32) -> (i32, i32) {
    %c0_i32 = arith.constant 0 : i32
    %c0_i32_0 = arith.constant 0 : i32
    %c0_i32_1 = arith.constant 0 : i32
    return %c0_i32, %c0_i32_0 : i32, i32
  }
  func.func @transform_9(%arg0: i32) -> (i32, i32) {
    %c0_i32 = arith.constant 0 : i32
    %c0_i32_0 = arith.constant 0 : i32
    return %c0_i32, %arg0 : i32, i32
  }
}

module attributes {stable_mosaic.version = 11 : i64} {
  func.func @mlp_kernel(%arg0: i32, %arg1: memref<256x32xf32, #tpu.memory_space<vmem>>, %arg2: memref<32x256xbf16, #tpu.memory_space<vmem>>, %arg3: memref<1x256xf32, #tpu.memory_space<vmem>>, %arg4: memref<256x256xbf16, #tpu.memory_space<vmem>>, %arg5: memref<1x256xf32, #tpu.memory_space<vmem>>, %arg6: memref<256x256xbf16, #tpu.memory_space<vmem>>, %arg7: memref<1x256xf32, #tpu.memory_space<vmem>>, %arg8: memref<1x256xbf16, #tpu.memory_space<vmem>>, %arg9: memref<1x1xf32, #tpu.memory_space<vmem>>, %arg10: memref<1x256xf32, #tpu.memory_space<vmem>>) attributes {dimension_semantics = [#tpu.dimension_semantics<parallel>], iteration_bounds = array<i64: 2>, scalar_prefetch = 0 : i64, scratch_operands = 0 : i64, tpu.core_type = #tpu.core_type<tc>, window_params = [{transform_indices = @transform_0, window_bounds = array<i64: 256, 32>}, {pipeline_mode = #tpu.pipeline_mode<synchronous>, transform_indices = @transform_1, window_bounds = array<i64: 32, 256>}, {pipeline_mode = #tpu.pipeline_mode<synchronous>, transform_indices = @transform_2, window_bounds = array<i64: 1, 256>}, {pipeline_mode = #tpu.pipeline_mode<synchronous>, transform_indices = @transform_3, window_bounds = array<i64: 256, 256>}, {pipeline_mode = #tpu.pipeline_mode<synchronous>, transform_indices = @transform_4, window_bounds = array<i64: 1, 256>}, {pipeline_mode = #tpu.pipeline_mode<synchronous>, transform_indices = @transform_5, window_bounds = array<i64: 256, 256>}, {pipeline_mode = #tpu.pipeline_mode<synchronous>, transform_indices = @transform_6, window_bounds = array<i64: 1, 256>}, {pipeline_mode = #tpu.pipeline_mode<synchronous>, transform_indices = @transform_7, window_bounds = array<i64: 1, 256>}, {pipeline_mode = #tpu.pipeline_mode<synchronous>, transform_indices = @transform_8, window_bounds = array<i64: 1, 1>}, {transform_indices = @transform_9, window_bounds = array<i64: 1, 256>}]} {
    %c0 = arith.constant 0 : index
    %c0_0 = arith.constant 0 : index
    %0 = vector.load %arg1[%c0, %c0_0] : memref<256x32xf32, #tpu.memory_space<vmem>>, vector<256x32xf32>
    %1 = arith.truncf %0 : vector<256x32xf32> to vector<256x32xbf16>
    %c0_1 = arith.constant 0 : index
    %c0_2 = arith.constant 0 : index
    %2 = vector.load %arg2[%c0_1, %c0_2] : memref<32x256xbf16, #tpu.memory_space<vmem>>, vector<32x256xbf16>
    %cst = arith.constant dense<0.000000e+00> : vector<256x256xf32>
    %3 = tpu.matmul %1, %2, %cst {dimension_numbers = #tpu.dot_dimension_numbers<[1], [0], [0], [1], [0, 0, 1, 1], [], []>} : vector<256x32xbf16>, vector<32x256xbf16>, vector<256x256xf32> -> vector<256x256xf32>
    %c0_3 = arith.constant 0 : index
    %c0_4 = arith.constant 0 : index
    %4 = vector.load %arg3[%c0_3, %c0_4] : memref<1x256xf32, #tpu.memory_space<vmem>>, vector<1x256xf32>
    %5 = vector.broadcast %4 : vector<1x256xf32> to vector<256x256xf32>
    %6 = arith.addf %3, %5 : vector<256x256xf32>
    %cst_5 = arith.constant 0.000000e+00 : f32
    %7 = vector.broadcast %cst_5 : f32 to vector<256x256xf32>
    %8 = arith.maximumf %6, %7 : vector<256x256xf32>
    %9 = arith.truncf %8 : vector<256x256xf32> to vector<256x256xbf16>
    %c0_6 = arith.constant 0 : index
    %c0_7 = arith.constant 0 : index
    %10 = vector.load %arg4[%c0_6, %c0_7] : memref<256x256xbf16, #tpu.memory_space<vmem>>, vector<256x256xbf16>
    %cst_8 = arith.constant dense<0.000000e+00> : vector<256x256xf32>
    %11 = tpu.matmul %9, %10, %cst_8 {dimension_numbers = #tpu.dot_dimension_numbers<[1], [0], [0], [1], [0, 0, 1, 1], [], []>} : vector<256x256xbf16>, vector<256x256xbf16>, vector<256x256xf32> -> vector<256x256xf32>
    %c0_9 = arith.constant 0 : index
    %c0_10 = arith.constant 0 : index
    %12 = vector.load %arg5[%c0_9, %c0_10] : memref<1x256xf32, #tpu.memory_space<vmem>>, vector<1x256xf32>
    %13 = vector.broadcast %12 : vector<1x256xf32> to vector<256x256xf32>
    %14 = arith.addf %11, %13 : vector<256x256xf32>
    %cst_11 = arith.constant 0.000000e+00 : f32
    %15 = vector.broadcast %cst_11 : f32 to vector<256x256xf32>
    %16 = arith.maximumf %14, %15 : vector<256x256xf32>
    %17 = arith.truncf %16 : vector<256x256xf32> to vector<256x256xbf16>
    %c0_12 = arith.constant 0 : index
    %c0_13 = arith.constant 0 : index
    %18 = vector.load %arg6[%c0_12, %c0_13] : memref<256x256xbf16, #tpu.memory_space<vmem>>, vector<256x256xbf16>
    %cst_14 = arith.constant dense<0.000000e+00> : vector<256x256xf32>
    %19 = tpu.matmul %17, %18, %cst_14 {dimension_numbers = #tpu.dot_dimension_numbers<[1], [0], [0], [1], [0, 0, 1, 1], [], []>} : vector<256x256xbf16>, vector<256x256xbf16>, vector<256x256xf32> -> vector<256x256xf32>
    %c0_15 = arith.constant 0 : index
    %c0_16 = arith.constant 0 : index
    %20 = vector.load %arg7[%c0_15, %c0_16] : memref<1x256xf32, #tpu.memory_space<vmem>>, vector<1x256xf32>
    %21 = vector.broadcast %20 : vector<1x256xf32> to vector<256x256xf32>
    %22 = arith.addf %19, %21 : vector<256x256xf32>
    %cst_17 = arith.constant 0.000000e+00 : f32
    %23 = vector.broadcast %cst_17 : f32 to vector<256x256xf32>
    %24 = arith.maximumf %22, %23 : vector<256x256xf32>
    %25 = arith.truncf %24 : vector<256x256xf32> to vector<256x256xbf16>
    %c0_18 = arith.constant 0 : index
    %c0_19 = arith.constant 0 : index
    %26 = vector.load %arg8[%c0_18, %c0_19] : memref<1x256xbf16, #tpu.memory_space<vmem>>, vector<1x256xbf16>
    %cst_20 = arith.constant dense<0.000000e+00> : vector<1x256xf32>
    %27 = tpu.matmul %26, %25, %cst_20 {dimension_numbers = #tpu.dot_dimension_numbers<[1], [1], [0], [0], [0, 0, 1, 0], [], []>} : vector<1x256xbf16>, vector<256x256xbf16>, vector<1x256xf32> -> vector<1x256xf32>
    %c0_21 = arith.constant 0 : index
    %c0_22 = arith.constant 0 : index
    %28 = vector.load %arg9[%c0_21, %c0_22] : memref<1x1xf32, #tpu.memory_space<vmem>>, vector<1x1xf32>
    %29 = vector.broadcast %28 : vector<1x1xf32> to vector<1x256xf32>
    %30 = arith.addf %27, %29 : vector<1x256xf32>
    %c0_23 = arith.constant 0 : index
    %c0_24 = arith.constant 0 : index
    %31 = vector.load %arg10[%c0_23, %c0_24] : memref<1x256xf32, #tpu.memory_space<vmem>>, vector<1x256xf32>
    tpu.vector_store %arg10[%c0_23, %c0_24], %30 {strides = array<i32>} : memref<1x256xf32, #tpu.memory_space<vmem>>, vector<1x256xf32>,
    return
  }
  func.func @transform_0(%arg0: i32) -> (i32, i32) {
    %c0_i32 = arith.constant 0 : i32
    %c0_i32_0 = arith.constant 0 : i32
    return %arg0, %c0_i32 : i32, i32
  }
  func.func @transform_1(%arg0: i32) -> (i32, i32) {
    %c0_i32 = arith.constant 0 : i32
    %c0_i32_0 = arith.constant 0 : i32
    %c0_i32_1 = arith.constant 0 : i32
    return %c0_i32, %c0_i32_0 : i32, i32
  }
  func.func @transform_2(%arg0: i32) -> (i32, i32) {
    %c0_i32 = arith.constant 0 : i32
    %c0_i32_0 = arith.constant 0 : i32
    %c0_i32_1 = arith.constant 0 : i32
    return %c0_i32, %c0_i32_0 : i32, i32
  }
  func.func @transform_3(%arg0: i32) -> (i32, i32) {
    %c0_i32 = arith.constant 0 : i32
    %c0_i32_0 = arith.constant 0 : i32
    %c0_i32_1 = arith.constant 0 : i32
    return %c0_i32, %c0_i32_0 : i32, i32
  }
  func.func @transform_4(%arg0: i32) -> (i32, i32) {
    %c0_i32 = arith.constant 0 : i32
    %c0_i32_0 = arith.constant 0 : i32
    %c0_i32_1 = arith.constant 0 : i32
    return %c0_i32, %c0_i32_0 : i32, i32
  }
  func.func @transform_5(%arg0: i32) -> (i32, i32) {
    %c0_i32 = arith.constant 0 : i32
    %c0_i32_0 = arith.constant 0 : i32
    %c0_i32_1 = arith.constant 0 : i32
    return %c0_i32, %c0_i32_0 : i32, i32
  }
  func.func @transform_6(%arg0: i32) -> (i32, i32) {
    %c0_i32 = arith.constant 0 : i32
    %c0_i32_0 = arith.constant 0 : i32
    %c0_i32_1 = arith.constant 0 : i32
    return %c0_i32, %c0_i32_0 : i32, i32
  }
  func.func @transform_7(%arg0: i32) -> (i32, i32) {
    %c0_i32 = arith.constant 0 : i32
    %c0_i32_0 = arith.constant 0 : i32
    %c0_i32_1 = arith.constant 0 : i32
    return %c0_i32, %c0_i32_0 : i32, i32
  }
  func.func @transform_8(%arg0: i32) -> (i32, i32) {
    %c0_i32 = arith.constant 0 : i32
    %c0_i32_0 = arith.constant 0 : i32
    %c0_i32_1 = arith.constant 0 : i32
    return %c0_i32, %c0_i32_0 : i32, i32
  }
  func.func @transform_9(%arg0: i32) -> (i32, i32) {
    %c0_i32 = arith.constant 0 : i32
    %c0_i32_0 = arith.constant 0 : i32
    return %c0_i32, %arg0 : i32, i32
  }
}

</mosaic_0001>

<bundles_post_ra>
// kernel: tpu_custom_call.1
= control target key start
LH: loop header
LB: loop body
LE: loop exit
PB: predicated region body
PF: predicated region fallthrough
CT: control target
= control target key end

     0   :  { %s2936_s0 = inlined_call_operand.vmem [shape: f32[512,32], index: 0, kind: input, shape index: {}]   ;;  %s2937_s1 = inlined_call_operand.vmem [shape: bf16[32,256], index: 1, kind: input, shape index: {}]   ;;  %s2938_s2 = inlined_call_operand.vmem [shape: f32[1,256], index: 2, kind: input, shape index: {}]   ;;  %s2939_s3 = inlined_call_operand.vmem [shape: bf16[256,256], index: 3, kind: input, shape index: {}]   ;;  %s2940_s4 = inlined_call_operand.vmem [shape: f32[1,256], index: 4, kind: input, shape index: {}]   ;;  %s2941_s5 = inlined_call_operand.vmem [shape: bf16[256,256], index: 5, kind: input, shape index: {}]   ;;  %s2942_s6 = inlined_call_operand.vmem [shape: f32[1,256], index: 6, kind: input, shape index: {}]   ;;  %s2943_s7 = inlined_call_operand.vmem [shape: bf16[1,256], index: 7, kind: input, shape index: {}]   ;;  %s2944_s8 = inlined_call_operand.<no memory space> [shape: f32[1,1], index: 8, kind: input, shape index: {}]   ;;  %s2945_s9 = inlined_call_operand.hbm [shape: f32[1,512], index: 9, kind: output, shape index: {}]  }
   0x1   :  { %v14_v0 = vstv %s2944_s8 }
   0x2   :  { %15 = vst [vmem:[#allocation2] sm:$0x1] %v14_v0 }
   0x3   :  { %16 = vsyncpa [#allocation4], 0 }
   0x4   :  { %18 = vsyncpa [#allocation4 + $0x1], 0  ;;  %s2285_s11 = smov 0   ;;  %s2287_s12 = smov 0  }
   0x5   :  { %s2289_s13 = smov 0   ;;  %s2291_s14 = smov 0  }
   0x6 LB: > { %s1918_s8 = sadd.s32 4294967295, %s2227_s14   ;;  %s1919_s15 = sadd.s32 4294967294, %s2227_s14   ;;  %s2227_s14 = sphi %s2291_s14, %s2951_s14   ;;  %s2223_s13 = sphi %s2289_s13, %s2950_s13   ;;  %s2219_s12 = sphi %s2287_s12, %s2949_s12   ;;  %s2215_s11 = sphi %s2285_s11, %s2948_s11  }
   0x7   : > { %s2308_s16 = sadd.s32 1, %s2227_s14   ;;  %s225_s17 = sadd.s32 1, %s2223_s13 }
   0x8   : > { %s222_s18 = ssub.s32 %s2227_s14, %s2308_s16  ;;  %p235_p0 = scmp.ne.s32.totalorder %s2223_s13, %s2219_s12 }
   0x9   : > { %p223_p1 = scmp.eq.s32.totalorder %s222_s18, 0  ;;  %p236_p2 = scmp.eq.s32.totalorder %s1918_s8, 1 }
   0xa   : > { %p241_p3 = scmp.ne.s32.totalorder %s2219_s12, %s2215_s11  ;;  %p242_p4 = scmp.eq.s32.totalorder %s1919_s15, 1 }
   0xb   : > { %s2318_s19 = scalar_select %p223_p1, %s2223_s13, %s225_s17  }
   0xc   : > { %p2320_p5 = por %p236_p2, %p235_p0  ;;  %p2324_p6 = por %p242_p4, %p241_p3 }
   0xd   : > { %p1922_p7 = scmp.ge.s32.totalorder %s2227_s14, 1  ;;  %p293_p8 = scmp.lt.s32.totalorder %s2227_s14, 3 }
   0xf   : > { %p294_p9 = pnand %p1922_p7, %p293_p8 }
  0x10   : > { %v2063_v1 = vld [vmem:[%s2937_s1 + $0x4] ss:$8 sps:$4 sm:$0xff] (!%p294_p9)   ;;  %s2333_s24 = sshll.u32 (!%p294_p9), %s1918_s8, 5  ;;  %v2065_v2 = vld [vmem:[%s2937_s1] ss:$8 sps:$4 sm:$0xff] (!%p294_p9)   ;;  %v2229_v3 = vmov (!%p294_p9), 0  }
  0x11   : > { %297 = sbr.rel (%p294_p9) target bundleno = 1059 (0x423), region = 56  ;;  %502 = vmatprep.mubr.bf16.mxu0 (!%p294_p9), %v2229_v3  ;;  %p330_p10 = scmp.lt.s32.totalorder (!%p294_p9), %s2333_s24, 63  ;;  %582 = vmatprep.mubr.bf16.mxu1 (!%p294_p9), %v2229_v3  ;;  %v2066_v4 = vld [vmem:[%s2937_s1 + $0x14] ss:$8 sps:$4 sm:$0xff] (!%p294_p9)   ;;  %v2068_v5 = vld [vmem:[%s2937_s1 + $0x10] ss:$8 sps:$4 sm:$0xff] (!%p294_p9)  }
  0x12   : > { %470 = vmatprep.subr.bf16.mxu0 (!%p294_p9), %v2063_v1  ;;  %2017 = vmatprep.subr.bf16.mxu1 (!%p294_p9), %v2063_v1  ;;  %v2071_v6 = vld [vmem:[%s2939_s3 + $0x4] ss:$8 sps:$4 sm:$0xff] (!%p294_p9)   ;;  %vm421_vm0 = vcmask (!%p294_p9), 261120   ;;  %v2069_v14 = vld [vmem:[%s2939_s3] ss:$8 sps:$4 sm:$0xff] (!%p294_p9)   ;;  %s326_s15 = sand.u32 (!%p294_p9), 1, %s2219_s12   ;;  %s2894_s26 = scalar_lea.hbm (!%p294_p9), %s2945_s9, %s2333_s24 }
  0x13   : > { %471 = vmatpush1.bf16.msra.mxu0 (!%p294_p9), %v2065_v2  ;;  %2019 = vmatpush1.bf16.msra.mxu1 (!%p294_p9), %v2065_v2  ;;  %v2074_v16 = vld [vmem:[%s2939_s3 + $0x14] ss:$8 sps:$4 sm:$0xff] (!%p294_p9)   ;;  %v2072_v20 = vld [vmem:[%s2939_s3 + $0x10] ss:$8 sps:$4 sm:$0xff] (!%p294_p9)   ;;  %v2077_v21 = vld [vmem:[%s2939_s3 + $0x24] ss:$8 sps:$4 sm:$0xff] (!%p294_p9)  }
  0x14   : > { %472 = vmatprep.subr.bf16.mxu0 (!%p294_p9), %v2066_v4  ;;  %2018 = vmatprep.subr.bf16.mxu1 (!%p294_p9), %v2066_v4  ;;  %v2075_v25 = vld [vmem:[%s2939_s3 + $0x20] ss:$8 sps:$4 sm:$0xff] (!%p294_p9)   ;;  %v2080_v26 = vld [vmem:[%s2939_s3 + $0x34] ss:$8 sps:$4 sm:$0xff] (!%p294_p9)   ;;  %v2078_v30 = vld [vmem:[%s2939_s3 + $0x30] ss:$8 sps:$4 sm:$0xff] (!%p294_p9)  }
  0x15   : > { %2062 = vset.pattern.permute.xlu0 (!%p294_p9), %v2229_v3  ;;  %v2083_v31 = vld [vmem:[%s2939_s3 + $0x44] ss:$8 sps:$4 sm:$0xff] (!%p294_p9)   ;;  %v2081_v35 = vld [vmem:[%s2939_s3 + $0x40] ss:$8 sps:$4 sm:$0xff] (!%p294_p9)   ;;  %v2086_v36 = vld [vmem:[%s2939_s3 + $0x54] ss:$8 sps:$4 sm:$0xff] (!%p294_p9)  }
  0x16   : > { %v2084_v40 = vld [vmem:[%s2939_s3 + $0x50] ss:$8 sps:$4 sm:$0xff] (!%p294_p9)   ;;  %v2089_v41 = vld [vmem:[%s2939_s3 + $0x64] ss:$8 sps:$4 sm:$0xff] (!%p294_p9)   ;;  %v2087_v44 = vld [vmem:[%s2939_s3 + $0x60] ss:$8 sps:$4 sm:$0xff] (!%p294_p9)  }
  0x17   : > { %473 = vmatpush1.bf16.msra.mxu0 (!%p294_p9), %v2068_v5  ;;  %2020 = vmatpush1.bf16.msra.mxu1 (!%p294_p9), %v2068_v5  ;;  %v2092_v46 = vld [vmem:[%s2939_s3 + $0x74] ss:$8 sps:$4 sm:$0xff] (!%p294_p9)   ;;  %v2090_v50 = vld [vmem:[%s2939_s3 + $0x70] ss:$8 sps:$4 sm:$0xff] (!%p294_p9)   ;;  %v2095_v51 = vld [vmem:[%s2939_s3 + $0x84] ss:$8 sps:$4 sm:$0xff] (!%p294_p9)  }
  0x18   : > { %s331_s10 = scalar_select %p330_p10, %s2333_s24, 63  ;;  %963 = vmatprep.subr.bf16.mxu1 %v2071_v6  ;;  %v2093_v55 = vld [vmem:[%s2939_s3 + $0x80] ss:$8 sps:$4 sm:$0xff]   ;;  %v2098_v56 = vld [vmem:[%s2939_s3 + $0x94] ss:$8 sps:$4 sm:$0xff]  }
  0x19   : > { %v2096_v60 = vld [vmem:[%s2939_s3 + $0x90] ss:$8 sps:$4 sm:$0xff]   ;;  %v2101_v61 = vld [vmem:[%s2939_s3 + $0xa4] ss:$8 sps:$4 sm:$0xff]   ;;  %v2099_v1 = vld [vmem:[%s2939_s3 + $0xa0] ss:$8 sps:$4 sm:$0xff]  }
  0x1a   : > { %s1925_s17 = sshll.u32 %s331_s10, 3  ;;  %v2104_v2 = vld [vmem:[%s2939_s3 + $0xb4] ss:$8 sps:$4 sm:$0xff]   ;;  %s1846_s27 = scalar_lea.sflag [#allocation4], %s326_s15 }
  0x1b   : > { %s2355_s23 = scalar_lea.vmem %s2936_s0, %s1925_s17  ;;  %s1923_s17 = sshll.u32 %s326_s15, 1 }
  0x1c   : > { %v337_v7 = vld [vmem:[%s2355_s23] sm:$0xff]  ;;  %v338_v8 = vld [vmem:[%s2355_s23 + $0x8] sm:$0xff]  ;;  %v339_v10 = vld [vmem:[%s2355_s23 + $0x10] sm:$0xff]  ;;  %s2231_s29 = smov [#allocation3]  }
  0x1d   : > { %v369_v9 = vpack.c.bf16 %v338_v8, %v337_v7  ;;  %v340_v11 = vld [vmem:[%s2355_s23 + $0x18] sm:$0xff]  ;;  %v353_v12 = vld [vmem:[%s2355_s23 + $0x80] sm:$0xff]  ;;  %v354_v13 = vld [vmem:[%s2355_s23 + $0x88] sm:$0xff]  ;;  %s2169_s30 = sshll.u32 %s2231_s29, 4  ;;  %s2170_s30 = int_to_ptr.vmem [resolvable:$false] %s2169_s30 }
  0x1e   : > { %v377_v15 = vpack.c.bf16 %v354_v13, %v353_v12  ;;  %v370_v17 = vpack.c.bf16 %v340_v11, %v339_v10  ;;  %v355_v18 = vld [vmem:[%s2355_s23 + $0x90] sm:$0xff]  ;;  %v356_v19 = vld [vmem:[%s2355_s23 + $0x98] sm:$0xff]  ;;  %v341_v22 = vld [vmem:[%s2355_s23 + $0x20] sm:$0xff]  ;;  %s2171_s10 = scalar_lea.vmem %s2170_s30, 64 }
  0x1f   : > { %1930 = vmatmul.mubr.msk.bf16.vlgmr.msra.gmra.mrb[0].mxu0 %vm421_vm0, %v369_v9  ;;  %v342_v23 = vld [vmem:[%s2355_s23 + $0x28] sm:$0xff]  ;;  %v378_v24 = vpack.c.bf16 %v356_v19, %v355_v18  ;;  %v357_v28 = vld [vmem:[%s2355_s23 + $0xa0] sm:$0xff]  ;;  %v343_v32 = vld [vmem:[%s2355_s23 + $0x30] sm:$0xff] }
  0x20   : > { %512 = vmatprep.mubr.bf16.mxu0 %v2229_v3  ;;  %1938 = vmatmul.mubr.msk.bf16.vlgmr.msra.gmra.mrb[0].mxu1 %vm421_vm0, %v377_v15  ;;  %v371_v27 = vpack.c.bf16 %v342_v23, %v341_v22  ;;  %v358_v29 = vld [vmem:[%s2355_s23 + $0xa8] sm:$0xff]  ;;  %v344_v33 = vld [vmem:[%s2355_s23 + $0x38] sm:$0xff]  ;;  %v359_v38 = vld [vmem:[%s2355_s23 + $0xb0] sm:$0xff]  ;;  %v391_v22 = vlaneseq }
  0x21   : > { %592 = vmatprep.mubr.bf16.mxu1 %v2229_v3  ;;  %964 = vmatpush1.bf16.msra.mxu1 %v2069_v14  ;;  %v379_v34 = vpack.c.bf16 %v358_v29, %v357_v28  ;;  %v372_v37 = vpack.c.bf16 %v344_v33, %v343_v32  ;;  %v360_v39 = vld [vmem:[%s2355_s23 + $0xb8] sm:$0xff]  ;;  %v345_v42 = vld [vmem:[%s2355_s23 + $0x40] sm:$0xff]  ;;  %v346_v43 = vld [vmem:[%s2355_s23 + $0x48] sm:$0xff] }
  0x22   : > { %965 = vmatprep.subr.bf16.mxu1 %v2074_v16  ;;  %v380_v45 = vpack.c.bf16 %v360_v39, %v359_v38  ;;  %v373_v47 = vpack.c.bf16 %v346_v43, %v345_v42  ;;  %v361_v48 = vld [vmem:[%s2355_s23 + $0xc0] sm:$0xff]  ;;  %v362_v49 = vld [vmem:[%s2355_s23 + $0xc8] sm:$0xff]  ;;  %v347_v52 = vld [vmem:[%s2355_s23 + $0x50] sm:$0xff]  ;;  %v2513_v23 = vshrl.u32 %v391_v22, 7  ;;  %vm1842_vm1 = vcmp.lt.s32.totalorder %v391_v22, 256 }
  0x23   : > { %v348_v53 = vld [vmem:[%s2355_s23 + $0x58] sm:$0xff]  ;;  %v381_v54 = vpack.c.bf16 %v362_v49, %v361_v48  ;;  %v363_v58 = vld [vmem:[%s2355_s23 + $0xd0] sm:$0xff]  ;;  %v349_v62 = vld [vmem:[%s2355_s23 + $0x60] sm:$0xff] }
  0x24   : > { %v374_v57 = vpack.c.bf16 %v348_v53, %v347_v52  ;;  %v364_v59 = vld [vmem:[%s2355_s23 + $0xd8] sm:$0xff]  ;;  %v350_v63 = vld [vmem:[%s2355_s23 + $0x68] sm:$0xff]  ;;  %v365_v5 = vld [vmem:[%s2355_s23 + $0xe0] sm:$0xff] }
  0x25   : > { %966 = vmatpush1.bf16.msra.mxu1 %v2072_v20  ;;  %v382_v0 = vpack.c.bf16 %v364_v59, %v363_v58  ;;  %v375_v4 = vpack.c.bf16 %v350_v63, %v349_v62  ;;  %v366_v6 = vld [vmem:[%s2355_s23 + $0xe8] sm:$0xff]  ;;  %v2102_v7 = vld [vmem:[%s2939_s3 + $0xb0] ss:$8 sps:$4 sm:$0xff]   ;;  %v2110_v13 = vld [vmem:[%s2939_s3 + $0xd4] ss:$8 sps:$4 sm:$0xff]  }
  0x26   : > { %967 = vmatprep.subr.bf16.mxu1 %v2077_v21  ;;  %v2107_v8 = vld [vmem:[%s2939_s3 + $0xc4] ss:$8 sps:$4 sm:$0xff]   ;;  %v351_v9 = vld [vmem:[%s2355_s23 + $0x70] sm:$0xff]  ;;  %v352_v10 = vld [vmem:[%s2355_s23 + $0x78] sm:$0xff]  ;;  %v383_v11 = vpack.c.bf16 %v366_v6, %v365_v5 }
  0x27   : > { %1931 = vmatmul.mubr.msk.bf16.gmra.mrb[4].mxu0 %vm421_vm0, %v370_v17  ;;  %v2105_v12 = vld [vmem:[%s2939_s3 + $0xc0] ss:$8 sps:$4 sm:$0xff]   ;;  %v376_v14 = vpack.c.bf16 %v352_v10, %v351_v9  ;;  %v367_v15 = vld [vmem:[%s2355_s23 + $0xf0] sm:$0xff]  ;;  %v368_v16 = vld [vmem:[%s2355_s23 + $0xf8] sm:$0xff]  ;;  %s328_s23 = scalar_lea.vmem [#allocation3], %s1923_s17 }
  0x28   : > { %522 = vmatprep.mubr.bf16.mxu0 %v2229_v3  ;;  %1939 = vmatmul.mubr.msk.bf16.gmra.mrb[4].mxu1 %vm421_vm0, %v378_v24  ;;  %v2108_v17 = vld [vmem:[%s2939_s3 + $0xd0] ss:$8 sps:$4 sm:$0xff]   ;;  %v384_v18 = vpack.c.bf16 %v368_v16, %v367_v15  ;;  %v2113_v19 = vld [vmem:[%s2939_s3 + $0xe4] ss:$8 sps:$4 sm:$0xff]   ;;  %v2116_v20 = vld [vmem:[%s2939_s3 + $0xf4] ss:$8 sps:$4 sm:$0xff]  }
  0x29   : > { %602 = vmatprep.mubr.bf16.mxu1 %v2229_v3  ;;  %968 = vmatpush1.bf16.msra.mxu1 %v2075_v25  ;;  %v2114_v21 = vld [vmem:[%s2939_s3 + $0xf0] ss:$8 sps:$4 sm:$0xff]   ;;  %v2516_v24 = vsub.s32 0, %v2513_v23  ;;  %v389_v25 = vld [vmem:[%s2938_s2] sm:$0x3]  ;;  %s1860_s18 = sshll.u32 %s328_s23, 4  ;;  %s2896_s18 = int_to_ptr.vmem [resolvable:$true] %s1860_s18 }
  0x2a   : > { %969 = vmatprep.subr.bf16.mxu1 %v2080_v26  ;;  %v2522_v26 = vsub.s32 1, %v2513_v23  ;;  %v2122_v39 = vld [vmem:[%s2941_s5 + $0x14] ss:$8 sps:$4 sm:$0xff]   ;;  %v2126_v16 = vld [vmem:[%s2941_s5 + $0x30] ss:$8 sps:$4 sm:$0xff]   ;;  %s2165_s28 = scalar_lea.vmem %s2896_s18, 32  ;;  %p2172_p0 = scmp.lt.s32.totalorder %s2896_s18, %s2170_s30 }
  0x2b   : > { %v2128_v5 = vld [vmem:[%s2941_s5 + $0x34] ss:$8 sps:$4 sm:$0xff]   ;;  %p2166_p11 = scmp.ne.s32.totalorder %s2896_s18, %s2165_s28  ;;  %p2173_p1 = scmp.lt.s32.totalorder %s2171_s10, %s2165_s28 }
  0x2c   : > { %v2528_v28 = vrot.slane %v389_v25, %v2522_v26 }
  0x2d   : > { %970 = vmatpush1.bf16.msra.mxu1 %v2078_v30  ;;  %p2167_p12 = pnand %p2166_p11, %p2320_p5  ;;  %p2174_p2 = por %p2173_p1, %p2172_p0 }
  0x2e   : > { %971 = vmatprep.subr.bf16.mxu1 %v2083_v31 }
  0x2f   : > { %1932 = vmatmul.mubr.msk.bf16.gmra.mrb[8].mxu0 %vm421_vm0, %v371_v27  ;;  %v2525_v27 = vrot.slane %v389_v25, %v2516_v24  ;;  %p2168_p13 = pneg %p2167_p12 }
  0x30   : > { %532 = vmatprep.mubr.bf16.mxu0 %v2229_v3  ;;  %1940 = vmatmul.mubr.msk.bf16.gmra.mrb[8].mxu1 %vm421_vm0, %v379_v34 }
  0x31   : > { %612 = vmatprep.mubr.bf16.mxu1 %v2229_v3  ;;  %972 = vmatpush1.bf16.msra.mxu1 %v2081_v35  ;;  %p2175_p3 = pnand %p2174_p2, %p2168_p13 }
  0x32   : > { %973 = vmatprep.subr.bf16.mxu1 %v2086_v36  ;;  %v2117_v36 = vld [vmem:[%s2941_s5] ss:$8 sps:$4 sm:$0xff]  }
  0x35   : > { %974 = vmatpush1.bf16.msra.mxu1 %v2084_v40 }
  0x36   : > { %975 = vmatprep.subr.bf16.mxu1 %v2089_v41 }
  0x37   : > { %1933 = vmatmul.mubr.msk.bf16.gmra.mrb[12].mxu0 %vm421_vm0, %v372_v37  ;;  %v2119_v37 = vld [vmem:[%s2941_s5 + $0x4] ss:$8 sps:$4 sm:$0xff]  }
  0x38   : > { %542 = vmatprep.mubr.bf16.mxu0 %v2229_v3  ;;  %1941 = vmatmul.mubr.msk.bf16.gmra.mrb[12].mxu1 %vm421_vm0, %v380_v45 }
  0x39   : > { %622 = vmatprep.mubr.bf16.mxu1 %v2229_v3  ;;  %976 = vmatpush1.bf16.msra.mxu1 %v2087_v44 }
  0x3a   : > { %977 = vmatprep.subr.bf16.mxu1 %v2092_v46  ;;  %1456 = vmatprep.subr.bf16.mxu0 %v2119_v37 }
  0x3b   : > { %1457 = vmatpush1.bf16.msra.mxu0 %v2117_v36 }
  0x3c   : > { %1458 = vmatprep.subr.bf16.mxu0 %v2122_v39 }
  0x3d   : > { %978 = vmatpush1.bf16.msra.mxu1 %v2090_v50 }
  0x3e   : > { %979 = vmatprep.subr.bf16.mxu1 %v2095_v51  ;;  %v2125_v51 = vld [vmem:[%s2941_s5 + $0x24] ss:$8 sps:$4 sm:$0xff]  }
  0x3f   : > { %1934 = vmatmul.mubr.msk.bf16.gmra.mrb[16].mxu0 %vm421_vm0, %v373_v47  ;;  %v2120_v47 = vld [vmem:[%s2941_s5 + $0x10] ss:$8 sps:$4 sm:$0xff]  }
  0x40   : > { %552 = vmatprep.mubr.bf16.mxu0 %v2229_v3  ;;  %1942 = vmatmul.mubr.msk.bf16.gmra.mrb[16].mxu1 %vm421_vm0, %v381_v54 }
  0x41   : > { %632 = vmatprep.mubr.bf16.mxu1 %v2229_v3  ;;  %980 = vmatpush1.bf16.msra.mxu1 %v2093_v55 }
  0x42   : > { %981 = vmatprep.subr.bf16.mxu1 %v2098_v56  ;;  %1459 = vmatpush1.bf16.msra.mxu0 %v2120_v47 }
  0x43   : > { %1460 = vmatprep.subr.bf16.mxu0 %v2125_v51 }
  0x45   : > { %982 = vmatpush1.bf16.msra.mxu1 %v2096_v60 }
  0x46   : > { %983 = vmatprep.subr.bf16.mxu1 %v2101_v61 }
  0x47   : > { %1935 = vmatmul.mubr.msk.bf16.gmra.mrb[20].mxu0 %vm421_vm0, %v374_v57 }
  0x48   : > { %562 = vmatprep.mubr.bf16.mxu0 %v2229_v3  ;;  %1943 = vmatmul.mubr.msk.bf16.gmra.mrb[20].mxu1 %vm421_vm0, %v382_v0  ;;  %v2123_v0 = vld [vmem:[%s2941_s5 + $0x20] ss:$8 sps:$4 sm:$0xff]  }
  0x49   : > { %642 = vmatprep.mubr.bf16.mxu1 %v2229_v3  ;;  %984 = vmatpush1.bf16.msra.mxu1 %v2099_v1 }
  0x4a   : > { %985 = vmatprep.subr.bf16.mxu1 %v2104_v2  ;;  %1461 = vmatpush1.bf16.msra.mxu0 %v2123_v0 }
  0x4b   : > { %1462 = vmatprep.subr.bf16.mxu0 %v2128_v5 }
  0x4d   : > { %986 = vmatpush1.bf16.msra.mxu1 %v2102_v7 }
  0x4e   : > { %987 = vmatprep.subr.bf16.mxu1 %v2107_v8  ;;  %1463 = vmatpush1.bf16.msra.mxu0 %v2126_v16 }
  0x4f   : > { %1936 = vmatmul.mubr.msk.bf16.gmra.mrb[24].mxu0 %vm421_vm0, %v375_v4 }
  0x50   : > { %572 = vmatprep.mubr.bf16.mxu0 %v2229_v3  ;;  %1944 = vmatmul.mubr.msk.bf16.gmra.mrb[24].mxu1 %vm421_vm0, %v383_v11 }
  0x51   : > { %652 = vmatprep.mubr.bf16.mxu1 %v2229_v3  ;;  %988 = vmatpush1.bf16.msra.mxu1 %v2105_v12  ;;  %v2111_v3 = vld [vmem:[%s2939_s3 + $0xe0] ss:$8 sps:$4 sm:$0xff]  }
  0x52   : > { %989 = vmatprep.subr.bf16.mxu1 %v2110_v13 }
  0x55   : > { %990 = vmatpush1.bf16.msra.mxu1 %v2108_v17 }
  0x56   : > { %991 = vmatprep.subr.bf16.mxu1 %v2113_v19 }
  0x57   : > { %1937 = vmatmul.mubr.msk.bf16.gmra.mrb[28].mxu0 %vm421_vm0, %v376_v14 }
  0x58   : > { %1945 = vmatmul.mubr.msk.bf16.gmra.mrb[28].mxu1 %vm421_vm0, %v384_v18 }
  0x59   : > { %992 = vmatpush1.bf16.msra.mxu1 %v2111_v3  ;;  %v2131_v3 = vld [vmem:[%s2941_s5 + $0x44] ss:$8 sps:$4 sm:$0xff]  }
  0x5a   : > { %993 = vmatprep.subr.bf16.mxu1 %v2116_v20  ;;  %1464 = vmatprep.subr.bf16.mxu0 %v2131_v3 }
  0x5d   : > { %994 = vmatpush1.bf16.msra.mxu1 %v2114_v21 }
  0xf2   : > { %v504_v29 = vpop.f32.mrb[0].mxu0 }
  0xf3   : > { %v505_v30 = vadd.f32 %v504_v29, %v2525_v27  ;;  %v506_v31 = vpop.f32.mrb[1].mxu0  ;;  %v584_v42 = vpop.f32.mrb[0].mxu1 }
  0xf4   : > { %v507_v32 = vadd.f32 %v506_v31, %v2528_v28  ;;  %v508_v33 = vpop.f32.mrb[2].mxu0  ;;  %v585_v45 = vadd.f32 %v584_v42, %v2525_v27  ;;  %v586_v46 = vpop.f32.mrb[1].mxu1  ;;  %v2134_v42 = vld [vmem:[%s2941_s5 + $0x54] ss:$8 sps:$4 sm:$0xff]  }
  0xf5   : > { %v509_v34 = vadd.f32 %v508_v33, %v2525_v27  ;;  %v510_v35 = vpop.f32.mrb[3].mxu0  ;;  %v663_v40 = vmax.f32 %v505_v30, 0.0  ;;  %v587_v49 = vadd.f32 %v586_v46, %v2528_v28  ;;  %v588_v50 = vpop.f32.mrb[2].mxu1 }
  0xf6   : > { %v511_v38 = vadd.f32 %v510_v35, %v2528_v28  ;;  %v664_v43 = vmax.f32 %v507_v32, 0.0  ;;  %v695_v54 = vmax.f32 %v585_v45, 0.0  ;;  %v589_v55 = vadd.f32 %v588_v50, %v2525_v27  ;;  %v590_v56 = vpop.f32.mrb[3].mxu1 }
  0xf7   : > { %v665_v41 = vmax.f32 %v509_v34, 0.0  ;;  %v696_v59 = vmax.f32 %v587_v49, 0.0  ;;  %v591_v60 = vadd.f32 %v590_v56, %v2528_v28 }
  0xf8   : > { %v666_v44 = vmax.f32 %v511_v38, 0.0  ;;  %v697_v63 = vmax.f32 %v589_v55, 0.0  ;;  %v2129_v38 = vld [vmem:[%s2941_s5 + $0x40] ss:$8 sps:$4 sm:$0xff]  }
  0xf9   : > { %v727_v48 = vpack.c.bf16 %v665_v41, %v663_v40  ;;  %v698_v4 = vmax.f32 %v591_v60, 0.0  ;;  %1465 = vmatpush1.bf16.msra.mxu0 %v2129_v38 }
  0xfa   : > { %v728_v52 = vpack.c.bf16 %v666_v44, %v664_v43  ;;  %v514_v53 = vpop.f32.mrb[4].mxu0  ;;  %v2563_v7 = vpack.c.bf16 %v697_v63, %v695_v54  ;;  %1466 = vmatprep.subr.bf16.mxu0 %v2134_v42 }
  0xfb   : > { %v515_v57 = vadd.f32 %v514_v53, %v2525_v27  ;;  %v516_v58 = vpop.f32.mrb[5].mxu0  ;;  %v2565_v10 = vpack.c.bf16 %v698_v4, %v696_v59  ;;  %v594_v11 = vpop.f32.mrb[4].mxu1  ;;  %v2132_v53 = vld [vmem:[%s2941_s5 + $0x50] ss:$8 sps:$4 sm:$0xff]  }
  0xfc   : > { %v517_v61 = vadd.f32 %v516_v58, %v2528_v28  ;;  %v518_v62 = vpop.f32.mrb[6].mxu0  ;;  %995 = vmatprep.mubr.bf16.mxu1 %v728_v52  ;;  %v595_v14 = vadd.f32 %v594_v11, %v2525_v27  ;;  %v596_v15 = vpop.f32.mrb[5].mxu1 }
  0xfd   : > { %v519_v1 = vadd.f32 %v518_v62, %v2525_v27  ;;  %v520_v2 = vpop.f32.mrb[7].mxu0  ;;  %996 = vmatmul.mubr.bf16.vlgmr.msra.gmra.mrb[32].mxu1 %v727_v48  ;;  %v667_v8 = vmax.f32 %v515_v57, 0.0  ;;  %v597_v18 = vadd.f32 %v596_v15, %v2528_v28  ;;  %v598_v19 = vpop.f32.mrb[6].mxu1  ;;  %v2137_v57 = vld [vmem:[%s2941_s5 + $0x64] ss:$8 sps:$4 sm:$0xff]   ;;  %1467 = vmatpush1.bf16.msra.mxu0 %v2132_v53 }
  0xfe   : > { %v521_v6 = vadd.f32 %v520_v2, %v2528_v28  ;;  %v668_v12 = vmax.f32 %v517_v61, 0.0  ;;  %v699_v25 = vmax.f32 %v595_v14, 0.0  ;;  %v599_v29 = vadd.f32 %v598_v19, %v2525_v27  ;;  %v600_v30 = vpop.f32.mrb[7].mxu1  ;;  %1468 = vmatprep.subr.bf16.mxu0 %v2137_v57 }
  0xff   : > { %v669_v9 = vmax.f32 %v519_v1, 0.0  ;;  %v700_v33 = vmax.f32 %v597_v18, 0.0  ;;  %v601_v34 = vadd.f32 %v600_v30, %v2528_v28 }
 0x100   : > { %v670_v13 = vmax.f32 %v521_v6, 0.0  ;;  %v701_v37 = vmax.f32 %v599_v29, 0.0  ;;  %v2138_v29 = vld [vmem:[%s2941_s5 + $0x70] ss:$8 sps:$4 sm:$0xff]  }
 0x101   : > { %v729_v17 = vpack.c.bf16 %v669_v9, %v667_v8  ;;  %v702_v41 = vmax.f32 %v601_v34, 0.0  ;;  %v2135_v8 = vld [vmem:[%s2941_s5 + $0x60] ss:$8 sps:$4 sm:$0xff]  }
 0x102   : > { %v730_v20 = vpack.c.bf16 %v670_v13, %v668_v12  ;;  %v524_v21 = vpop.f32.mrb[8].mxu0  ;;  %v2587_v44 = vpack.c.bf16 %v701_v37, %v699_v25  ;;  %v2140_v13 = vld [vmem:[%s2941_s5 + $0x74] ss:$8 sps:$4 sm:$0xff]   ;;  %1469 = vmatpush1.bf16.msra.mxu0 %v2135_v8 }
 0x103   : > { %v525_v31 = vadd.f32 %v524_v21, %v2525_v27  ;;  %v526_v32 = vpop.f32.mrb[9].mxu0  ;;  %v2589_v47 = vpack.c.bf16 %v702_v41, %v700_v33  ;;  %v604_v48 = vpop.f32.mrb[8].mxu1  ;;  %1470 = vmatprep.subr.bf16.mxu0 %v2140_v13  ;;  %v2143_v33 = vld [vmem:[%s2941_s5 + $0x84] ss:$8 sps:$4 sm:$0xff]  }
 0x104   : > { %v527_v35 = vadd.f32 %v526_v32, %v2528_v28  ;;  %v528_v36 = vpop.f32.mrb[10].mxu0  ;;  %1005 = vmatprep.mubr.bf16.mxu1 %v730_v20  ;;  %v605_v51 = vadd.f32 %v604_v48, %v2525_v27  ;;  %v606_v52 = vpop.f32.mrb[9].mxu1  ;;  %v2141_v48 = vld [vmem:[%s2941_s5 + $0x80] ss:$8 sps:$4 sm:$0xff]  }
 0x105   : > { %v529_v39 = vadd.f32 %v528_v36, %v2525_v27  ;;  %v530_v40 = vpop.f32.mrb[11].mxu0  ;;  %1006 = vmatmul.mubr.bf16.gmra.mrb[36].mxu1 %v729_v17  ;;  %v671_v45 = vmax.f32 %v525_v31, 0.0  ;;  %v607_v55 = vadd.f32 %v606_v52, %v2528_v28  ;;  %v608_v56 = vpop.f32.mrb[10].mxu1  ;;  %v2146_v52 = vld [vmem:[%s2941_s5 + $0x94] ss:$8 sps:$4 sm:$0xff]  }
 0x106   : > { %v531_v43 = vadd.f32 %v530_v40, %v2528_v28  ;;  %v672_v49 = vmax.f32 %v527_v35, 0.0  ;;  %v703_v60 = vmax.f32 %v605_v51, 0.0  ;;  %v609_v61 = vadd.f32 %v608_v56, %v2525_v27  ;;  %v610_v62 = vpop.f32.mrb[11].mxu1  ;;  %1471 = vmatpush1.bf16.msra.mxu0 %v2138_v29 }
 0x107   : > { %v673_v46 = vmax.f32 %v529_v39, 0.0  ;;  %v704_v1 = vmax.f32 %v607_v55, 0.0  ;;  %v611_v2 = vadd.f32 %v610_v62, %v2528_v28  ;;  %1472 = vmatprep.subr.bf16.mxu0 %v2143_v33 }
 0x108   : > { %v674_v50 = vmax.f32 %v531_v43, 0.0  ;;  %v705_v6 = vmax.f32 %v609_v61, 0.0 }
 0x109   : > { %v731_v54 = vpack.c.bf16 %v673_v46, %v671_v45  ;;  %v706_v12 = vmax.f32 %v611_v2, 0.0 }
 0x10a   : > { %v732_v58 = vpack.c.bf16 %v674_v50, %v672_v49  ;;  %v534_v59 = vpop.f32.mrb[12].mxu0  ;;  %v2611_v15 = vpack.c.bf16 %v705_v6, %v703_v60  ;;  %1473 = vmatpush1.bf16.msra.mxu0 %v2141_v48 }
 0x10b   : > { %v535_v63 = vadd.f32 %v534_v59, %v2525_v27  ;;  %v536_v0 = vpop.f32.mrb[13].mxu0  ;;  %v2613_v18 = vpack.c.bf16 %v706_v12, %v704_v1  ;;  %v614_v19 = vpop.f32.mrb[12].mxu1  ;;  %1474 = vmatprep.subr.bf16.mxu0 %v2146_v52 }
 0x10c   : > { %v537_v4 = vadd.f32 %v536_v0, %v2528_v28  ;;  %v538_v5 = vpop.f32.mrb[14].mxu0  ;;  %1015 = vmatprep.mubr.bf16.mxu1 %v732_v58  ;;  %v615_v21 = vadd.f32 %v614_v19, %v2525_v27  ;;  %v616_v25 = vpop.f32.mrb[13].mxu1 }
 0x10d   : > { %v539_v9 = vadd.f32 %v538_v5, %v2525_v27  ;;  %v540_v11 = vpop.f32.mrb[15].mxu0  ;;  %1016 = vmatmul.mubr.bf16.gmra.mrb[40].mxu1 %v731_v54  ;;  %v675_v16 = vmax.f32 %v535_v63, 0.0  ;;  %v617_v31 = vadd.f32 %v616_v25, %v2528_v28  ;;  %v618_v32 = vpop.f32.mrb[14].mxu1  ;;  %v2144_v63 = vld [vmem:[%s2941_s5 + $0x90] ss:$8 sps:$4 sm:$0xff]  }
 0x10e   : > { %v541_v14 = vadd.f32 %v540_v11, %v2528_v28  ;;  %v676_v3 = vmax.f32 %v537_v4, 0.0  ;;  %v707_v36 = vmax.f32 %v615_v21, 0.0  ;;  %v619_v37 = vadd.f32 %v618_v32, %v2525_v27  ;;  %v620_v38 = vpop.f32.mrb[15].mxu1  ;;  %v2149_v4 = vld [vmem:[%s2941_s5 + $0xa4] ss:$8 sps:$4 sm:$0xff]   ;;  %1475 = vmatpush1.bf16.msra.mxu0 %v2144_v63 }
 0x10f   : > { %v677_v17 = vmax.f32 %v539_v9, 0.0  ;;  %v708_v41 = vmax.f32 %v617_v31, 0.0  ;;  %v621_v42 = vadd.f32 %v620_v38, %v2528_v28  ;;  %1476 = vmatprep.subr.bf16.mxu0 %v2149_v4 }
 0x110   : > { %v678_v20 = vmax.f32 %v541_v14, 0.0  ;;  %v709_v46 = vmax.f32 %v619_v37, 0.0 }
 0x111   : > { %v733_v30 = vpack.c.bf16 %v677_v17, %v675_v16  ;;  %v710_v51 = vmax.f32 %v621_v42, 0.0 }
 0x112   : > { %v734_v34 = vpack.c.bf16 %v678_v20, %v676_v3  ;;  %v544_v35 = vpop.f32.mrb[16].mxu0  ;;  %v2635_v54 = vpack.c.bf16 %v709_v46, %v707_v36  ;;  %v2147_v20 = vld [vmem:[%s2941_s5 + $0xa0] ss:$8 sps:$4 sm:$0xff]   ;;  %v2155_v46 = vld [vmem:[%s2941_s5 + $0xc4] ss:$8 sps:$4 sm:$0xff]  }
 0x113   : > { %v545_v39 = vadd.f32 %v544_v35, %v2525_v27  ;;  %v546_v40 = vpop.f32.mrb[17].mxu0  ;;  %v2637_v57 = vpack.c.bf16 %v710_v51, %v708_v41  ;;  %v624_v58 = vpop.f32.mrb[16].mxu1  ;;  %1477 = vmatpush1.bf16.msra.mxu0 %v2147_v20  ;;  %v2150_v41 = vld [vmem:[%s2941_s5 + $0xb0] ss:$8 sps:$4 sm:$0xff]  }
 0x114   : > { %v547_v43 = vadd.f32 %v546_v40, %v2528_v28  ;;  %v548_v45 = vpop.f32.mrb[18].mxu0  ;;  %1025 = vmatprep.mubr.bf16.mxu1 %v734_v34  ;;  %v625_v61 = vadd.f32 %v624_v58, %v2525_v27  ;;  %v626_v62 = vpop.f32.mrb[17].mxu1 }
 0x115   : > { %v549_v49 = vadd.f32 %v548_v45, %v2525_v27  ;;  %v550_v50 = vpop.f32.mrb[19].mxu0  ;;  %1026 = vmatmul.mubr.bf16.gmra.mrb[44].mxu1 %v733_v30  ;;  %v679_v55 = vmax.f32 %v545_v39, 0.0  ;;  %v627_v1 = vadd.f32 %v626_v62, %v2528_v28  ;;  %v628_v2 = vpop.f32.mrb[18].mxu1  ;;  %v2152_v30 = vld [vmem:[%s2941_s5 + $0xb4] ss:$8 sps:$4 sm:$0xff]  }
 0x116   : > { %v551_v53 = vadd.f32 %v550_v50, %v2528_v28  ;;  %v680_v59 = vmax.f32 %v547_v43, 0.0  ;;  %v711_v8 = vmax.f32 %v625_v61, 0.0  ;;  %v629_v9 = vadd.f32 %v628_v2, %v2525_v27  ;;  %v630_v11 = vpop.f32.mrb[19].mxu1  ;;  %1478 = vmatprep.subr.bf16.mxu0 %v2152_v30  ;;  %v2153_v62 = vld [vmem:[%s2941_s5 + $0xc0] ss:$8 sps:$4 sm:$0xff]  }
 0x117   : > { %v681_v56 = vmax.f32 %v549_v49, 0.0  ;;  %v712_v14 = vmax.f32 %v627_v1, 0.0  ;;  %v631_v16 = vadd.f32 %v630_v11, %v2528_v28  ;;  %1479 = vmatpush1.bf16.msra.mxu0 %v2150_v41  ;;  %v2158_v2 = vld [vmem:[%s2941_s5 + $0xd4] ss:$8 sps:$4 sm:$0xff]  }
 0x118   : > { %v682_v60 = vmax.f32 %v551_v53, 0.0  ;;  %v713_v3 = vmax.f32 %v629_v9, 0.0  ;;  %1480 = vmatprep.subr.bf16.mxu0 %v2155_v46 }
 0x119   : > { %v735_v0 = vpack.c.bf16 %v681_v56, %v679_v55  ;;  %v714_v29 = vmax.f32 %v631_v16, 0.0 }
 0x11a   : > { %v736_v5 = vpack.c.bf16 %v682_v60, %v680_v59  ;;  %v554_v6 = vpop.f32.mrb[20].mxu0  ;;  %v2659_v32 = vpack.c.bf16 %v713_v3, %v711_v8 }
 0x11b   : > { %v555_v12 = vadd.f32 %v554_v6, %v2525_v27  ;;  %v556_v13 = vpop.f32.mrb[21].mxu0  ;;  %v2661_v35 = vpack.c.bf16 %v714_v29, %v712_v14  ;;  %v634_v36 = vpop.f32.mrb[20].mxu1  ;;  %1481 = vmatpush1.bf16.msra.mxu0 %v2153_v62 }
 0x11c   : > { %v557_v17 = vadd.f32 %v556_v13, %v2528_v28  ;;  %v558_v19 = vpop.f32.mrb[22].mxu0  ;;  %1035 = vmatprep.mubr.bf16.mxu1 %v736_v5  ;;  %v635_v39 = vadd.f32 %v634_v36, %v2525_v27  ;;  %v636_v40 = vpop.f32.mrb[21].mxu1  ;;  %1482 = vmatprep.subr.bf16.mxu0 %v2158_v2 }
 0x11d   : > { %v559_v21 = vadd.f32 %v558_v19, %v2525_v27  ;;  %v560_v25 = vpop.f32.mrb[23].mxu0  ;;  %1036 = vmatmul.mubr.bf16.gmra.mrb[48].mxu1 %v735_v0  ;;  %v683_v33 = vmax.f32 %v555_v12, 0.0  ;;  %v637_v43 = vadd.f32 %v636_v40, %v2528_v28  ;;  %v638_v45 = vpop.f32.mrb[22].mxu1 }
 0x11e   : > { %v561_v31 = vadd.f32 %v560_v25, %v2528_v28  ;;  %v684_v37 = vmax.f32 %v557_v17, 0.0  ;;  %v715_v50 = vmax.f32 %v635_v39, 0.0  ;;  %v639_v51 = vadd.f32 %v638_v45, %v2525_v27  ;;  %v640_v52 = vpop.f32.mrb[23].mxu1  ;;  %v2156_v17 = vld [vmem:[%s2941_s5 + $0xd0] ss:$8 sps:$4 sm:$0xff]  }
 0x11f   : > { %v685_v34 = vmax.f32 %v559_v21, 0.0  ;;  %v716_v56 = vmax.f32 %v637_v43, 0.0  ;;  %v641_v58 = vadd.f32 %v640_v52, %v2528_v28  ;;  %1483 = vmatpush1.bf16.msra.mxu0 %v2156_v17 }
 0x120   : > { %v686_v38 = vmax.f32 %v561_v31, 0.0  ;;  %v717_v61 = vmax.f32 %v639_v51, 0.0 }
 0x121   : > { %v737_v42 = vpack.c.bf16 %v685_v34, %v683_v33  ;;  %v718_v1 = vmax.f32 %v641_v58, 0.0 }
 0x122   : > { %v738_v48 = vpack.c.bf16 %v686_v38, %v684_v37  ;;  %v564_v49 = vpop.f32.mrb[24].mxu0  ;;  %v2683_v5 = vpack.c.bf16 %v717_v61, %v715_v50 }
 0x123   : > { %v565_v53 = vadd.f32 %v564_v49, %v2525_v27  ;;  %v566_v55 = vpop.f32.mrb[25].mxu0  ;;  %v2685_v9 = vpack.c.bf16 %v718_v1, %v716_v56  ;;  %v644_v11 = vpop.f32.mrb[24].mxu1 }
 0x124   : > { %v567_v59 = vadd.f32 %v566_v55, %v2528_v28  ;;  %v568_v60 = vpop.f32.mrb[26].mxu0  ;;  %1045 = vmatprep.mubr.bf16.mxu1 %v738_v48  ;;  %v645_v14 = vadd.f32 %v644_v11, %v2525_v27  ;;  %v646_v16 = vpop.f32.mrb[25].mxu1 }
 0x125   : > { %v569_v63 = vadd.f32 %v568_v60, %v2525_v27  ;;  %v570_v0 = vpop.f32.mrb[27].mxu0  ;;  %1046 = vmatmul.mubr.bf16.gmra.mrb[52].mxu1 %v737_v42  ;;  %v687_v6 = vmax.f32 %v565_v53, 0.0  ;;  %v647_v3 = vadd.f32 %v646_v16, %v2528_v28  ;;  %v648_v20 = vpop.f32.mrb[26].mxu1 }
 0x126   : > { %v571_v4 = vadd.f32 %v570_v0, %v2528_v28  ;;  %v688_v12 = vmax.f32 %v567_v59, 0.0  ;;  %v719_v29 = vmax.f32 %v645_v14, 0.0  ;;  %v649_v30 = vadd.f32 %v648_v20, %v2525_v27  ;;  %v650_v31 = vpop.f32.mrb[27].mxu1 }
 0x127   : > { %v689_v8 = vmax.f32 %v569_v63, 0.0  ;;  %v720_v36 = vmax.f32 %v647_v3, 0.0  ;;  %v651_v37 = vadd.f32 %v650_v31, %v2528_v28 }
 0x128   : > { %v690_v13 = vmax.f32 %v571_v4, 0.0  ;;  %v721_v40 = vmax.f32 %v649_v30, 0.0 }
 0x129   : > { %v739_v19 = vpack.c.bf16 %v689_v8, %v687_v6  ;;  %v722_v43 = vmax.f32 %v651_v37, 0.0 }
 0x12a   : > { %v740_v21 = vpack.c.bf16 %v690_v13, %v688_v12  ;;  %v574_v25 = vpop.f32.mrb[28].mxu0  ;;  %v755_v46 = vpack.c.bf16 %v721_v40, %v719_v29 }
 0x12b   : > { %v575_v33 = vadd.f32 %v574_v25, %v2525_v27  ;;  %v576_v34 = vpop.f32.mrb[29].mxu0  ;;  %v756_v50 = vpack.c.bf16 %v722_v43, %v720_v36  ;;  %v654_v51 = vpop.f32.mrb[28].mxu1 }
 0x12c   : > { %v577_v38 = vadd.f32 %v576_v34, %v2528_v28  ;;  %v578_v39 = vpop.f32.mrb[30].mxu0  ;;  %1055 = vmatprep.mubr.bf16.mxu1 %v740_v21  ;;  %v655_v55 = vadd.f32 %v654_v51, %v2525_v27  ;;  %v656_v56 = vpop.f32.mrb[29].mxu1 }
 0x12d   : > { %v579_v41 = vadd.f32 %v578_v39, %v2525_v27  ;;  %v580_v42 = vpop.f32.mrb[31].mxu0  ;;  %1056 = vmatmul.mubr.bf16.gmra.mrb[56].mxu1 %v739_v19  ;;  %v691_v48 = vmax.f32 %v575_v33, 0.0  ;;  %v657_v59 = vadd.f32 %v656_v56, %v2528_v28  ;;  %v658_v60 = vpop.f32.mrb[30].mxu1 }
 0x12e   : > { %v581_v45 = vadd.f32 %v580_v42, %v2528_v28  ;;  %v692_v52 = vmax.f32 %v577_v38, 0.0  ;;  %v723_v62 = vmax.f32 %v655_v55, 0.0  ;;  %v659_v63 = vadd.f32 %v658_v60, %v2525_v27  ;;  %v660_v0 = vpop.f32.mrb[31].mxu1  ;;  %v2161_v27 = vld [vmem:[%s2941_s5 + $0xe4] ss:$8 sps:$4 sm:$0xff]  }
 0x12f   : > { %v693_v49 = vmax.f32 %v579_v41, 0.0  ;;  %v724_v1 = vmax.f32 %v657_v59, 0.0  ;;  %v661_v2 = vadd.f32 %v660_v0, %v2528_v28  ;;  %v2159_v28 = vld [vmem:[%s2941_s5 + $0xe0] ss:$8 sps:$4 sm:$0xff]   ;;  %1484 = vmatprep.subr.bf16.mxu0 %v2161_v27 }
 0x130   : > { %v694_v53 = vmax.f32 %v581_v45, 0.0  ;;  %v725_v4 = vmax.f32 %v659_v63, 0.0  ;;  %1485 = vmatpush1.bf16.msra.mxu0 %v2159_v28 }
 0x131   : > { %v741_v58 = vpack.c.bf16 %v693_v49, %v691_v48  ;;  %v726_v6 = vmax.f32 %v661_v2, 0.0 }
 0x132   : > { %v742_v61 = vpack.c.bf16 %v694_v53, %v692_v52  ;;  %v757_v8 = vpack.c.bf16 %v725_v4, %v723_v62 }
 0x133   : > { %v758_v11 = vpack.c.bf16 %v726_v6, %v724_v1 }
 0x134   : > { %1065 = vmatprep.mubr.bf16.mxu1 %v742_v61 }
 0x135   : > { %1066 = vmatmul.mubr.bf16.gmra.mrb[60].mxu1 %v741_v58 }
 0x136   : > { %1075 = vmatprep.mubr.bf16.mxu1 %v2565_v10  ;;  %v2162_v10 = vld [vmem:[%s2941_s5 + $0xf0] ss:$8 sps:$4 sm:$0xff]  }
 0x13d   : > { %1076 = vmatmul.mubr.bf16.gmra.mrb[64].mxu1 %v2563_v7  ;;  %v2164_v7 = vld [vmem:[%s2941_s5 + $0xf4] ss:$8 sps:$4 sm:$0xff]  }
 0x13e   : > { %1085 = vmatprep.mubr.bf16.mxu1 %v2589_v47  ;;  %1486 = vmatprep.subr.bf16.mxu0 %v2164_v7 }
 0x13f   : > { %1487 = vmatpush1.bf16.msra.mxu0 %v2162_v10 }
 0x145   : > { %1086 = vmatmul.mubr.bf16.gmra.mrb[68].mxu1 %v2587_v44  ;;  %v791_v44 = vld [vmem:[%s2940_s4] sm:$0x3] }
 0x146   : > { %1095 = vmatprep.mubr.bf16.mxu1 %v2613_v18  ;;  %v2730_v47 = vrot.slane %v791_v44, %v2516_v24 }
 0x14d   : > { %1096 = vmatmul.mubr.bf16.gmra.mrb[72].mxu1 %v2611_v15  ;;  %v2733_v15 = vrot.slane %v791_v44, %v2522_v26 }
 0x14e   : > { %1105 = vmatprep.mubr.bf16.mxu1 %v2637_v57 }
 0x155   : > { %1106 = vmatmul.mubr.bf16.gmra.mrb[76].mxu1 %v2635_v54 }
 0x156   : > { %1115 = vmatprep.mubr.bf16.mxu1 %v2661_v35 }
 0x15d   : > { %1116 = vmatmul.mubr.bf16.gmra.mrb[80].mxu1 %v2659_v32 }
 0x15e   : > { %1125 = vmatprep.mubr.bf16.mxu1 %v2685_v9 }
 0x165   : > { %1126 = vmatmul.mubr.bf16.gmra.mrb[84].mxu1 %v2683_v5 }
 0x166   : > { %1135 = vmatprep.mubr.bf16.mxu1 %v756_v50 }
 0x16d   : > { %1136 = vmatmul.mubr.bf16.gmra.mrb[88].mxu1 %v755_v46 }
 0x16e   : > { %1145 = vmatprep.mubr.bf16.mxu1 %v758_v11 }
 0x175   : > { %1146 = vmatmul.mubr.bf16.gmra.mrb[92].mxu1 %v757_v8 }
 0x1d0   : > { %v997_v18 = vpop.f32.mrb[32].mxu1 }
 0x1d1   : > { %v998_v54 = vadd.f32 %v997_v18, %v2730_v47  ;;  %v999_v57 = vpop.f32.mrb[33].mxu1 }
 0x1d2   : > { %v1000_v32 = vadd.f32 %v999_v57, %v2733_v15  ;;  %v1001_v35 = vpop.f32.mrb[34].mxu1 }
 0x1d3   : > { %v1002_v5 = vadd.f32 %v1001_v35, %v2730_v47  ;;  %v1003_v9 = vpop.f32.mrb[35].mxu1  ;;  %v1156_v13 = vmax.f32 %v998_v54, 0.0 }
 0x1d4   : > { %v1004_v12 = vadd.f32 %v1003_v9, %v2733_v15  ;;  %v1157_v16 = vmax.f32 %v1000_v32, 0.0 }
 0x1d5   : > { %v1158_v14 = vmax.f32 %v1002_v5, 0.0 }
 0x1d6   : > { %v1159_v17 = vmax.f32 %v1004_v12, 0.0 }
 0x1d7   : > { %v1220_v19 = vpack.c.bf16 %v1158_v14, %v1156_v13 }
 0x1d8   : > { %v1221_v3 = vpack.c.bf16 %v1159_v17, %v1157_v16  ;;  %v1007_v20 = vpop.f32.mrb[36].mxu1 }
 0x1d9   : > { %v1008_v21 = vadd.f32 %v1007_v20, %v2730_v47  ;;  %v1009_v25 = vpop.f32.mrb[37].mxu1 }
 0x1da   : > { %v1010_v29 = vadd.f32 %v1009_v25, %v2733_v15  ;;  %v1011_v30 = vpop.f32.mrb[38].mxu1  ;;  %1488 = vmatprep.mubr.bf16.mxu0 %v1221_v3 }
 0x1db   : > { %v1012_v31 = vadd.f32 %v1011_v30, %v2730_v47  ;;  %v1013_v33 = vpop.f32.mrb[39].mxu1  ;;  %1489 = vmatmul.mubr.bf16.vlgmr.msra.gmra.mrb[32].mxu0 %v1220_v19  ;;  %v1160_v36 = vmax.f32 %v1008_v21, 0.0 }
 0x1dc   : > { %v1014_v34 = vadd.f32 %v1013_v33, %v2733_v15  ;;  %v1161_v38 = vmax.f32 %v1010_v29, 0.0 }
 0x1dd   : > { %v1162_v37 = vmax.f32 %v1012_v31, 0.0 }
 0x1de   : > { %v1163_v39 = vmax.f32 %v1014_v34, 0.0 }
 0x1df   : > { %v1222_v40 = vpack.c.bf16 %v1162_v37, %v1160_v36 }
 0x1e0   : > { %v1223_v41 = vpack.c.bf16 %v1163_v39, %v1161_v38  ;;  %v1017_v42 = vpop.f32.mrb[40].mxu1 }
 0x1e1   : > { %v1018_v43 = vadd.f32 %v1017_v42, %v2730_v47  ;;  %v1019_v45 = vpop.f32.mrb[41].mxu1 }
 0x1e2   : > { %v1020_v46 = vadd.f32 %v1019_v45, %v2733_v15  ;;  %v1021_v48 = vpop.f32.mrb[42].mxu1  ;;  %1498 = vmatprep.mubr.bf16.mxu0 %v1223_v41 }
 0x1e3   : > { %v1022_v49 = vadd.f32 %v1021_v48, %v2730_v47  ;;  %v1023_v50 = vpop.f32.mrb[43].mxu1  ;;  %1499 = vmatmul.mubr.bf16.gmra.mrb[36].mxu0 %v1222_v40  ;;  %v1164_v52 = vmax.f32 %v1018_v43, 0.0 }
 0x1e4   : > { %v1024_v51 = vadd.f32 %v1023_v50, %v2733_v15  ;;  %v1165_v55 = vmax.f32 %v1020_v46, 0.0 }
 0x1e5   : > { %v1166_v53 = vmax.f32 %v1022_v49, 0.0 }
 0x1e6   : > { %v1167_v56 = vmax.f32 %v1024_v51, 0.0 }
 0x1e7   : > { %v1224_v58 = vpack.c.bf16 %v1166_v53, %v1164_v52 }
 0x1e8   : > { %v1225_v59 = vpack.c.bf16 %v1167_v56, %v1165_v55  ;;  %v1027_v60 = vpop.f32.mrb[44].mxu1 }
 0x1e9   : > { %v1028_v61 = vadd.f32 %v1027_v60, %v2730_v47  ;;  %v1029_v62 = vpop.f32.mrb[45].mxu1 }
 0x1ea   : > { %v1030_v63 = vadd.f32 %v1029_v62, %v2733_v15  ;;  %v1031_v0 = vpop.f32.mrb[46].mxu1  ;;  %1508 = vmatprep.mubr.bf16.mxu0 %v1225_v59 }
 0x1eb   : > { %v1032_v1 = vadd.f32 %v1031_v0, %v2730_v47  ;;  %v1033_v2 = vpop.f32.mrb[47].mxu1  ;;  %1509 = vmatmul.mubr.bf16.gmra.mrb[40].mxu0 %v1224_v58  ;;  %v1168_v6 = vmax.f32 %v1028_v61, 0.0 }
 0x1ec   : > { %v1034_v4 = vadd.f32 %v1033_v2, %v2733_v15  ;;  %v1169_v11 = vmax.f32 %v1030_v63, 0.0 }
 0x1ed   : > { %v1170_v8 = vmax.f32 %v1032_v1, 0.0 }
 0x1ee   : > { %v1171_v27 = vmax.f32 %v1034_v4, 0.0 }
 0x1ef   : > { %v1226_v28 = vpack.c.bf16 %v1170_v8, %v1168_v6 }
 0x1f0   : > { %v1227_v7 = vpack.c.bf16 %v1171_v27, %v1169_v11  ;;  %v1037_v10 = vpop.f32.mrb[48].mxu1 }
 0x1f1   : > { %v1038_v44 = vadd.f32 %v1037_v10, %v2730_v47  ;;  %v1039_v18 = vpop.f32.mrb[49].mxu1 }
 0x1f2   : > { %v1040_v54 = vadd.f32 %v1039_v18, %v2733_v15  ;;  %v1041_v57 = vpop.f32.mrb[50].mxu1  ;;  %1518 = vmatprep.mubr.bf16.mxu0 %v1227_v7 }
 0x1f3   : > { %v1042_v32 = vadd.f32 %v1041_v57, %v2730_v47  ;;  %v1043_v35 = vpop.f32.mrb[51].mxu1  ;;  %1519 = vmatmul.mubr.bf16.gmra.mrb[44].mxu0 %v1226_v28  ;;  %v1172_v9 = vmax.f32 %v1038_v44, 0.0 }
 0x1f4   : > { %v1044_v5 = vadd.f32 %v1043_v35, %v2733_v15  ;;  %v1173_v13 = vmax.f32 %v1040_v54, 0.0 }
 0x1f5   : > { %v1174_v12 = vmax.f32 %v1042_v32, 0.0 }
 0x1f6   : > { %v1175_v14 = vmax.f32 %v1044_v5, 0.0 }
 0x1f7   : > { %v1228_v16 = vpack.c.bf16 %v1174_v12, %v1172_v9 }
 0x1f8   : > { %v1229_v17 = vpack.c.bf16 %v1175_v14, %v1173_v13  ;;  %v1047_v19 = vpop.f32.mrb[52].mxu1 }
 0x1f9   : > { %v1048_v3 = vadd.f32 %v1047_v19, %v2730_v47  ;;  %v1049_v20 = vpop.f32.mrb[53].mxu1 }
 0x1fa   : > { %v1050_v21 = vadd.f32 %v1049_v20, %v2733_v15  ;;  %v1051_v25 = vpop.f32.mrb[54].mxu1  ;;  %1528 = vmatprep.mubr.bf16.mxu0 %v1229_v17 }
 0x1fb   : > { %v1052_v29 = vadd.f32 %v1051_v25, %v2730_v47  ;;  %v1053_v30 = vpop.f32.mrb[55].mxu1  ;;  %1529 = vmatmul.mubr.bf16.gmra.mrb[48].mxu0 %v1228_v16  ;;  %v1176_v33 = vmax.f32 %v1048_v3, 0.0 }
 0x1fc   : > { %v1054_v31 = vadd.f32 %v1053_v30, %v2733_v15  ;;  %v1177_v36 = vmax.f32 %v1050_v21, 0.0 }
 0x1fd   : > { %v1178_v34 = vmax.f32 %v1052_v29, 0.0 }
 0x1fe   : > { %v1179_v37 = vmax.f32 %v1054_v31, 0.0 }
 0x1ff   : > { %v1230_v38 = vpack.c.bf16 %v1178_v34, %v1176_v33 }
 0x200   : > { %v1231_v39 = vpack.c.bf16 %v1179_v37, %v1177_v36  ;;  %v1057_v40 = vpop.f32.mrb[56].mxu1 }
 0x201   : > { %v1058_v41 = vadd.f32 %v1057_v40, %v2730_v47  ;;  %v1059_v42 = vpop.f32.mrb[57].mxu1 }
 0x202   : > { %v1060_v43 = vadd.f32 %v1059_v42, %v2733_v15  ;;  %v1061_v45 = vpop.f32.mrb[58].mxu1  ;;  %1538 = vmatprep.mubr.bf16.mxu0 %v1231_v39 }
 0x203   : > { %v1062_v46 = vadd.f32 %v1061_v45, %v2730_v47  ;;  %v1063_v48 = vpop.f32.mrb[59].mxu1  ;;  %1539 = vmatmul.mubr.bf16.gmra.mrb[52].mxu0 %v1230_v38  ;;  %v1180_v50 = vmax.f32 %v1058_v41, 0.0 }
 0x204   : > { %v1064_v49 = vadd.f32 %v1063_v48, %v2733_v15  ;;  %v1181_v52 = vmax.f32 %v1060_v43, 0.0 }
 0x205   : > { %v1182_v51 = vmax.f32 %v1062_v46, 0.0 }
 0x206   : > { %v1183_v53 = vmax.f32 %v1064_v49, 0.0 }
 0x207   : > { %v1232_v55 = vpack.c.bf16 %v1182_v51, %v1180_v50 }
 0x208   : > { %v1233_v56 = vpack.c.bf16 %v1183_v53, %v1181_v52  ;;  %v1067_v58 = vpop.f32.mrb[60].mxu1 }
 0x209   : > { %v1068_v59 = vadd.f32 %v1067_v58, %v2730_v47  ;;  %v1069_v60 = vpop.f32.mrb[61].mxu1 }
 0x20a   : > { %v1070_v61 = vadd.f32 %v1069_v60, %v2733_v15  ;;  %v1071_v62 = vpop.f32.mrb[62].mxu1  ;;  %1548 = vmatprep.mubr.bf16.mxu0 %v1233_v56 }
 0x20b   : > { %v1072_v63 = vadd.f32 %v1071_v62, %v2730_v47  ;;  %v1073_v0 = vpop.f32.mrb[63].mxu1  ;;  %1549 = vmatmul.mubr.bf16.gmra.mrb[56].mxu0 %v1232_v55  ;;  %v1184_v2 = vmax.f32 %v1068_v59, 0.0 }
 0x20c   : > { %v1074_v1 = vadd.f32 %v1073_v0, %v2733_v15  ;;  %v1185_v6 = vmax.f32 %v1070_v61, 0.0 }
 0x20d   : > { %v1186_v4 = vmax.f32 %v1072_v63, 0.0 }
 0x20e   : > { %v1187_v8 = vmax.f32 %v1074_v1, 0.0 }
 0x20f   : > { %v1234_v11 = vpack.c.bf16 %v1186_v4, %v1184_v2 }
 0x210   : > { %v1235_v27 = vpack.c.bf16 %v1187_v8, %v1185_v6  ;;  %v1077_v28 = vpop.f32.mrb[64].mxu1 }
 0x211   : > { %v1078_v7 = vadd.f32 %v1077_v28, %v2730_v47  ;;  %v1079_v10 = vpop.f32.mrb[65].mxu1 }
 0x212   : > { %v1080_v44 = vadd.f32 %v1079_v10, %v2733_v15  ;;  %v1081_v18 = vpop.f32.mrb[66].mxu1  ;;  %1558 = vmatprep.mubr.bf16.mxu0 %v1235_v27 }
 0x213   : > { %v1082_v54 = vadd.f32 %v1081_v18, %v2730_v47  ;;  %v1083_v57 = vpop.f32.mrb[67].mxu1  ;;  %1559 = vmatmul.mubr.bf16.gmra.mrb[60].mxu0 %v1234_v11  ;;  %v1188_v35 = vmax.f32 %v1078_v7, 0.0 }
 0x214   : > { %v1084_v32 = vadd.f32 %v1083_v57, %v2733_v15  ;;  %v1189_v9 = vmax.f32 %v1080_v44, 0.0 }
 0x215   : > { %v1190_v5 = vmax.f32 %v1082_v54, 0.0 }
 0x216   : > { %v1191_v12 = vmax.f32 %v1084_v32, 0.0 }
 0x217   : > { %v1236_v13 = vpack.c.bf16 %v1190_v5, %v1188_v35 }
 0x218   : > { %v1237_v14 = vpack.c.bf16 %v1191_v12, %v1189_v9  ;;  %v1087_v16 = vpop.f32.mrb[68].mxu1 }
 0x219   : > { %v1088_v17 = vadd.f32 %v1087_v16, %v2730_v47  ;;  %v1089_v19 = vpop.f32.mrb[69].mxu1 }
 0x21a   : > { %v1090_v3 = vadd.f32 %v1089_v19, %v2733_v15  ;;  %v1091_v20 = vpop.f32.mrb[70].mxu1  ;;  %1568 = vmatprep.mubr.bf16.mxu0 %v1237_v14 }
 0x21b   : > { %v1092_v21 = vadd.f32 %v1091_v20, %v2730_v47  ;;  %v1093_v25 = vpop.f32.mrb[71].mxu1  ;;  %1569 = vmatmul.mubr.bf16.gmra.mrb[64].mxu0 %v1236_v13  ;;  %v1192_v30 = vmax.f32 %v1088_v17, 0.0 }
 0x21c   : > { %v1094_v29 = vadd.f32 %v1093_v25, %v2733_v15  ;;  %v1193_v33 = vmax.f32 %v1090_v3, 0.0 }
 0x21d   : > { %v1194_v31 = vmax.f32 %v1092_v21, 0.0 }
 0x21e   : > { %v1195_v34 = vmax.f32 %v1094_v29, 0.0 }
 0x21f   : > { %v1238_v36 = vpack.c.bf16 %v1194_v31, %v1192_v30 }
 0x220   : > { %v1239_v37 = vpack.c.bf16 %v1195_v34, %v1193_v33  ;;  %v1097_v38 = vpop.f32.mrb[72].mxu1 }
 0x221   : > { %v1098_v39 = vadd.f32 %v1097_v38, %v2730_v47  ;;  %v1099_v40 = vpop.f32.mrb[73].mxu1 }
 0x222   : > { %v1100_v41 = vadd.f32 %v1099_v40, %v2733_v15  ;;  %v1101_v42 = vpop.f32.mrb[74].mxu1  ;;  %1578 = vmatprep.mubr.bf16.mxu0 %v1239_v37 }
 0x223   : > { %v1102_v43 = vadd.f32 %v1101_v42, %v2730_v47  ;;  %v1103_v45 = vpop.f32.mrb[75].mxu1  ;;  %1579 = vmatmul.mubr.bf16.gmra.mrb[68].mxu0 %v1238_v36  ;;  %v1196_v48 = vmax.f32 %v1098_v39, 0.0 }
 0x224   : > { %v1104_v46 = vadd.f32 %v1103_v45, %v2733_v15  ;;  %v1197_v50 = vmax.f32 %v1100_v41, 0.0 }
 0x225   : > { %v1198_v49 = vmax.f32 %v1102_v43, 0.0 }
 0x226   : > { %v1199_v51 = vmax.f32 %v1104_v46, 0.0 }
 0x227   : > { %v1240_v52 = vpack.c.bf16 %v1198_v49, %v1196_v48 }
 0x228   : > { %v1241_v53 = vpack.c.bf16 %v1199_v51, %v1197_v50  ;;  %v1107_v55 = vpop.f32.mrb[76].mxu1 }
 0x229   : > { %v1108_v56 = vadd.f32 %v1107_v55, %v2730_v47  ;;  %v1109_v58 = vpop.f32.mrb[77].mxu1 }
 0x22a   : > { %v1110_v59 = vadd.f32 %v1109_v58, %v2733_v15  ;;  %v1111_v60 = vpop.f32.mrb[78].mxu1  ;;  %1588 = vmatprep.mubr.bf16.mxu0 %v1241_v53 }
 0x22b   : > { %v1112_v61 = vadd.f32 %v1111_v60, %v2730_v47  ;;  %v1113_v62 = vpop.f32.mrb[79].mxu1  ;;  %1589 = vmatmul.mubr.bf16.gmra.mrb[72].mxu0 %v1240_v52  ;;  %v1200_v0 = vmax.f32 %v1108_v56, 0.0 }
 0x22c   : > { %v1114_v63 = vadd.f32 %v1113_v62, %v2733_v15  ;;  %v1201_v2 = vmax.f32 %v1110_v59, 0.0 }
 0x22d   : > { %v1202_v1 = vmax.f32 %v1112_v61, 0.0 }
 0x22e   : > { %v1203_v4 = vmax.f32 %v1114_v63, 0.0 }
 0x22f   : > { %v1242_v6 = vpack.c.bf16 %v1202_v1, %v1200_v0 }
 0x230   : > { %v1243_v8 = vpack.c.bf16 %v1203_v4, %v1201_v2  ;;  %v1117_v11 = vpop.f32.mrb[80].mxu1 }
 0x231   : > { %v1118_v27 = vadd.f32 %v1117_v11, %v2730_v47  ;;  %v1119_v28 = vpop.f32.mrb[81].mxu1 }
 0x232   : > { %v1120_v7 = vadd.f32 %v1119_v28, %v2733_v15  ;;  %v1121_v10 = vpop.f32.mrb[82].mxu1  ;;  %1598 = vmatprep.mubr.bf16.mxu0 %v1243_v8  ;;  %v2230_v28 = vmov 1966171168  }
 0x233   : > { %v1122_v44 = vadd.f32 %v1121_v10, %v2730_v47  ;;  %v1123_v18 = vpop.f32.mrb[83].mxu1  ;;  %1599 = vmatmul.mubr.bf16.gmra.mrb[76].mxu0 %v1242_v6  ;;  %v1204_v57 = vmax.f32 %v1118_v27, 0.0  ;;  %v1284_v6 = vld [vmem:[%s2942_s6] sm:$0x3] }
 0x234   : > { %v1124_v54 = vadd.f32 %v1123_v18, %v2733_v15  ;;  %v1205_v35 = vmax.f32 %v1120_v7, 0.0  ;;  %v2803_v8 = vrot.slane %v1284_v6, %v2516_v24  ;;  %v1766_v7 = vunpack.c.l.s4 %v2230_v28 }
 0x235   : > { %v1206_v32 = vmax.f32 %v1122_v44, 0.0 }
 0x236   : > { %v1207_v5 = vmax.f32 %v1124_v54, 0.0 }
 0x237   : > { %v1244_v9 = vpack.c.bf16 %v1206_v32, %v1204_v57  ;;  %v2814_v57 = vld.sshfl [vmem:[%s2943_s7] sm:$0x11 pattern:$0x75316420]  ;;  %v1767_v32 = vunpack.c.0.s8 %v1766_v7 }
 0x238   : > { %v1245_v12 = vpack.c.bf16 %v1207_v5, %v1205_v35  ;;  %v1127_v13 = vpop.f32.mrb[84].mxu1  ;;  %v1764_v35 = vcombine.high %v2814_v57, %v2814_v57 }
 0x239   : > { %v1128_v14 = vadd.f32 %v1127_v13, %v2730_v47  ;;  %v1129_v16 = vpop.f32.mrb[85].mxu1 }
 0x23a   : > { %v1130_v17 = vadd.f32 %v1129_v16, %v2733_v15  ;;  %v1131_v19 = vpop.f32.mrb[86].mxu1  ;;  %1608 = vmatprep.mubr.bf16.mxu0 %v1245_v12  ;;  %v2820_v12 = vsub.s32 %v1767_v32, %v2513_v23 }
 0x23b   : > { %v1132_v3 = vadd.f32 %v1131_v19, %v2730_v47  ;;  %v1133_v20 = vpop.f32.mrb[87].mxu1  ;;  %1609 = vmatmul.mubr.bf16.gmra.mrb[80].mxu0 %v1244_v9  ;;  %v1208_v25 = vmax.f32 %v1128_v14, 0.0 }
 0x23c   : > { %v1134_v21 = vadd.f32 %v1133_v20, %v2733_v15  ;;  %v1209_v30 = vmax.f32 %v1130_v17, 0.0  ;;  %v1778_v17 = vrot.slane %v1764_v35, %v2820_v12 }
 0x23d   : > { %v1210_v29 = vmax.f32 %v1132_v3, 0.0 }
 0x23e   : > { %v1211_v31 = vmax.f32 %v1134_v21, 0.0  ;;  %1813 = vmatprep.mubr.bf16.mxu1 %v1778_v17 }
 0x23f   : > { %v1246_v33 = vpack.c.bf16 %v1210_v29, %v1208_v25 }
 0x240   : > { %v1247_v34 = vpack.c.bf16 %v1211_v31, %v1209_v30  ;;  %v1137_v36 = vpop.f32.mrb[88].mxu1  ;;  %v1746_v30 = vld [vmem:[#allocation2] sm:$0x1] }
 0x241   : > { %v1138_v37 = vadd.f32 %v1137_v36, %v2730_v47  ;;  %v1139_v38 = vpop.f32.mrb[89].mxu1  ;;  %1749 = vperm.xlu0 %2062, %v1746_v30  }
 0x242   : > { %v1140_v39 = vadd.f32 %v1139_v38, %v2733_v15  ;;  %v1141_v40 = vpop.f32.mrb[90].mxu1  ;;  %1618 = vmatprep.mubr.bf16.mxu0 %v1247_v34 }
 0x243   : > { %v1142_v41 = vadd.f32 %v1141_v40, %v2730_v47  ;;  %v1143_v42 = vpop.f32.mrb[91].mxu1  ;;  %1619 = vmatmul.mubr.bf16.gmra.mrb[84].mxu0 %v1246_v33  ;;  %v1212_v45 = vmax.f32 %v1138_v37, 0.0 }
 0x244   : > { %v1144_v43 = vadd.f32 %v1143_v42, %v2733_v15  ;;  %v1213_v48 = vmax.f32 %v1140_v39, 0.0 }
 0x245   : > { %v1214_v46 = vmax.f32 %v1142_v41, 0.0 }
 0x246   : > { %v1215_v49 = vmax.f32 %v1144_v43, 0.0 }
 0x247   : > { %v1248_v50 = vpack.c.bf16 %v1214_v46, %v1212_v45 }
 0x248   : > { %v1249_v51 = vpack.c.bf16 %v1215_v49, %v1213_v48  ;;  %v1147_v52 = vpop.f32.mrb[92].mxu1 }
 0x249   : > { %v1148_v53 = vadd.f32 %v1147_v52, %v2730_v47  ;;  %v1149_v55 = vpop.f32.mrb[93].mxu1 }
 0x24a   : > { %v1150_v56 = vadd.f32 %v1149_v55, %v2733_v15  ;;  %v1151_v58 = vpop.f32.mrb[94].mxu1  ;;  %1628 = vmatprep.mubr.bf16.mxu0 %v1249_v51 }
 0x24b   : > { %v1152_v59 = vadd.f32 %v1151_v58, %v2730_v47  ;;  %v1153_v60 = vpop.f32.mrb[95].mxu1  ;;  %1629 = vmatmul.mubr.bf16.gmra.mrb[88].mxu0 %v1248_v50  ;;  %v1216_v62 = vmax.f32 %v1148_v53, 0.0  ;;  %v2806_v47 = vrot.slane %v1284_v6, %v2522_v26 }
 0x24c   : > { %v1154_v61 = vadd.f32 %v1153_v60, %v2733_v15  ;;  %v1217_v0 = vmax.f32 %v1150_v56, 0.0 }
 0x24d   : > { %v1218_v63 = vmax.f32 %v1152_v59, 0.0 }
 0x24e   : > { %v1219_v1 = vmax.f32 %v1154_v61, 0.0 }
 0x24f   : > { %v1250_v2 = vpack.c.bf16 %v1218_v63, %v1216_v62 }
 0x250   : > { %v1251_v4 = vpack.c.bf16 %v1219_v1, %v1217_v0 }
 0x252   : > { %1638 = vmatprep.mubr.bf16.mxu0 %v1251_v4 }
 0x253   : > { %1639 = vmatmul.mubr.bf16.gmra.mrb[92].mxu0 %v1250_v2 }
 0x2ae   : > { %v1490_v11 = vpop.f32.mrb[32].mxu0 }
 0x2af   : > { %v1491_v15 = vadd.f32 %v1490_v11, %v2803_v8  ;;  %v1492_v27 = vpop.f32.mrb[33].mxu0 }
 0x2b0   : > { %v1493_v10 = vadd.f32 %v1492_v27, %v2806_v47  ;;  %v1494_v44 = vpop.f32.mrb[34].mxu0 }
 0x2b1   : > { %v1495_v18 = vadd.f32 %v1494_v44, %v2803_v8  ;;  %v1496_v54 = vpop.f32.mrb[35].mxu0  ;;  %v1649_v5 = vmax.f32 %v1491_v15, 0.0 }
 0x2b2   : > { %v1497_v26 = vadd.f32 %v1496_v54, %v2806_v47  ;;  %v1650_v13 = vmax.f32 %v1493_v10, 0.0 }
 0x2b3   : > { %v1651_v9 = vmax.f32 %v1495_v18, 0.0 }
 0x2b4   : > { %v1652_v14 = vmax.f32 %v1497_v26, 0.0 }
 0x2b5   : > { %v1713_v16 = vpack.c.bf16 %v1651_v9, %v1649_v5 }
 0x2b6   : > { %v1714_v19 = vpack.c.bf16 %v1652_v14, %v1650_v13  ;;  %v1500_v3 = vpop.f32.mrb[36].mxu0 }
 0x2b7   : > { %v1501_v20 = vadd.f32 %v1500_v3, %v2803_v8  ;;  %v1502_v21 = vpop.f32.mrb[37].mxu0 }
 0x2b8   : > { %v1503_v25 = vadd.f32 %v1502_v21, %v2806_v47  ;;  %v1504_v29 = vpop.f32.mrb[38].mxu0  ;;  %1781 = vmatprep.subr.bf16.mxu1 %v1714_v19 }
 0x2b9   : > { %v1505_v31 = vadd.f32 %v1504_v29, %v2803_v8  ;;  %v1506_v23 = vpop.f32.mrb[39].mxu0  ;;  %1782 = vmatpush1.bf16.xpose.msra.mxu1 %v1713_v16  ;;  %v1653_v34 = vmax.f32 %v1501_v20, 0.0 }
 0x2ba   : > { %v1507_v33 = vadd.f32 %v1506_v23, %v2806_v47  ;;  %v1654_v37 = vmax.f32 %v1503_v25, 0.0 }
 0x2bb   : > { %v1655_v36 = vmax.f32 %v1505_v31, 0.0 }
 0x2bc   : > { %v1656_v38 = vmax.f32 %v1507_v33, 0.0 }
 0x2bd   : > { %v1715_v39 = vpack.c.bf16 %v1655_v36, %v1653_v34 }
 0x2be   : > { %v1716_v40 = vpack.c.bf16 %v1656_v38, %v1654_v37  ;;  %v1510_v41 = vpop.f32.mrb[40].mxu0 }
 0x2bf   : > { %v1511_v42 = vadd.f32 %v1510_v41, %v2803_v8  ;;  %v1512_v43 = vpop.f32.mrb[41].mxu0 }
 0x2c0   : > { %v1513_v45 = vadd.f32 %v1512_v43, %v2806_v47  ;;  %v1514_v46 = vpop.f32.mrb[42].mxu0  ;;  %1783 = vmatprep.subr.bf16.mxu1 %v1716_v40 }
 0x2c1   : > { %v1515_v48 = vadd.f32 %v1514_v46, %v2803_v8  ;;  %v1516_v49 = vpop.f32.mrb[43].mxu0  ;;  %1784 = vmatpush1.bf16.xpose.msra.mxu1 %v1715_v39  ;;  %v1657_v51 = vmax.f32 %v1511_v42, 0.0 }
 0x2c2   : > { %v1517_v50 = vadd.f32 %v1516_v49, %v2806_v47  ;;  %v1658_v53 = vmax.f32 %v1513_v45, 0.0 }
 0x2c3   : > { %v1659_v52 = vmax.f32 %v1515_v48, 0.0 }
 0x2c4   : > { %v1660_v55 = vmax.f32 %v1517_v50, 0.0 }
 0x2c5   : > { %v1717_v56 = vpack.c.bf16 %v1659_v52, %v1657_v51 }
 0x2c6   : > { %v1718_v58 = vpack.c.bf16 %v1660_v55, %v1658_v53  ;;  %v1520_v59 = vpop.f32.mrb[44].mxu0 }
 0x2c7   : > { %v1521_v60 = vadd.f32 %v1520_v59, %v2803_v8  ;;  %v1522_v61 = vpop.f32.mrb[45].mxu0 }
 0x2c8   : > { %v1523_v62 = vadd.f32 %v1522_v61, %v2806_v47  ;;  %v1524_v63 = vpop.f32.mrb[46].mxu0  ;;  %1785 = vmatprep.subr.bf16.mxu1 %v1718_v58 }
 0x2c9   : > { %v1525_v0 = vadd.f32 %v1524_v63, %v2803_v8  ;;  %v1526_v1 = vpop.f32.mrb[47].mxu0  ;;  %1786 = vmatpush1.bf16.xpose.msra.mxu1 %v1717_v56  ;;  %v1661_v4 = vmax.f32 %v1521_v60, 0.0 }
 0x2ca   : > { %v1527_v2 = vadd.f32 %v1526_v1, %v2806_v47  ;;  %v1662_v11 = vmax.f32 %v1523_v62, 0.0 }
 0x2cb   : > { %v1663_v6 = vmax.f32 %v1525_v0, 0.0 }
 0x2cc   : > { %v1664_v15 = vmax.f32 %v1527_v2, 0.0 }
 0x2cd   : > { %v1719_v27 = vpack.c.bf16 %v1663_v6, %v1661_v4 }
 0x2ce   : > { %v1720_v28 = vpack.c.bf16 %v1664_v15, %v1662_v11  ;;  %v1530_v7 = vpop.f32.mrb[48].mxu0 }
 0x2cf   : > { %v1531_v10 = vadd.f32 %v1530_v7, %v2803_v8  ;;  %v1532_v44 = vpop.f32.mrb[49].mxu0 }
 0x2d0   : > { %v1533_v18 = vadd.f32 %v1532_v44, %v2806_v47  ;;  %v1534_v54 = vpop.f32.mrb[50].mxu0  ;;  %1787 = vmatprep.subr.bf16.mxu1 %v1720_v28 }
 0x2d1   : > { %v1535_v32 = vadd.f32 %v1534_v54, %v2803_v8  ;;  %v1536_v26 = vpop.f32.mrb[51].mxu0  ;;  %1788 = vmatpush1.bf16.xpose.msra.mxu1 %v1719_v27  ;;  %v1665_v5 = vmax.f32 %v1531_v10, 0.0 }
 0x2d2   : > { %v1537_v35 = vadd.f32 %v1536_v26, %v2806_v47  ;;  %v1666_v13 = vmax.f32 %v1533_v18, 0.0 }
 0x2d3   : > { %v1667_v9 = vmax.f32 %v1535_v32, 0.0 }
 0x2d4   : > { %v1668_v14 = vmax.f32 %v1537_v35, 0.0 }
 0x2d5   : > { %v1721_v16 = vpack.c.bf16 %v1667_v9, %v1665_v5 }
 0x2d6   : > { %v1722_v17 = vpack.c.bf16 %v1668_v14, %v1666_v13  ;;  %v1540_v19 = vpop.f32.mrb[52].mxu0 }
 0x2d7   : > { %v1541_v3 = vadd.f32 %v1540_v19, %v2803_v8  ;;  %v1542_v20 = vpop.f32.mrb[53].mxu0 }
 0x2d8   : > { %v1543_v21 = vadd.f32 %v1542_v20, %v2806_v47  ;;  %v1544_v25 = vpop.f32.mrb[54].mxu0  ;;  %1789 = vmatprep.subr.bf16.mxu1 %v1722_v17 }
 0x2d9   : > { %v1545_v29 = vadd.f32 %v1544_v25, %v2803_v8  ;;  %v1546_v30 = vpop.f32.mrb[55].mxu0  ;;  %1790 = vmatpush1.bf16.xpose.msra.mxu1 %v1721_v16  ;;  %v1669_v23 = vmax.f32 %v1541_v3, 0.0 }
 0x2da   : > { %v1547_v31 = vadd.f32 %v1546_v30, %v2806_v47  ;;  %v1670_v34 = vmax.f32 %v1543_v21, 0.0 }
 0x2db   : > { %v1671_v33 = vmax.f32 %v1545_v29, 0.0 }
 0x2dc   : > { %v1672_v36 = vmax.f32 %v1547_v31, 0.0 }
 0x2dd   : > { %v1723_v37 = vpack.c.bf16 %v1671_v33, %v1669_v23 }
 0x2de   : > { %v1724_v38 = vpack.c.bf16 %v1672_v36, %v1670_v34  ;;  %v1550_v39 = vpop.f32.mrb[56].mxu0 }
 0x2df   : > { %v1551_v40 = vadd.f32 %v1550_v39, %v2803_v8  ;;  %v1552_v41 = vpop.f32.mrb[57].mxu0 }
 0x2e0   : > { %v1553_v42 = vadd.f32 %v1552_v41, %v2806_v47  ;;  %v1554_v43 = vpop.f32.mrb[58].mxu0  ;;  %1791 = vmatprep.subr.bf16.mxu1 %v1724_v38 }
 0x2e1   : > { %v1555_v45 = vadd.f32 %v1554_v43, %v2803_v8  ;;  %v1556_v46 = vpop.f32.mrb[59].mxu0  ;;  %1792 = vmatpush1.bf16.xpose.msra.mxu1 %v1723_v37  ;;  %v1673_v49 = vmax.f32 %v1551_v40, 0.0 }
 0x2e2   : > { %v1557_v48 = vadd.f32 %v1556_v46, %v2806_v47  ;;  %v1674_v51 = vmax.f32 %v1553_v42, 0.0 }
 0x2e3   : > { %v1675_v50 = vmax.f32 %v1555_v45, 0.0 }
 0x2e4   : > { %v1676_v52 = vmax.f32 %v1557_v48, 0.0 }
 0x2e5   : > { %v1725_v53 = vpack.c.bf16 %v1675_v50, %v1673_v49 }
 0x2e6   : > { %v1726_v55 = vpack.c.bf16 %v1676_v52, %v1674_v51  ;;  %v1560_v56 = vpop.f32.mrb[60].mxu0 }
 0x2e7   : > { %v1561_v58 = vadd.f32 %v1560_v56, %v2803_v8  ;;  %v1562_v59 = vpop.f32.mrb[61].mxu0 }
 0x2e8   : > { %v1563_v60 = vadd.f32 %v1562_v59, %v2806_v47  ;;  %v1564_v61 = vpop.f32.mrb[62].mxu0  ;;  %1793 = vmatprep.subr.bf16.mxu1 %v1726_v55 }
 0x2e9   : > { %v1565_v62 = vadd.f32 %v1564_v61, %v2803_v8  ;;  %v1566_v63 = vpop.f32.mrb[63].mxu0  ;;  %1794 = vmatpush1.bf16.xpose.msra.mxu1 %v1725_v53  ;;  %v1677_v1 = vmax.f32 %v1561_v58, 0.0 }
 0x2ea   : > { %v1567_v0 = vadd.f32 %v1566_v63, %v2806_v47  ;;  %v1678_v4 = vmax.f32 %v1563_v60, 0.0 }
 0x2eb   : > { %v1679_v2 = vmax.f32 %v1565_v62, 0.0 }
 0x2ec   : > { %v1680_v6 = vmax.f32 %v1567_v0, 0.0 }
 0x2ed   : > { %v1727_v11 = vpack.c.bf16 %v1679_v2, %v1677_v1 }
 0x2ee   : > { %v1728_v15 = vpack.c.bf16 %v1680_v6, %v1678_v4  ;;  %v1570_v27 = vpop.f32.mrb[64].mxu0 }
 0x2ef   : > { %v1571_v28 = vadd.f32 %v1570_v27, %v2803_v8  ;;  %v1572_v7 = vpop.f32.mrb[65].mxu0 }
 0x2f0   : > { %v1573_v10 = vadd.f32 %v1572_v7, %v2806_v47  ;;  %v1574_v44 = vpop.f32.mrb[66].mxu0  ;;  %1795 = vmatprep.subr.bf16.mxu1 %v1728_v15 }
 0x2f1   : > { %v1575_v18 = vadd.f32 %v1574_v44, %v2803_v8  ;;  %v1576_v54 = vpop.f32.mrb[67].mxu0  ;;  %1796 = vmatpush1.bf16.xpose.msra.mxu1 %v1727_v11  ;;  %v1681_v26 = vmax.f32 %v1571_v28, 0.0 }
 0x2f2   : > { %v1577_v32 = vadd.f32 %v1576_v54, %v2806_v47  ;;  %v1682_v5 = vmax.f32 %v1573_v10, 0.0 }
 0x2f3   : > { %v1683_v35 = vmax.f32 %v1575_v18, 0.0 }
 0x2f4   : > { %v1684_v9 = vmax.f32 %v1577_v32, 0.0 }
 0x2f5   : > { %v1729_v13 = vpack.c.bf16 %v1683_v35, %v1681_v26 }
 0x2f6   : > { %v1730_v14 = vpack.c.bf16 %v1684_v9, %v1682_v5  ;;  %v1580_v16 = vpop.f32.mrb[68].mxu0 }
 0x2f7   : > { %v1581_v17 = vadd.f32 %v1580_v16, %v2803_v8  ;;  %v1582_v19 = vpop.f32.mrb[69].mxu0 }
 0x2f8   : > { %v1583_v3 = vadd.f32 %v1582_v19, %v2806_v47  ;;  %v1584_v20 = vpop.f32.mrb[70].mxu0  ;;  %1797 = vmatprep.subr.bf16.mxu1 %v1730_v14 }
 0x2f9   : > { %v1585_v21 = vadd.f32 %v1584_v20, %v2803_v8  ;;  %v1586_v25 = vpop.f32.mrb[71].mxu0  ;;  %1798 = vmatpush1.bf16.xpose.msra.mxu1 %v1729_v13  ;;  %v1685_v30 = vmax.f32 %v1581_v17, 0.0 }
 0x2fa   : > { %v1587_v29 = vadd.f32 %v1586_v25, %v2806_v47  ;;  %v1686_v23 = vmax.f32 %v1583_v3, 0.0 }
 0x2fb   : > { %v1687_v31 = vmax.f32 %v1585_v21, 0.0 }
 0x2fc   : > { %v1688_v33 = vmax.f32 %v1587_v29, 0.0 }
 0x2fd   : > { %v1731_v34 = vpack.c.bf16 %v1687_v31, %v1685_v30 }
 0x2fe   : > { %v1732_v36 = vpack.c.bf16 %v1688_v33, %v1686_v23  ;;  %v1590_v37 = vpop.f32.mrb[72].mxu0 }
 0x2ff   : > { %v1591_v38 = vadd.f32 %v1590_v37, %v2803_v8  ;;  %v1592_v39 = vpop.f32.mrb[73].mxu0 }
 0x300   : > { %v1593_v40 = vadd.f32 %v1592_v39, %v2806_v47  ;;  %v1594_v41 = vpop.f32.mrb[74].mxu0  ;;  %1799 = vmatprep.subr.bf16.mxu1 %v1732_v36 }
 0x301   : > { %v1595_v42 = vadd.f32 %v1594_v41, %v2803_v8  ;;  %v1596_v43 = vpop.f32.mrb[75].mxu0  ;;  %1800 = vmatpush1.bf16.xpose.msra.mxu1 %v1731_v34  ;;  %v1689_v46 = vmax.f32 %v1591_v38, 0.0 }
 0x302   : > { %v1597_v45 = vadd.f32 %v1596_v43, %v2806_v47  ;;  %v1690_v49 = vmax.f32 %v1593_v40, 0.0 }
 0x303   : > { %v1691_v48 = vmax.f32 %v1595_v42, 0.0 }
 0x304   : > { %v1692_v50 = vmax.f32 %v1597_v45, 0.0 }
 0x305   : > { %v1733_v51 = vpack.c.bf16 %v1691_v48, %v1689_v46 }
 0x306   : > { %v1734_v52 = vpack.c.bf16 %v1692_v50, %v1690_v49  ;;  %v1600_v53 = vpop.f32.mrb[76].mxu0 }
 0x307   : > { %v1601_v55 = vadd.f32 %v1600_v53, %v2803_v8  ;;  %v1602_v56 = vpop.f32.mrb[77].mxu0 }
 0x308   : > { %v1603_v58 = vadd.f32 %v1602_v56, %v2806_v47  ;;  %v1604_v59 = vpop.f32.mrb[78].mxu0  ;;  %1801 = vmatprep.subr.bf16.mxu1 %v1734_v52 }
 0x309   : > { %v1605_v60 = vadd.f32 %v1604_v59, %v2803_v8  ;;  %v1606_v61 = vpop.f32.mrb[79].mxu0  ;;  %1802 = vmatpush1.bf16.xpose.msra.mxu1 %v1733_v51  ;;  %v1693_v63 = vmax.f32 %v1601_v55, 0.0 }
 0x30a   : > { %v1607_v62 = vadd.f32 %v1606_v61, %v2806_v47  ;;  %v1694_v1 = vmax.f32 %v1603_v58, 0.0 }
 0x30b   : > { %v1695_v0 = vmax.f32 %v1605_v60, 0.0 }
 0x30c   : > { %v1696_v2 = vmax.f32 %v1607_v62, 0.0 }
 0x30d   : > { %v1735_v4 = vpack.c.bf16 %v1695_v0, %v1693_v63 }
 0x30e   : > { %v1736_v6 = vpack.c.bf16 %v1696_v2, %v1694_v1  ;;  %v1610_v11 = vpop.f32.mrb[80].mxu0 }
 0x30f   : > { %v1611_v15 = vadd.f32 %v1610_v11, %v2803_v8  ;;  %v1612_v27 = vpop.f32.mrb[81].mxu0 }
 0x310   : > { %v1613_v28 = vadd.f32 %v1612_v27, %v2806_v47  ;;  %v1614_v7 = vpop.f32.mrb[82].mxu0  ;;  %1803 = vmatprep.subr.bf16.mxu1 %v1736_v6  ;;  %v1750_v6 = vpop.permute.xlu0 %1749 }
 0x311   : > { %v1615_v10 = vadd.f32 %v1614_v7, %v2803_v8  ;;  %v1616_v44 = vpop.f32.mrb[83].mxu0  ;;  %1804 = vmatpush1.bf16.xpose.msra.mxu1 %v1735_v4  ;;  %v1697_v54 = vmax.f32 %v1611_v15, 0.0  ;;  %v1771_v4 = vrot.slane %v2814_v57, %v2820_v12 }
 0x312   : > { %v1617_v18 = vadd.f32 %v1616_v44, %v2806_v47  ;;  %v1698_v26 = vmax.f32 %v1613_v28, 0.0 }
 0x313   : > { %v1699_v32 = vmax.f32 %v1615_v10, 0.0 }
 0x314   : > { %v1700_v35 = vmax.f32 %v1617_v18, 0.0 }
 0x315   : > { %v1737_v5 = vpack.c.bf16 %v1699_v32, %v1697_v54 }
 0x316   : > { %v1738_v9 = vpack.c.bf16 %v1700_v35, %v1698_v26  ;;  %v1620_v13 = vpop.f32.mrb[84].mxu0 }
 0x317   : > { %v1621_v14 = vadd.f32 %v1620_v13, %v2803_v8  ;;  %v1622_v16 = vpop.f32.mrb[85].mxu0 }
 0x318   : > { %v1623_v17 = vadd.f32 %v1622_v16, %v2806_v47  ;;  %v1624_v19 = vpop.f32.mrb[86].mxu0  ;;  %1805 = vmatprep.subr.bf16.mxu1 %v1738_v9 }
 0x319   : > { %v1625_v3 = vadd.f32 %v1624_v19, %v2803_v8  ;;  %v1626_v20 = vpop.f32.mrb[87].mxu0  ;;  %1806 = vmatpush1.bf16.xpose.msra.mxu1 %v1737_v5  ;;  %v1701_v25 = vmax.f32 %v1621_v14, 0.0 }
 0x31a   : > { %v1627_v21 = vadd.f32 %v1626_v20, %v2806_v47  ;;  %v1702_v30 = vmax.f32 %v1623_v17, 0.0 }
 0x31b   : > { %v1703_v29 = vmax.f32 %v1625_v3, 0.0 }
 0x31c   : > { %v1704_v31 = vmax.f32 %v1627_v21, 0.0 }
 0x31d   : > { %v1739_v23 = vpack.c.bf16 %v1703_v29, %v1701_v25 }
 0x31e   : > { %v1740_v33 = vpack.c.bf16 %v1704_v31, %v1702_v30  ;;  %v1630_v34 = vpop.f32.mrb[88].mxu0 }
 0x31f   : > { %v1631_v36 = vadd.f32 %v1630_v34, %v2803_v8  ;;  %v1632_v37 = vpop.f32.mrb[89].mxu0 }
 0x320   : > { %v1633_v38 = vadd.f32 %v1632_v37, %v2806_v47  ;;  %v1634_v39 = vpop.f32.mrb[90].mxu0  ;;  %1807 = vmatprep.subr.bf16.mxu1 %v1740_v33 }
 0x321   : > { %v1635_v40 = vadd.f32 %v1634_v39, %v2803_v8  ;;  %v1636_v41 = vpop.f32.mrb[91].mxu0  ;;  %1808 = vmatpush1.bf16.xpose.msra.mxu1 %v1739_v23  ;;  %v1705_v43 = vmax.f32 %v1631_v36, 0.0 }
 0x322   : > { %v1637_v42 = vadd.f32 %v1636_v41, %v2806_v47  ;;  %v1706_v46 = vmax.f32 %v1633_v38, 0.0 }
 0x323   : > { %v1707_v45 = vmax.f32 %v1635_v40, 0.0 }
 0x324   : > { %v1708_v48 = vmax.f32 %v1637_v42, 0.0 }
 0x325   : > { %v1741_v49 = vpack.c.bf16 %v1707_v45, %v1705_v43 }
 0x326   : > { %v1742_v50 = vpack.c.bf16 %v1708_v48, %v1706_v46  ;;  %v1640_v51 = vpop.f32.mrb[92].mxu0 }
 0x327   : > { %v1641_v52 = vadd.f32 %v1640_v51, %v2803_v8  ;;  %v1642_v53 = vpop.f32.mrb[93].mxu0 }
 0x328   : > { %v1643_v55 = vadd.f32 %v1642_v53, %v2806_v47  ;;  %v1644_v56 = vpop.f32.mrb[94].mxu0  ;;  %1809 = vmatprep.subr.bf16.mxu1 %v1742_v50 }
 0x329   : > { %v1645_v58 = vadd.f32 %v1644_v56, %v2803_v8  ;;  %v1646_v59 = vpop.f32.mrb[95].mxu0  ;;  %1810 = vmatpush1.bf16.xpose.msra.mxu1 %v1741_v49  ;;  %v1709_v61 = vmax.f32 %v1641_v52, 0.0  ;;  %v1755_v8 = vrot.slane %v1750_v6, %v2516_v24 }
 0x32a   : > { %v1647_v60 = vadd.f32 %v1646_v59, %v2806_v47  ;;  %v1710_v63 = vmax.f32 %v1643_v55, 0.0 }
 0x32b   : > { %v1711_v62 = vmax.f32 %v1645_v58, 0.0 }
 0x32c   : > { %v1712_v0 = vmax.f32 %v1647_v60, 0.0 }
 0x32d   : > { %v1743_v1 = vpack.c.bf16 %v1711_v62, %v1709_v61 }
 0x32e   : > { %v1744_v2 = vpack.c.bf16 %v1712_v0, %v1710_v63 }
 0x330   : > { %1811 = vmatprep.subr.bf16.mxu1 %v1744_v2 }
 0x331   : > { %1812 = vmatpush1.bf16.xpose.msra.mxu1 %v1743_v1 }
 0x338   : > { %1814 = vmatmul.mubr.bf16.vlgmr.msra.gmra.mrb[96].mxu1 %v1771_v4 }
 0x40b   : > { %v1815_v11 = vpop.f32.mrb[96].mxu1 }
 0x40c   : > { %v1816_v47 = vadd.f32 %v1815_v11, %v1755_v8  ;;  %v1817_v15 = vpop.f32.mrb[97].mxu1 }
 0x40d   : > { %v1818_v27 = vadd.f32 %v1817_v15, %v1755_v8  ;;  %v1819_v28 = vpop.f32.mrb[98].mxu1 }
 0x40e   : > { %v1820_v7 = vpop.f32.mrb[99].mxu1 }
 0x40f   : > { %v1824_v10 = vcombine.low %v1816_v47, %v1818_v27 }
 0x411   : > { %v1831_v44 = vrot.slane %v1824_v10, %v2820_v12 }
 0x413   : > { %v1838_v57 = vrot.slane %v1831_v44, %v2820_v12 }
 0x415   : > { %1844 = vst.msk [vmem:[%s328_s23] sm:$0x3] %vm1842_vm1, %v1838_v57 }
 0x416   : > { %2178 = shalt.err (!%p2175_p3)
}
 0x417   : > { %s2179_s24 = scalar_lea.hbm %s2894_s26, 32  ;;  %s2183_s17 = scalar_lea.hbm %s2945_s9, 64 }
 0x418   : > { %p2180_p4 = scmp.ne.s32.totalorder %s2894_s26, %s2179_s24  ;;  %p2184_p9 = scmp.lt.u32.totalorder %s2894_s26, %s2945_s9 }
 0x419   : > { %p2185_p10 = scmp.lt.u32.totalorder %s2183_s17, %s2179_s24  ;;  %p2187_p12 = scmp.lt.u32.totalorder %s2179_s24, %s2894_s26 }
 0x41a   : > { %p2181_p7 = pnand %p2180_p4, %p2320_p5 }
 0x41b   : > { %p2186_p11 = por %p2185_p10, %p2184_p9 }
 0x41c   : > { %p2182_p8 = pneg %p2181_p7 }
 0x41d   : > { %p2188_p13 = por %p2187_p12, %p2186_p11 }
 0x41f   : > { %p2189_p0 = pnand %p2188_p13, %p2182_p8 }
 0x421   : > { %2192 = shalt.err (!%p2189_p0)
}
 0x422   : > { %2021 = dma.vmem_to_hbm [thread:$0]  (%p2320_p5), %s2896_s18, 32, %s2894_s26, %s1846_s27  }
 0x423 PF: > { %p2027_p1 = scmp.ge.s32.totalorder %s2227_s14, 2  ;;  %s1872_s25 = sand.u32 1, %s2215_s11  }
 0x424   : > { %s1873_s28 = scalar_lea.sflag [#allocation4], %s1872_s25 }
 0x425   : > { %p2024_p2 = pnand %p2027_p1, %p2324_p6 }
 0x427   : > { %2210 = dma.done.wait (!%p2024_p2), %s1873_s28, 32  }
 0x428   : > { %2212 = vsyncadd (!%p2024_p2), %s1873_s28, 4294967264  ;;  %p21_p3 = scmp.ge.s32.totalorder %s2308_s16, 4   ;;  %s2948_s11 = smov %s2219_s12 }
 0x429   : > { %s2949_s12 = smov %s2223_s13  ;;  %s2950_s13 = smov %s2318_s19 }
 0x42a   : > { %s2951_s14 = smov %s2308_s16  ;;  %23 = sbr.rel (!%p21_p3) target bundleno = 6 (0x6), region = 91 }
 0x431   :  { %1878 = vsyncpa [#allocation4], 1 }
 0x432   :  { %1880 = vsyncpa [#allocation4 + $0x1], 1 }

// kernel: tpu_custom_call.1
= control target key start
LH: loop header
LB: loop body
LE: loop exit
PB: predicated region body
PF: predicated region fallthrough
CT: control target
= control target key end

     0   :  { %s2936_s0 = inlined_call_operand.vmem [shape: f32[512,32], index: 0, kind: input, shape index: {}]   ;;  %s2937_s1 = inlined_call_operand.vmem [shape: bf16[32,256], index: 1, kind: input, shape index: {}]   ;;  %s2938_s2 = inlined_call_operand.vmem [shape: f32[1,256], index: 2, kind: input, shape index: {}]   ;;  %s2939_s3 = inlined_call_operand.vmem [shape: bf16[256,256], index: 3, kind: input, shape index: {}]   ;;  %s2940_s4 = inlined_call_operand.vmem [shape: f32[1,256], index: 4, kind: input, shape index: {}]   ;;  %s2941_s5 = inlined_call_operand.vmem [shape: bf16[256,256], index: 5, kind: input, shape index: {}]   ;;  %s2942_s6 = inlined_call_operand.vmem [shape: f32[1,256], index: 6, kind: input, shape index: {}]   ;;  %s2943_s7 = inlined_call_operand.vmem [shape: bf16[1,256], index: 7, kind: input, shape index: {}]   ;;  %s2944_s8 = inlined_call_operand.<no memory space> [shape: f32[1,1], index: 8, kind: input, shape index: {}]   ;;  %s2945_s9 = inlined_call_operand.hbm [shape: f32[1,512], index: 9, kind: output, shape index: {}]  }
   0x1   :  { %v14_v0 = vstv %s2944_s8 }
   0x2   :  { %15 = vst [vmem:[#allocation2] sm:$0x1] %v14_v0 }
   0x3   :  { %16 = vsyncpa [#allocation4], 0 }
   0x4   :  { %18 = vsyncpa [#allocation4 + $0x1], 0  ;;  %s2285_s11 = smov 0   ;;  %s2287_s12 = smov 0  }
   0x5   :  { %s2289_s13 = smov 0   ;;  %s2291_s14 = smov 0  }
   0x6 LB: > { %s1918_s8 = sadd.s32 4294967295, %s2227_s14   ;;  %s1919_s15 = sadd.s32 4294967294, %s2227_s14   ;;  %s2227_s14 = sphi %s2291_s14, %s2951_s14   ;;  %s2223_s13 = sphi %s2289_s13, %s2950_s13   ;;  %s2219_s12 = sphi %s2287_s12, %s2949_s12   ;;  %s2215_s11 = sphi %s2285_s11, %s2948_s11  }
   0x7   : > { %s2308_s16 = sadd.s32 1, %s2227_s14   ;;  %s225_s17 = sadd.s32 1, %s2223_s13 }
   0x8   : > { %s222_s18 = ssub.s32 %s2227_s14, %s2308_s16  ;;  %p235_p0 = scmp.ne.s32.totalorder %s2223_s13, %s2219_s12 }
   0x9   : > { %p223_p1 = scmp.eq.s32.totalorder %s222_s18, 0  ;;  %p236_p2 = scmp.eq.s32.totalorder %s1918_s8, 1 }
   0xa   : > { %p241_p3 = scmp.ne.s32.totalorder %s2219_s12, %s2215_s11  ;;  %p242_p4 = scmp.eq.s32.totalorder %s1919_s15, 1 }
   0xb   : > { %s2318_s19 = scalar_select %p223_p1, %s2223_s13, %s225_s17  }
   0xc   : > { %p2320_p5 = por %p236_p2, %p235_p0  ;;  %p2324_p6 = por %p242_p4, %p241_p3 }
   0xd   : > { %p1922_p7 = scmp.ge.s32.totalorder %s2227_s14, 1  ;;  %p293_p8 = scmp.lt.s32.totalorder %s2227_s14, 3 }
   0xf   : > { %p294_p9 = pnand %p1922_p7, %p293_p8 }
  0x10   : > { %v2063_v1 = vld [vmem:[%s2937_s1 + $0x4] ss:$8 sps:$4 sm:$0xff] (!%p294_p9)   ;;  %s2333_s24 = sshll.u32 (!%p294_p9), %s1918_s8, 5  ;;  %v2065_v2 = vld [vmem:[%s2937_s1] ss:$8 sps:$4 sm:$0xff] (!%p294_p9)   ;;  %v2229_v3 = vmov (!%p294_p9), 0  }
  0x11   : > { %297 = sbr.rel (%p294_p9) target bundleno = 1059 (0x423), region = 56  ;;  %502 = vmatprep.mubr.bf16.mxu0 (!%p294_p9), %v2229_v3  ;;  %p330_p10 = scmp.lt.s32.totalorder (!%p294_p9), %s2333_s24, 63  ;;  %582 = vmatprep.mubr.bf16.mxu1 (!%p294_p9), %v2229_v3  ;;  %v2066_v4 = vld [vmem:[%s2937_s1 + $0x14] ss:$8 sps:$4 sm:$0xff] (!%p294_p9)   ;;  %v2068_v5 = vld [vmem:[%s2937_s1 + $0x10] ss:$8 sps:$4 sm:$0xff] (!%p294_p9)  }
  0x12   : > { %470 = vmatprep.subr.bf16.mxu0 (!%p294_p9), %v2063_v1  ;;  %2017 = vmatprep.subr.bf16.mxu1 (!%p294_p9), %v2063_v1  ;;  %v2071_v6 = vld [vmem:[%s2939_s3 + $0x4] ss:$8 sps:$4 sm:$0xff] (!%p294_p9)   ;;  %vm421_vm0 = vcmask (!%p294_p9), 261120   ;;  %v2069_v14 = vld [vmem:[%s2939_s3] ss:$8 sps:$4 sm:$0xff] (!%p294_p9)   ;;  %s326_s15 = sand.u32 (!%p294_p9), 1, %s2219_s12   ;;  %s2894_s26 = scalar_lea.hbm (!%p294_p9), %s2945_s9, %s2333_s24 }
  0x13   : > { %471 = vmatpush1.bf16.msra.mxu0 (!%p294_p9), %v2065_v2  ;;  %2019 = vmatpush1.bf16.msra.mxu1 (!%p294_p9), %v2065_v2  ;;  %v2074_v16 = vld [vmem:[%s2939_s3 + $0x14] ss:$8 sps:$4 sm:$0xff] (!%p294_p9)   ;;  %v2072_v20 = vld [vmem:[%s2939_s3 + $0x10] ss:$8 sps:$4 sm:$0xff] (!%p294_p9)   ;;  %v2077_v21 = vld [vmem:[%s2939_s3 + $0x24] ss:$8 sps:$4 sm:$0xff] (!%p294_p9)  }
  0x14   : > { %472 = vmatprep.subr.bf16.mxu0 (!%p294_p9), %v2066_v4  ;;  %2018 = vmatprep.subr.bf16.mxu1 (!%p294_p9), %v2066_v4  ;;  %v2075_v25 = vld [vmem:[%s2939_s3 + $0x20] ss:$8 sps:$4 sm:$0xff] (!%p294_p9)   ;;  %v2080_v26 = vld [vmem:[%s2939_s3 + $0x34] ss:$8 sps:$4 sm:$0xff] (!%p294_p9)   ;;  %v2078_v30 = vld [vmem:[%s2939_s3 + $0x30] ss:$8 sps:$4 sm:$0xff] (!%p294_p9)  }
  0x15   : > { %2062 = vset.pattern.permute.xlu0 (!%p294_p9), %v2229_v3  ;;  %v2083_v31 = vld [vmem:[%s2939_s3 + $0x44] ss:$8 sps:$4 sm:$0xff] (!%p294_p9)   ;;  %v2081_v35 = vld [vmem:[%s2939_s3 + $0x40] ss:$8 sps:$4 sm:$0xff] (!%p294_p9)   ;;  %v2086_v36 = vld [vmem:[%s2939_s3 + $0x54] ss:$8 sps:$4 sm:$0xff] (!%p294_p9)  }
  0x16   : > { %v2084_v40 = vld [vmem:[%s2939_s3 + $0x50] ss:$8 sps:$4 sm:$0xff] (!%p294_p9)   ;;  %v2089_v41 = vld [vmem:[%s2939_s3 + $0x64] ss:$8 sps:$4 sm:$0xff] (!%p294_p9)   ;;  %v2087_v44 = vld [vmem:[%s2939_s3 + $0x60] ss:$8 sps:$4 sm:$0xff] (!%p294_p9)  }
  0x17   : > { %473 = vmatpush1.bf16.msra.mxu0 (!%p294_p9), %v2068_v5  ;;  %2020 = vmatpush1.bf16.msra.mxu1 (!%p294_p9), %v2068_v5  ;;  %v2092_v46 = vld [vmem:[%s2939_s3 + $0x74] ss:$8 sps:$4 sm:$0xff] (!%p294_p9)   ;;  %v2090_v50 = vld [vmem:[%s2939_s3 + $0x70] ss:$8 sps:$4 sm:$0xff] (!%p294_p9)   ;;  %v2095_v51 = vld [vmem:[%s2939_s3 + $0x84] ss:$8 sps:$4 sm:$0xff] (!%p294_p9)  }
  0x18   : > { %s331_s10 = scalar_select %p330_p10, %s2333_s24, 63  ;;  %963 = vmatprep.subr.bf16.mxu1 %v2071_v6  ;;  %v2093_v55 = vld [vmem:[%s2939_s3 + $0x80] ss:$8 sps:$4 sm:$0xff]   ;;  %v2098_v56 = vld [vmem:[%s2939_s3 + $0x94] ss:$8 sps:$4 sm:$0xff]  }
  0x19   : > { %v2096_v60 = vld [vmem:[%s2939_s3 + $0x90] ss:$8 sps:$4 sm:$0xff]   ;;  %v2101_v61 = vld [vmem:[%s2939_s3 + $0xa4] ss:$8 sps:$4 sm:$0xff]   ;;  %v2099_v1 = vld [vmem:[%s2939_s3 + $0xa0] ss:$8 sps:$4 sm:$0xff]  }
  0x1a   : > { %s1925_s17 = sshll.u32 %s331_s10, 3  ;;  %v2104_v2 = vld [vmem:[%s2939_s3 + $0xb4] ss:$8 sps:$4 sm:$0xff]   ;;  %s1846_s27 = scalar_lea.sflag [#allocation4], %s326_s15 }
  0x1b   : > { %s2355_s23 = scalar_lea.vmem %s2936_s0, %s1925_s17  ;;  %s1923_s17 = sshll.u32 %s326_s15, 1 }
  0x1c   : > { %v337_v7 = vld [vmem:[%s2355_s23] sm:$0xff]  ;;  %v338_v8 = vld [vmem:[%s2355_s23 + $0x8] sm:$0xff]  ;;  %v339_v10 = vld [vmem:[%s2355_s23 + $0x10] sm:$0xff]  ;;  %s2231_s29 = smov [#allocation3]  }
  0x1d   : > { %v369_v9 = vpack.c.bf16 %v338_v8, %v337_v7  ;;  %v340_v11 = vld [vmem:[%s2355_s23 + $0x18] sm:$0xff]  ;;  %v353_v12 = vld [vmem:[%s2355_s23 + $0x80] sm:$0xff]  ;;  %v354_v13 = vld [vmem:[%s2355_s23 + $0x88] sm:$0xff]  ;;  %s2169_s30 = sshll.u32 %s2231_s29, 4  ;;  %s2170_s30 = int_to_ptr.vmem [resolvable:$false] %s2169_s30 }
  0x1e   : > { %v377_v15 = vpack.c.bf16 %v354_v13, %v353_v12  ;;  %v370_v17 = vpack.c.bf16 %v340_v11, %v339_v10  ;;  %v355_v18 = vld [vmem:[%s2355_s23 + $0x90] sm:$0xff]  ;;  %v356_v19 = vld [vmem:[%s2355_s23 + $0x98] sm:$0xff]  ;;  %v341_v22 = vld [vmem:[%s2355_s23 + $0x20] sm:$0xff]  ;;  %s2171_s10 = scalar_lea.vmem %s2170_s30, 64 }
  0x1f   : > { %1930 = vmatmul.mubr.msk.bf16.vlgmr.msra.gmra.mrb[0].mxu0 %vm421_vm0, %v369_v9  ;;  %v342_v23 = vld [vmem:[%s2355_s23 + $0x28] sm:$0xff]  ;;  %v378_v24 = vpack.c.bf16 %v356_v19, %v355_v18  ;;  %v357_v28 = vld [vmem:[%s2355_s23 + $0xa0] sm:$0xff]  ;;  %v343_v32 = vld [vmem:[%s2355_s23 + $0x30] sm:$0xff] }
  0x20   : > { %512 = vmatprep.mubr.bf16.mxu0 %v2229_v3  ;;  %1938 = vmatmul.mubr.msk.bf16.vlgmr.msra.gmra.mrb[0].mxu1 %vm421_vm0, %v377_v15  ;;  %v371_v27 = vpack.c.bf16 %v342_v23, %v341_v22  ;;  %v358_v29 = vld [vmem:[%s2355_s23 + $0xa8] sm:$0xff]  ;;  %v344_v33 = vld [vmem:[%s2355_s23 + $0x38] sm:$0xff]  ;;  %v359_v38 = vld [vmem:[%s2355_s23 + $0xb0] sm:$0xff]  ;;  %v391_v22 = vlaneseq }
  0x21   : > { %592 = vmatprep.mubr.bf16.mxu1 %v2229_v3  ;;  %964 = vmatpush1.bf16.msra.mxu1 %v2069_v14  ;;  %v379_v34 = vpack.c.bf16 %v358_v29, %v357_v28  ;;  %v372_v37 = vpack.c.bf16 %v344_v33, %v343_v32  ;;  %v360_v39 = vld [vmem:[%s2355_s23 + $0xb8] sm:$0xff]  ;;  %v345_v42 = vld [vmem:[%s2355_s23 + $0x40] sm:$0xff]  ;;  %v346_v43 = vld [vmem:[%s2355_s23 + $0x48] sm:$0xff] }
  0x22   : > { %965 = vmatprep.subr.bf16.mxu1 %v2074_v16  ;;  %v380_v45 = vpack.c.bf16 %v360_v39, %v359_v38  ;;  %v373_v47 = vpack.c.bf16 %v346_v43, %v345_v42  ;;  %v361_v48 = vld [vmem:[%s2355_s23 + $0xc0] sm:$0xff]  ;;  %v362_v49 = vld [vmem:[%s2355_s23 + $0xc8] sm:$0xff]  ;;  %v347_v52 = vld [vmem:[%s2355_s23 + $0x50] sm:$0xff]  ;;  %v2513_v23 = vshrl.u32 %v391_v22, 7  ;;  %vm1842_vm1 = vcmp.lt.s32.totalorder %v391_v22, 256 }
  0x23   : > { %v348_v53 = vld [vmem:[%s2355_s23 + $0x58] sm:$0xff]  ;;  %v381_v54 = vpack.c.bf16 %v362_v49, %v361_v48  ;;  %v363_v58 = vld [vmem:[%s2355_s23 + $0xd0] sm:$0xff]  ;;  %v349_v62 = vld [vmem:[%s2355_s23 + $0x60] sm:$0xff] }
  0x24   : > { %v374_v57 = vpack.c.bf16 %v348_v53, %v347_v52  ;;  %v364_v59 = vld [vmem:[%s2355_s23 + $0xd8] sm:$0xff]  ;;  %v350_v63 = vld [vmem:[%s2355_s23 + $0x68] sm:$0xff]  ;;  %v365_v5 = vld [vmem:[%s2355_s23 + $0xe0] sm:$0xff] }
  0x25   : > { %966 = vmatpush1.bf16.msra.mxu1 %v2072_v20  ;;  %v382_v0 = vpack.c.bf16 %v364_v59, %v363_v58  ;;  %v375_v4 = vpack.c.bf16 %v350_v63, %v349_v62  ;;  %v366_v6 = vld [vmem:[%s2355_s23 + $0xe8] sm:$0xff]  ;;  %v2102_v7 = vld [vmem:[%s2939_s3 + $0xb0] ss:$8 sps:$4 sm:$0xff]   ;;  %v2110_v13 = vld [vmem:[%s2939_s3 + $0xd4] ss:$8 sps:$4 sm:$0xff]  }
  0x26   : > { %967 = vmatprep.subr.bf16.mxu1 %v2077_v21  ;;  %v2107_v8 = vld [vmem:[%s2939_s3 + $0xc4] ss:$8 sps:$4 sm:$0xff]   ;;  %v351_v9 = vld [vmem:[%s2355_s23 + $0x70] sm:$0xff]  ;;  %v352_v10 = vld [vmem:[%s2355_s23 + $0x78] sm:$0xff]  ;;  %v383_v11 = vpack.c.bf16 %v366_v6, %v365_v5 }
  0x27   : > { %1931 = vmatmul.mubr.msk.bf16.gmra.mrb[4].mxu0 %vm421_vm0, %v370_v17  ;;  %v2105_v12 = vld [vmem:[%s2939_s3 + $0xc0] ss:$8 sps:$4 sm:$0xff]   ;;  %v376_v14 = vpack.c.bf16 %v352_v10, %v351_v9  ;;  %v367_v15 = vld [vmem:[%s2355_s23 + $0xf0] sm:$0xff]  ;;  %v368_v16 = vld [vmem:[%s2355_s23 + $0xf8] sm:$0xff]  ;;  %s328_s23 = scalar_lea.vmem [#allocation3], %s1923_s17 }
  0x28   : > { %522 = vmatprep.mubr.bf16.mxu0 %v2229_v3  ;;  %1939 = vmatmul.mubr.msk.bf16.gmra.mrb[4].mxu1 %vm421_vm0, %v378_v24  ;;  %v2108_v17 = vld [vmem:[%s2939_s3 + $0xd0] ss:$8 sps:$4 sm:$0xff]   ;;  %v384_v18 = vpack.c.bf16 %v368_v16, %v367_v15  ;;  %v2113_v19 = vld [vmem:[%s2939_s3 + $0xe4] ss:$8 sps:$4 sm:$0xff]   ;;  %v2116_v20 = vld [vmem:[%s2939_s3 + $0xf4] ss:$8 sps:$4 sm:$0xff]  }
  0x29   : > { %602 = vmatprep.mubr.bf16.mxu1 %v2229_v3  ;;  %968 = vmatpush1.bf16.msra.mxu1 %v2075_v25  ;;  %v2114_v21 = vld [vmem:[%s2939_s3 + $0xf0] ss:$8 sps:$4 sm:$0xff]   ;;  %v2516_v24 = vsub.s32 0, %v2513_v23  ;;  %v389_v25 = vld [vmem:[%s2938_s2] sm:$0x3]  ;;  %s1860_s18 = sshll.u32 %s328_s23, 4  ;;  %s2896_s18 = int_to_ptr.vmem [resolvable:$true] %s1860_s18 }
  0x2a   : > { %969 = vmatprep.subr.bf16.mxu1 %v2080_v26  ;;  %v2522_v26 = vsub.s32 1, %v2513_v23  ;;  %v2122_v39 = vld [vmem:[%s2941_s5 + $0x14] ss:$8 sps:$4 sm:$0xff]   ;;  %v2126_v16 = vld [vmem:[%s2941_s5 + $0x30] ss:$8 sps:$4 sm:$0xff]   ;;  %s2165_s28 = scalar_lea.vmem %s2896_s18, 32  ;;  %p2172_p0 = scmp.lt.s32.totalorder %s2896_s18, %s2170_s30 }
  0x2b   : > { %v2128_v5 = vld [vmem:[%s2941_s5 + $0x34] ss:$8 sps:$4 sm:$0xff]   ;;  %p2166_p11 = scmp.ne.s32.totalorder %s2896_s18, %s2165_s28  ;;  %p2173_p1 = scmp.lt.s32.totalorder %s2171_s10, %s2165_s28 }
  0x2c   : > { %v2528_v28 = vrot.slane %v389_v25, %v2522_v26 }
  0x2d   : > { %970 = vmatpush1.bf16.msra.mxu1 %v2078_v30  ;;  %p2167_p12 = pnand %p2166_p11, %p2320_p5  ;;  %p2174_p2 = por %p2173_p1, %p2172_p0 }
  0x2e   : > { %971 = vmatprep.subr.bf16.mxu1 %v2083_v31 }
  0x2f   : > { %1932 = vmatmul.mubr.msk.bf16.gmra.mrb[8].mxu0 %vm421_vm0, %v371_v27  ;;  %v2525_v27 = vrot.slane %v389_v25, %v2516_v24  ;;  %p2168_p13 = pneg %p2167_p12 }
  0x30   : > { %532 = vmatprep.mubr.bf16.mxu0 %v2229_v3  ;;  %1940 = vmatmul.mubr.msk.bf16.gmra.mrb[8].mxu1 %vm421_vm0, %v379_v34 }
  0x31   : > { %612 = vmatprep.mubr.bf16.mxu1 %v2229_v3  ;;  %972 = vmatpush1.bf16.msra.mxu1 %v2081_v35  ;;  %p2175_p3 = pnand %p2174_p2, %p2168_p13 }
  0x32   : > { %973 = vmatprep.subr.bf16.mxu1 %v2086_v36  ;;  %v2117_v36 = vld [vmem:[%s2941_s5] ss:$8 sps:$4 sm:$0xff]  }
  0x35   : > { %974 = vmatpush1.bf16.msra.mxu1 %v2084_v40 }
  0x36   : > { %975 = vmatprep.subr.bf16.mxu1 %v2089_v41 }
  0x37   : > { %1933 = vmatmul.mubr.msk.bf16.gmra.mrb[12].mxu0 %vm421_vm0, %v372_v37  ;;  %v2119_v37 = vld [vmem:[%s2941_s5 + $0x4] ss:$8 sps:$4 sm:$0xff]  }
  0x38   : > { %542 = vmatprep.mubr.bf16.mxu0 %v2229_v3  ;;  %1941 = vmatmul.mubr.msk.bf16.gmra.mrb[12].mxu1 %vm421_vm0, %v380_v45 }
  0x39   : > { %622 = vmatprep.mubr.bf16.mxu1 %v2229_v3  ;;  %976 = vmatpush1.bf16.msra.mxu1 %v2087_v44 }
  0x3a   : > { %977 = vmatprep.subr.bf16.mxu1 %v2092_v46  ;;  %1456 = vmatprep.subr.bf16.mxu0 %v2119_v37 }
  0x3b   : > { %1457 = vmatpush1.bf16.msra.mxu0 %v2117_v36 }
  0x3c   : > { %1458 = vmatprep.subr.bf16.mxu0 %v2122_v39 }
  0x3d   : > { %978 = vmatpush1.bf16.msra.mxu1 %v2090_v50 }
  0x3e   : > { %979 = vmatprep.subr.bf16.mxu1 %v2095_v51  ;;  %v2125_v51 = vld [vmem:[%s2941_s5 + $0x24] ss:$8 sps:$4 sm:$0xff]  }
  0x3f   : > { %1934 = vmatmul.mubr.msk.bf16.gmra.mrb[16].mxu0 %vm421_vm0, %v373_v47  ;;  %v2120_v47 = vld [vmem:[%s2941_s5 + $0x10] ss:$8 sps:$4 sm:$0xff]  }
  0x40   : > { %552 = vmatprep.mubr.bf16.mxu0 %v2229_v3  ;;  %1942 = vmatmul.mubr.msk.bf16.gmra.mrb[16].mxu1 %vm421_vm0, %v381_v54 }
  0x41   : > { %632 = vmatprep.mubr.bf16.mxu1 %v2229_v3  ;;  %980 = vmatpush1.bf16.msra.mxu1 %v2093_v55 }
  0x42   : > { %981 = vmatprep.subr.bf16.mxu1 %v2098_v56  ;;  %1459 = vmatpush1.bf16.msra.mxu0 %v2120_v47 }
  0x43   : > { %1460 = vmatprep.subr.bf16.mxu0 %v2125_v51 }
  0x45   : > { %982 = vmatpush1.bf16.msra.mxu1 %v2096_v60 }
  0x46   : > { %983 = vmatprep.subr.bf16.mxu1 %v2101_v61 }
  0x47   : > { %1935 = vmatmul.mubr.msk.bf16.gmra.mrb[20].mxu0 %vm421_vm0, %v374_v57 }
  0x48   : > { %562 = vmatprep.mubr.bf16.mxu0 %v2229_v3  ;;  %1943 = vmatmul.mubr.msk.bf16.gmra.mrb[20].mxu1 %vm421_vm0, %v382_v0  ;;  %v2123_v0 = vld [vmem:[%s2941_s5 + $0x20] ss:$8 sps:$4 sm:$0xff]  }
  0x49   : > { %642 = vmatprep.mubr.bf16.mxu1 %v2229_v3  ;;  %984 = vmatpush1.bf16.msra.mxu1 %v2099_v1 }
  0x4a   : > { %985 = vmatprep.subr.bf16.mxu1 %v2104_v2  ;;  %1461 = vmatpush1.bf16.msra.mxu0 %v2123_v0 }
  0x4b   : > { %1462 = vmatprep.subr.bf16.mxu0 %v2128_v5 }
  0x4d   : > { %986 = vmatpush1.bf16.msra.mxu1 %v2102_v7 }
  0x4e   : > { %987 = vmatprep.subr.bf16.mxu1 %v2107_v8  ;;  %1463 = vmatpush1.bf16.msra.mxu0 %v2126_v16 }
  0x4f   : > { %1936 = vmatmul.mubr.msk.bf16.gmra.mrb[24].mxu0 %vm421_vm0, %v375_v4 }
  0x50   : > { %572 = vmatprep.mubr.bf16.mxu0 %v2229_v3  ;;  %1944 = vmatmul.mubr.msk.bf16.gmra.mrb[24].mxu1 %vm421_vm0, %v383_v11 }
  0x51   : > { %652 = vmatprep.mubr.bf16.mxu1 %v2229_v3  ;;  %988 = vmatpush1.bf16.msra.mxu1 %v2105_v12  ;;  %v2111_v3 = vld [vmem:[%s2939_s3 + $0xe0] ss:$8 sps:$4 sm:$0xff]  }
  0x52   : > { %989 = vmatprep.subr.bf16.mxu1 %v2110_v13 }
  0x55   : > { %990 = vmatpush1.bf16.msra.mxu1 %v2108_v17 }
  0x56   : > { %991 = vmatprep.subr.bf16.mxu1 %v2113_v19 }
  0x57   : > { %1937 = vmatmul.mubr.msk.bf16.gmra.mrb[28].mxu0 %vm421_vm0, %v376_v14 }
  0x58   : > { %1945 = vmatmul.mubr.msk.bf16.gmra.mrb[28].mxu1 %vm421_vm0, %v384_v18 }
  0x59   : > { %992 = vmatpush1.bf16.msra.mxu1 %v2111_v3  ;;  %v2131_v3 = vld [vmem:[%s2941_s5 + $0x44] ss:$8 sps:$4 sm:$0xff]  }
  0x5a   : > { %993 = vmatprep.subr.bf16.mxu1 %v2116_v20  ;;  %1464 = vmatprep.subr.bf16.mxu0 %v2131_v3 }
  0x5d   : > { %994 = vmatpush1.bf16.msra.mxu1 %v2114_v21 }
  0xf2   : > { %v504_v29 = vpop.f32.mrb[0].mxu0 }
  0xf3   : > { %v505_v30 = vadd.f32 %v504_v29, %v2525_v27  ;;  %v506_v31 = vpop.f32.mrb[1].mxu0  ;;  %v584_v42 = vpop.f32.mrb[0].mxu1 }
  0xf4   : > { %v507_v32 = vadd.f32 %v506_v31, %v2528_v28  ;;  %v508_v33 = vpop.f32.mrb[2].mxu0  ;;  %v585_v45 = vadd.f32 %v584_v42, %v2525_v27  ;;  %v586_v46 = vpop.f32.mrb[1].mxu1  ;;  %v2134_v42 = vld [vmem:[%s2941_s5 + $0x54] ss:$8 sps:$4 sm:$0xff]  }
  0xf5   : > { %v509_v34 = vadd.f32 %v508_v33, %v2525_v27  ;;  %v510_v35 = vpop.f32.mrb[3].mxu0  ;;  %v663_v40 = vmax.f32 %v505_v30, 0.0  ;;  %v587_v49 = vadd.f32 %v586_v46, %v2528_v28  ;;  %v588_v50 = vpop.f32.mrb[2].mxu1 }
  0xf6   : > { %v511_v38 = vadd.f32 %v510_v35, %v2528_v28  ;;  %v664_v43 = vmax.f32 %v507_v32, 0.0  ;;  %v695_v54 = vmax.f32 %v585_v45, 0.0  ;;  %v589_v55 = vadd.f32 %v588_v50, %v2525_v27  ;;  %v590_v56 = vpop.f32.mrb[3].mxu1 }
  0xf7   : > { %v665_v41 = vmax.f32 %v509_v34, 0.0  ;;  %v696_v59 = vmax.f32 %v587_v49, 0.0  ;;  %v591_v60 = vadd.f32 %v590_v56, %v2528_v28 }
  0xf8   : > { %v666_v44 = vmax.f32 %v511_v38, 0.0  ;;  %v697_v63 = vmax.f32 %v589_v55, 0.0  ;;  %v2129_v38 = vld [vmem:[%s2941_s5 + $0x40] ss:$8 sps:$4 sm:$0xff]  }
  0xf9   : > { %v727_v48 = vpack.c.bf16 %v665_v41, %v663_v40  ;;  %v698_v4 = vmax.f32 %v591_v60, 0.0  ;;  %1465 = vmatpush1.bf16.msra.mxu0 %v2129_v38 }
  0xfa   : > { %v728_v52 = vpack.c.bf16 %v666_v44, %v664_v43  ;;  %v514_v53 = vpop.f32.mrb[4].mxu0  ;;  %v2563_v7 = vpack.c.bf16 %v697_v63, %v695_v54  ;;  %1466 = vmatprep.subr.bf16.mxu0 %v2134_v42 }
  0xfb   : > { %v515_v57 = vadd.f32 %v514_v53, %v2525_v27  ;;  %v516_v58 = vpop.f32.mrb[5].mxu0  ;;  %v2565_v10 = vpack.c.bf16 %v698_v4, %v696_v59  ;;  %v594_v11 = vpop.f32.mrb[4].mxu1  ;;  %v2132_v53 = vld [vmem:[%s2941_s5 + $0x50] ss:$8 sps:$4 sm:$0xff]  }
  0xfc   : > { %v517_v61 = vadd.f32 %v516_v58, %v2528_v28  ;;  %v518_v62 = vpop.f32.mrb[6].mxu0  ;;  %995 = vmatprep.mubr.bf16.mxu1 %v728_v52  ;;  %v595_v14 = vadd.f32 %v594_v11, %v2525_v27  ;;  %v596_v15 = vpop.f32.mrb[5].mxu1 }
  0xfd   : > { %v519_v1 = vadd.f32 %v518_v62, %v2525_v27  ;;  %v520_v2 = vpop.f32.mrb[7].mxu0  ;;  %996 = vmatmul.mubr.bf16.vlgmr.msra.gmra.mrb[32].mxu1 %v727_v48  ;;  %v667_v8 = vmax.f32 %v515_v57, 0.0  ;;  %v597_v18 = vadd.f32 %v596_v15, %v2528_v28  ;;  %v598_v19 = vpop.f32.mrb[6].mxu1  ;;  %v2137_v57 = vld [vmem:[%s2941_s5 + $0x64] ss:$8 sps:$4 sm:$0xff]   ;;  %1467 = vmatpush1.bf16.msra.mxu0 %v2132_v53 }
  0xfe   : > { %v521_v6 = vadd.f32 %v520_v2, %v2528_v28  ;;  %v668_v12 = vmax.f32 %v517_v61, 0.0  ;;  %v699_v25 = vmax.f32 %v595_v14, 0.0  ;;  %v599_v29 = vadd.f32 %v598_v19, %v2525_v27  ;;  %v600_v30 = vpop.f32.mrb[7].mxu1  ;;  %1468 = vmatprep.subr.bf16.mxu0 %v2137_v57 }
  0xff   : > { %v669_v9 = vmax.f32 %v519_v1, 0.0  ;;  %v700_v33 = vmax.f32 %v597_v18, 0.0  ;;  %v601_v34 = vadd.f32 %v600_v30, %v2528_v28 }
 0x100   : > { %v670_v13 = vmax.f32 %v521_v6, 0.0  ;;  %v701_v37 = vmax.f32 %v599_v29, 0.0  ;;  %v2138_v29 = vld [vmem:[%s2941_s5 + $0x70] ss:$8 sps:$4 sm:$0xff]  }
 0x101   : > { %v729_v17 = vpack.c.bf16 %v669_v9, %v667_v8  ;;  %v702_v41 = vmax.f32 %v601_v34, 0.0  ;;  %v2135_v8 = vld [vmem:[%s2941_s5 + $0x60] ss:$8 sps:$4 sm:$0xff]  }
 0x102   : > { %v730_v20 = vpack.c.bf16 %v670_v13, %v668_v12  ;;  %v524_v21 = vpop.f32.mrb[8].mxu0  ;;  %v2587_v44 = vpack.c.bf16 %v701_v37, %v699_v25  ;;  %v2140_v13 = vld [vmem:[%s2941_s5 + $0x74] ss:$8 sps:$4 sm:$0xff]   ;;  %1469 = vmatpush1.bf16.msra.mxu0 %v2135_v8 }
 0x103   : > { %v525_v31 = vadd.f32 %v524_v21, %v2525_v27  ;;  %v526_v32 = vpop.f32.mrb[9].mxu0  ;;  %v2589_v47 = vpack.c.bf16 %v702_v41, %v700_v33  ;;  %v604_v48 = vpop.f32.mrb[8].mxu1  ;;  %1470 = vmatprep.subr.bf16.mxu0 %v2140_v13  ;;  %v2143_v33 = vld [vmem:[%s2941_s5 + $0x84] ss:$8 sps:$4 sm:$0xff]  }
 0x104   : > { %v527_v35 = vadd.f32 %v526_v32, %v2528_v28  ;;  %v528_v36 = vpop.f32.mrb[10].mxu0  ;;  %1005 = vmatprep.mubr.bf16.mxu1 %v730_v20  ;;  %v605_v51 = vadd.f32 %v604_v48, %v2525_v27  ;;  %v606_v52 = vpop.f32.mrb[9].mxu1  ;;  %v2141_v48 = vld [vmem:[%s2941_s5 + $0x80] ss:$8 sps:$4 sm:$0xff]  }
 0x105   : > { %v529_v39 = vadd.f32 %v528_v36, %v2525_v27  ;;  %v530_v40 = vpop.f32.mrb[11].mxu0  ;;  %1006 = vmatmul.mubr.bf16.gmra.mrb[36].mxu1 %v729_v17  ;;  %v671_v45 = vmax.f32 %v525_v31, 0.0  ;;  %v607_v55 = vadd.f32 %v606_v52, %v2528_v28  ;;  %v608_v56 = vpop.f32.mrb[10].mxu1  ;;  %v2146_v52 = vld [vmem:[%s2941_s5 + $0x94] ss:$8 sps:$4 sm:$0xff]  }
 0x106   : > { %v531_v43 = vadd.f32 %v530_v40, %v2528_v28  ;;  %v672_v49 = vmax.f32 %v527_v35, 0.0  ;;  %v703_v60 = vmax.f32 %v605_v51, 0.0  ;;  %v609_v61 = vadd.f32 %v608_v56, %v2525_v27  ;;  %v610_v62 = vpop.f32.mrb[11].mxu1  ;;  %1471 = vmatpush1.bf16.msra.mxu0 %v2138_v29 }
 0x107   : > { %v673_v46 = vmax.f32 %v529_v39, 0.0  ;;  %v704_v1 = vmax.f32 %v607_v55, 0.0  ;;  %v611_v2 = vadd.f32 %v610_v62, %v2528_v28  ;;  %1472 = vmatprep.subr.bf16.mxu0 %v2143_v33 }
 0x108   : > { %v674_v50 = vmax.f32 %v531_v43, 0.0  ;;  %v705_v6 = vmax.f32 %v609_v61, 0.0 }
 0x109   : > { %v731_v54 = vpack.c.bf16 %v673_v46, %v671_v45  ;;  %v706_v12 = vmax.f32 %v611_v2, 0.0 }
 0x10a   : > { %v732_v58 = vpack.c.bf16 %v674_v50, %v672_v49  ;;  %v534_v59 = vpop.f32.mrb[12].mxu0  ;;  %v2611_v15 = vpack.c.bf16 %v705_v6, %v703_v60  ;;  %1473 = vmatpush1.bf16.msra.mxu0 %v2141_v48 }
 0x10b   : > { %v535_v63 = vadd.f32 %v534_v59, %v2525_v27  ;;  %v536_v0 = vpop.f32.mrb[13].mxu0  ;;  %v2613_v18 = vpack.c.bf16 %v706_v12, %v704_v1  ;;  %v614_v19 = vpop.f32.mrb[12].mxu1  ;;  %1474 = vmatprep.subr.bf16.mxu0 %v2146_v52 }
 0x10c   : > { %v537_v4 = vadd.f32 %v536_v0, %v2528_v28  ;;  %v538_v5 = vpop.f32.mrb[14].mxu0  ;;  %1015 = vmatprep.mubr.bf16.mxu1 %v732_v58  ;;  %v615_v21 = vadd.f32 %v614_v19, %v2525_v27  ;;  %v616_v25 = vpop.f32.mrb[13].mxu1 }
 0x10d   : > { %v539_v9 = vadd.f32 %v538_v5, %v2525_v27  ;;  %v540_v11 = vpop.f32.mrb[15].mxu0  ;;  %1016 = vmatmul.mubr.bf16.gmra.mrb[40].mxu1 %v731_v54  ;;  %v675_v16 = vmax.f32 %v535_v63, 0.0  ;;  %v617_v31 = vadd.f32 %v616_v25, %v2528_v28  ;;  %v618_v32 = vpop.f32.mrb[14].mxu1  ;;  %v2144_v63 = vld [vmem:[%s2941_s5 + $0x90] ss:$8 sps:$4 sm:$0xff]  }
 0x10e   : > { %v541_v14 = vadd.f32 %v540_v11, %v2528_v28  ;;  %v676_v3 = vmax.f32 %v537_v4, 0.0  ;;  %v707_v36 = vmax.f32 %v615_v21, 0.0  ;;  %v619_v37 = vadd.f32 %v618_v32, %v2525_v27  ;;  %v620_v38 = vpop.f32.mrb[15].mxu1  ;;  %v2149_v4 = vld [vmem:[%s2941_s5 + $0xa4] ss:$8 sps:$4 sm:$0xff]   ;;  %1475 = vmatpush1.bf16.msra.mxu0 %v2144_v63 }
 0x10f   : > { %v677_v17 = vmax.f32 %v539_v9, 0.0  ;;  %v708_v41 = vmax.f32 %v617_v31, 0.0  ;;  %v621_v42 = vadd.f32 %v620_v38, %v2528_v28  ;;  %1476 = vmatprep.subr.bf16.mxu0 %v2149_v4 }
 0x110   : > { %v678_v20 = vmax.f32 %v541_v14, 0.0  ;;  %v709_v46 = vmax.f32 %v619_v37, 0.0 }
 0x111   : > { %v733_v30 = vpack.c.bf16 %v677_v17, %v675_v16  ;;  %v710_v51 = vmax.f32 %v621_v42, 0.0 }
 0x112   : > { %v734_v34 = vpack.c.bf16 %v678_v20, %v676_v3  ;;  %v544_v35 = vpop.f32.mrb[16].mxu0  ;;  %v2635_v54 = vpack.c.bf16 %v709_v46, %v707_v36  ;;  %v2147_v20 = vld [vmem:[%s2941_s5 + $0xa0] ss:$8 sps:$4 sm:$0xff]   ;;  %v2155_v46 = vld [vmem:[%s2941_s5 + $0xc4] ss:$8 sps:$4 sm:$0xff]  }
 0x113   : > { %v545_v39 = vadd.f32 %v544_v35, %v2525_v27  ;;  %v546_v40 = vpop.f32.mrb[17].mxu0  ;;  %v2637_v57 = vpack.c.bf16 %v710_v51, %v708_v41  ;;  %v624_v58 = vpop.f32.mrb[16].mxu1  ;;  %1477 = vmatpush1.bf16.msra.mxu0 %v2147_v20  ;;  %v2150_v41 = vld [vmem:[%s2941_s5 + $0xb0] ss:$8 sps:$4 sm:$0xff]  }
 0x114   : > { %v547_v43 = vadd.f32 %v546_v40, %v2528_v28  ;;  %v548_v45 = vpop.f32.mrb[18].mxu0  ;;  %1025 = vmatprep.mubr.bf16.mxu1 %v734_v34  ;;  %v625_v61 = vadd.f32 %v624_v58, %v2525_v27  ;;  %v626_v62 = vpop.f32.mrb[17].mxu1 }
 0x115   : > { %v549_v49 = vadd.f32 %v548_v45, %v2525_v27  ;;  %v550_v50 = vpop.f32.mrb[19].mxu0  ;;  %1026 = vmatmul.mubr.bf16.gmra.mrb[44].mxu1 %v733_v30  ;;  %v679_v55 = vmax.f32 %v545_v39, 0.0  ;;  %v627_v1 = vadd.f32 %v626_v62, %v2528_v28  ;;  %v628_v2 = vpop.f32.mrb[18].mxu1  ;;  %v2152_v30 = vld [vmem:[%s2941_s5 + $0xb4] ss:$8 sps:$4 sm:$0xff]  }
 0x116   : > { %v551_v53 = vadd.f32 %v550_v50, %v2528_v28  ;;  %v680_v59 = vmax.f32 %v547_v43, 0.0  ;;  %v711_v8 = vmax.f32 %v625_v61, 0.0  ;;  %v629_v9 = vadd.f32 %v628_v2, %v2525_v27  ;;  %v630_v11 = vpop.f32.mrb[19].mxu1  ;;  %1478 = vmatprep.subr.bf16.mxu0 %v2152_v30  ;;  %v2153_v62 = vld [vmem:[%s2941_s5 + $0xc0] ss:$8 sps:$4 sm:$0xff]  }
 0x117   : > { %v681_v56 = vmax.f32 %v549_v49, 0.0  ;;  %v712_v14 = vmax.f32 %v627_v1, 0.0  ;;  %v631_v16 = vadd.f32 %v630_v11, %v2528_v28  ;;  %1479 = vmatpush1.bf16.msra.mxu0 %v2150_v41  ;;  %v2158_v2 = vld [vmem:[%s2941_s5 + $0xd4] ss:$8 sps:$4 sm:$0xff]  }
 0x118   : > { %v682_v60 = vmax.f32 %v551_v53, 0.0  ;;  %v713_v3 = vmax.f32 %v629_v9, 0.0  ;;  %1480 = vmatprep.subr.bf16.mxu0 %v2155_v46 }
 0x119   : > { %v735_v0 = vpack.c.bf16 %v681_v56, %v679_v55  ;;  %v714_v29 = vmax.f32 %v631_v16, 0.0 }
 0x11a   : > { %v736_v5 = vpack.c.bf16 %v682_v60, %v680_v59  ;;  %v554_v6 = vpop.f32.mrb[20].mxu0  ;;  %v2659_v32 = vpack.c.bf16 %v713_v3, %v711_v8 }
 0x11b   : > { %v555_v12 = vadd.f32 %v554_v6, %v2525_v27  ;;  %v556_v13 = vpop.f32.mrb[21].mxu0  ;;  %v2661_v35 = vpack.c.bf16 %v714_v29, %v712_v14  ;;  %v634_v36 = vpop.f32.mrb[20].mxu1  ;;  %1481 = vmatpush1.bf16.msra.mxu0 %v2153_v62 }
 0x11c   : > { %v557_v17 = vadd.f32 %v556_v13, %v2528_v28  ;;  %v558_v19 = vpop.f32.mrb[22].mxu0  ;;  %1035 = vmatprep.mubr.bf16.mxu1 %v736_v5  ;;  %v635_v39 = vadd.f32 %v634_v36, %v2525_v27  ;;  %v636_v40 = vpop.f32.mrb[21].mxu1  ;;  %1482 = vmatprep.subr.bf16.mxu0 %v2158_v2 }
 0x11d   : > { %v559_v21 = vadd.f32 %v558_v19, %v2525_v27  ;;  %v560_v25 = vpop.f32.mrb[23].mxu0  ;;  %1036 = vmatmul.mubr.bf16.gmra.mrb[48].mxu1 %v735_v0  ;;  %v683_v33 = vmax.f32 %v555_v12, 0.0  ;;  %v637_v43 = vadd.f32 %v636_v40, %v2528_v28  ;;  %v638_v45 = vpop.f32.mrb[22].mxu1 }
 0x11e   : > { %v561_v31 = vadd.f32 %v560_v25, %v2528_v28  ;;  %v684_v37 = vmax.f32 %v557_v17, 0.0  ;;  %v715_v50 = vmax.f32 %v635_v39, 0.0  ;;  %v639_v51 = vadd.f32 %v638_v45, %v2525_v27  ;;  %v640_v52 = vpop.f32.mrb[23].mxu1  ;;  %v2156_v17 = vld [vmem:[%s2941_s5 + $0xd0] ss:$8 sps:$4 sm:$0xff]  }
 0x11f   : > { %v685_v34 = vmax.f32 %v559_v21, 0.0  ;;  %v716_v56 = vmax.f32 %v637_v43, 0.0  ;;  %v641_v58 = vadd.f32 %v640_v52, %v2528_v28  ;;  %1483 = vmatpush1.bf16.msra.mxu0 %v2156_v17 }
 0x120   : > { %v686_v38 = vmax.f32 %v561_v31, 0.0  ;;  %v717_v61 = vmax.f32 %v639_v51, 0.0 }
 0x121   : > { %v737_v42 = vpack.c.bf16 %v685_v34, %v683_v33  ;;  %v718_v1 = vmax.f32 %v641_v58, 0.0 }
 0x122   : > { %v738_v48 = vpack.c.bf16 %v686_v38, %v684_v37  ;;  %v564_v49 = vpop.f32.mrb[24].mxu0  ;;  %v2683_v5 = vpack.c.bf16 %v717_v61, %v715_v50 }
 0x123   : > { %v565_v53 = vadd.f32 %v564_v49, %v2525_v27  ;;  %v566_v55 = vpop.f32.mrb[25].mxu0  ;;  %v2685_v9 = vpack.c.bf16 %v718_v1, %v716_v56  ;;  %v644_v11 = vpop.f32.mrb[24].mxu1 }
 0x124   : > { %v567_v59 = vadd.f32 %v566_v55, %v2528_v28  ;;  %v568_v60 = vpop.f32.mrb[26].mxu0  ;;  %1045 = vmatprep.mubr.bf16.mxu1 %v738_v48  ;;  %v645_v14 = vadd.f32 %v644_v11, %v2525_v27  ;;  %v646_v16 = vpop.f32.mrb[25].mxu1 }
 0x125   : > { %v569_v63 = vadd.f32 %v568_v60, %v2525_v27  ;;  %v570_v0 = vpop.f32.mrb[27].mxu0  ;;  %1046 = vmatmul.mubr.bf16.gmra.mrb[52].mxu1 %v737_v42  ;;  %v687_v6 = vmax.f32 %v565_v53, 0.0  ;;  %v647_v3 = vadd.f32 %v646_v16, %v2528_v28  ;;  %v648_v20 = vpop.f32.mrb[26].mxu1 }
 0x126   : > { %v571_v4 = vadd.f32 %v570_v0, %v2528_v28  ;;  %v688_v12 = vmax.f32 %v567_v59, 0.0  ;;  %v719_v29 = vmax.f32 %v645_v14, 0.0  ;;  %v649_v30 = vadd.f32 %v648_v20, %v2525_v27  ;;  %v650_v31 = vpop.f32.mrb[27].mxu1 }
 0x127   : > { %v689_v8 = vmax.f32 %v569_v63, 0.0  ;;  %v720_v36 = vmax.f32 %v647_v3, 0.0  ;;  %v651_v37 = vadd.f32 %v650_v31, %v2528_v28 }
 0x128   : > { %v690_v13 = vmax.f32 %v571_v4, 0.0  ;;  %v721_v40 = vmax.f32 %v649_v30, 0.0 }
 0x129   : > { %v739_v19 = vpack.c.bf16 %v689_v8, %v687_v6  ;;  %v722_v43 = vmax.f32 %v651_v37, 0.0 }
 0x12a   : > { %v740_v21 = vpack.c.bf16 %v690_v13, %v688_v12  ;;  %v574_v25 = vpop.f32.mrb[28].mxu0  ;;  %v755_v46 = vpack.c.bf16 %v721_v40, %v719_v29 }
 0x12b   : > { %v575_v33 = vadd.f32 %v574_v25, %v2525_v27  ;;  %v576_v34 = vpop.f32.mrb[29].mxu0  ;;  %v756_v50 = vpack.c.bf16 %v722_v43, %v720_v36  ;;  %v654_v51 = vpop.f32.mrb[28].mxu1 }
 0x12c   : > { %v577_v38 = vadd.f32 %v576_v34, %v2528_v28  ;;  %v578_v39 = vpop.f32.mrb[30].mxu0  ;;  %1055 = vmatprep.mubr.bf16.mxu1 %v740_v21  ;;  %v655_v55 = vadd.f32 %v654_v51, %v2525_v27  ;;  %v656_v56 = vpop.f32.mrb[29].mxu1 }
 0x12d   : > { %v579_v41 = vadd.f32 %v578_v39, %v2525_v27  ;;  %v580_v42 = vpop.f32.mrb[31].mxu0  ;;  %1056 = vmatmul.mubr.bf16.gmra.mrb[56].mxu1 %v739_v19  ;;  %v691_v48 = vmax.f32 %v575_v33, 0.0  ;;  %v657_v59 = vadd.f32 %v656_v56, %v2528_v28  ;;  %v658_v60 = vpop.f32.mrb[30].mxu1 }
 0x12e   : > { %v581_v45 = vadd.f32 %v580_v42, %v2528_v28  ;;  %v692_v52 = vmax.f32 %v577_v38, 0.0  ;;  %v723_v62 = vmax.f32 %v655_v55, 0.0  ;;  %v659_v63 = vadd.f32 %v658_v60, %v2525_v27  ;;  %v660_v0 = vpop.f32.mrb[31].mxu1  ;;  %v2161_v27 = vld [vmem:[%s2941_s5 + $0xe4] ss:$8 sps:$4 sm:$0xff]  }
 0x12f   : > { %v693_v49 = vmax.f32 %v579_v41, 0.0  ;;  %v724_v1 = vmax.f32 %v657_v59, 0.0  ;;  %v661_v2 = vadd.f32 %v660_v0, %v2528_v28  ;;  %v2159_v28 = vld [vmem:[%s2941_s5 + $0xe0] ss:$8 sps:$4 sm:$0xff]   ;;  %1484 = vmatprep.subr.bf16.mxu0 %v2161_v27 }
 0x130   : > { %v694_v53 = vmax.f32 %v581_v45, 0.0  ;;  %v725_v4 = vmax.f32 %v659_v63, 0.0  ;;  %1485 = vmatpush1.bf16.msra.mxu0 %v2159_v28 }
 0x131   : > { %v741_v58 = vpack.c.bf16 %v693_v49, %v691_v48  ;;  %v726_v6 = vmax.f32 %v661_v2, 0.0 }
 0x132   : > { %v742_v61 = vpack.c.bf16 %v694_v53, %v692_v52  ;;  %v757_v8 = vpack.c.bf16 %v725_v4, %v723_v62 }
 0x133   : > { %v758_v11 = vpack.c.bf16 %v726_v6, %v724_v1 }
 0x134   : > { %1065 = vmatprep.mubr.bf16.mxu1 %v742_v61 }
 0x135   : > { %1066 = vmatmul.mubr.bf16.gmra.mrb[60].mxu1 %v741_v58 }
 0x136   : > { %1075 = vmatprep.mubr.bf16.mxu1 %v2565_v10  ;;  %v2162_v10 = vld [vmem:[%s2941_s5 + $0xf0] ss:$8 sps:$4 sm:$0xff]  }
 0x13d   : > { %1076 = vmatmul.mubr.bf16.gmra.mrb[64].mxu1 %v2563_v7  ;;  %v2164_v7 = vld [vmem:[%s2941_s5 + $0xf4] ss:$8 sps:$4 sm:$0xff]  }
 0x13e   : > { %1085 = vmatprep.mubr.bf16.mxu1 %v2589_v47  ;;  %1486 = vmatprep.subr.bf16.mxu0 %v2164_v7 }
 0x13f   : > { %1487 = vmatpush1.bf16.msra.mxu0 %v2162_v10 }
 0x145   : > { %1086 = vmatmul.mubr.bf16.gmra.mrb[68].mxu1 %v2587_v44  ;;  %v791_v44 = vld [vmem:[%s2940_s4] sm:$0x3] }
 0x146   : > { %1095 = vmatprep.mubr.bf16.mxu1 %v2613_v18  ;;  %v2730_v47 = vrot.slane %v791_v44, %v2516_v24 }
 0x14d   : > { %1096 = vmatmul.mubr.bf16.gmra.mrb[72].mxu1 %v2611_v15  ;;  %v2733_v15 = vrot.slane %v791_v44, %v2522_v26 }
 0x14e   : > { %1105 = vmatprep.mubr.bf16.mxu1 %v2637_v57 }
 0x155   : > { %1106 = vmatmul.mubr.bf16.gmra.mrb[76].mxu1 %v2635_v54 }
 0x156   : > { %1115 = vmatprep.mubr.bf16.mxu1 %v2661_v35 }
 0x15d   : > { %1116 = vmatmul.mubr.bf16.gmra.mrb[80].mxu1 %v2659_v32 }
 0x15e   : > { %1125 = vmatprep.mubr.bf16.mxu1 %v2685_v9 }
 0x165   : > { %1126 = vmatmul.mubr.bf16.gmra.mrb[84].mxu1 %v2683_v5 }
 0x166   : > { %1135 = vmatprep.mubr.bf16.mxu1 %v756_v50 }
 0x16d   : > { %1136 = vmatmul.mubr.bf16.gmra.mrb[88].mxu1 %v755_v46 }
 0x16e   : > { %1145 = vmatprep.mubr.bf16.mxu1 %v758_v11 }
 0x175   : > { %1146 = vmatmul.mubr.bf16.gmra.mrb[92].mxu1 %v757_v8 }
 0x1d0   : > { %v997_v18 = vpop.f32.mrb[32].mxu1 }
 0x1d1   : > { %v998_v54 = vadd.f32 %v997_v18, %v2730_v47  ;;  %v999_v57 = vpop.f32.mrb[33].mxu1 }
 0x1d2   : > { %v1000_v32 = vadd.f32 %v999_v57, %v2733_v15  ;;  %v1001_v35 = vpop.f32.mrb[34].mxu1 }
 0x1d3   : > { %v1002_v5 = vadd.f32 %v1001_v35, %v2730_v47  ;;  %v1003_v9 = vpop.f32.mrb[35].mxu1  ;;  %v1156_v13 = vmax.f32 %v998_v54, 0.0 }
 0x1d4   : > { %v1004_v12 = vadd.f32 %v1003_v9, %v2733_v15  ;;  %v1157_v16 = vmax.f32 %v1000_v32, 0.0 }
 0x1d5   : > { %v1158_v14 = vmax.f32 %v1002_v5, 0.0 }
 0x1d6   : > { %v1159_v17 = vmax.f32 %v1004_v12, 0.0 }
 0x1d7   : > { %v1220_v19 = vpack.c.bf16 %v1158_v14, %v1156_v13 }
 0x1d8   : > { %v1221_v3 = vpack.c.bf16 %v1159_v17, %v1157_v16  ;;  %v1007_v20 = vpop.f32.mrb[36].mxu1 }
 0x1d9   : > { %v1008_v21 = vadd.f32 %v1007_v20, %v2730_v47  ;;  %v1009_v25 = vpop.f32.mrb[37].mxu1 }
 0x1da   : > { %v1010_v29 = vadd.f32 %v1009_v25, %v2733_v15  ;;  %v1011_v30 = vpop.f32.mrb[38].mxu1  ;;  %1488 = vmatprep.mubr.bf16.mxu0 %v1221_v3 }
 0x1db   : > { %v1012_v31 = vadd.f32 %v1011_v30, %v2730_v47  ;;  %v1013_v33 = vpop.f32.mrb[39].mxu1  ;;  %1489 = vmatmul.mubr.bf16.vlgmr.msra.gmra.mrb[32].mxu0 %v1220_v19  ;;  %v1160_v36 = vmax.f32 %v1008_v21, 0.0 }
 0x1dc   : > { %v1014_v34 = vadd.f32 %v1013_v33, %v2733_v15  ;;  %v1161_v38 = vmax.f32 %v1010_v29, 0.0 }
 0x1dd   : > { %v1162_v37 = vmax.f32 %v1012_v31, 0.0 }
 0x1de   : > { %v1163_v39 = vmax.f32 %v1014_v34, 0.0 }
 0x1df   : > { %v1222_v40 = vpack.c.bf16 %v1162_v37, %v1160_v36 }
 0x1e0   : > { %v1223_v41 = vpack.c.bf16 %v1163_v39, %v1161_v38  ;;  %v1017_v42 = vpop.f32.mrb[40].mxu1 }
 0x1e1   : > { %v1018_v43 = vadd.f32 %v1017_v42, %v2730_v47  ;;  %v1019_v45 = vpop.f32.mrb[41].mxu1 }
 0x1e2   : > { %v1020_v46 = vadd.f32 %v1019_v45, %v2733_v15  ;;  %v1021_v48 = vpop.f32.mrb[42].mxu1  ;;  %1498 = vmatprep.mubr.bf16.mxu0 %v1223_v41 }
 0x1e3   : > { %v1022_v49 = vadd.f32 %v1021_v48, %v2730_v47  ;;  %v1023_v50 = vpop.f32.mrb[43].mxu1  ;;  %1499 = vmatmul.mubr.bf16.gmra.mrb[36].mxu0 %v1222_v40  ;;  %v1164_v52 = vmax.f32 %v1018_v43, 0.0 }
 0x1e4   : > { %v1024_v51 = vadd.f32 %v1023_v50, %v2733_v15  ;;  %v1165_v55 = vmax.f32 %v1020_v46, 0.0 }
 0x1e5   : > { %v1166_v53 = vmax.f32 %v1022_v49, 0.0 }
 0x1e6   : > { %v1167_v56 = vmax.f32 %v1024_v51, 0.0 }
 0x1e7   : > { %v1224_v58 = vpack.c.bf16 %v1166_v53, %v1164_v52 }
 0x1e8   : > { %v1225_v59 = vpack.c.bf16 %v1167_v56, %v1165_v55  ;;  %v1027_v60 = vpop.f32.mrb[44].mxu1 }
 0x1e9   : > { %v1028_v61 = vadd.f32 %v1027_v60, %v2730_v47  ;;  %v1029_v62 = vpop.f32.mrb[45].mxu1 }
 0x1ea   : > { %v1030_v63 = vadd.f32 %v1029_v62, %v2733_v15  ;;  %v1031_v0 = vpop.f32.mrb[46].mxu1  ;;  %1508 = vmatprep.mubr.bf16.mxu0 %v1225_v59 }
 0x1eb   : > { %v1032_v1 = vadd.f32 %v1031_v0, %v2730_v47  ;;  %v1033_v2 = vpop.f32.mrb[47].mxu1  ;;  %1509 = vmatmul.mubr.bf16.gmra.mrb[40].mxu0 %v1224_v58  ;;  %v1168_v6 = vmax.f32 %v1028_v61, 0.0 }
 0x1ec   : > { %v1034_v4 = vadd.f32 %v1033_v2, %v2733_v15  ;;  %v1169_v11 = vmax.f32 %v1030_v63, 0.0 }
 0x1ed   : > { %v1170_v8 = vmax.f32 %v1032_v1, 0.0 }
 0x1ee   : > { %v1171_v27 = vmax.f32 %v1034_v4, 0.0 }
 0x1ef   : > { %v1226_v28 = vpack.c.bf16 %v1170_v8, %v1168_v6 }
 0x1f0   : > { %v1227_v7 = vpack.c.bf16 %v1171_v27, %v1169_v11  ;;  %v1037_v10 = vpop.f32.mrb[48].mxu1 }
 0x1f1   : > { %v1038_v44 = vadd.f32 %v1037_v10, %v2730_v47  ;;  %v1039_v18 = vpop.f32.mrb[49].mxu1 }
 0x1f2   : > { %v1040_v54 = vadd.f32 %v1039_v18, %v2733_v15  ;;  %v1041_v57 = vpop.f32.mrb[50].mxu1  ;;  %1518 = vmatprep.mubr.bf16.mxu0 %v1227_v7 }
 0x1f3   : > { %v1042_v32 = vadd.f32 %v1041_v57, %v2730_v47  ;;  %v1043_v35 = vpop.f32.mrb[51].mxu1  ;;  %1519 = vmatmul.mubr.bf16.gmra.mrb[44].mxu0 %v1226_v28  ;;  %v1172_v9 = vmax.f32 %v1038_v44, 0.0 }
 0x1f4   : > { %v1044_v5 = vadd.f32 %v1043_v35, %v2733_v15  ;;  %v1173_v13 = vmax.f32 %v1040_v54, 0.0 }
 0x1f5   : > { %v1174_v12 = vmax.f32 %v1042_v32, 0.0 }
 0x1f6   : > { %v1175_v14 = vmax.f32 %v1044_v5, 0.0 }
 0x1f7   : > { %v1228_v16 = vpack.c.bf16 %v1174_v12, %v1172_v9 }
 0x1f8   : > { %v1229_v17 = vpack.c.bf16 %v1175_v14, %v1173_v13  ;;  %v1047_v19 = vpop.f32.mrb[52].mxu1 }
 0x1f9   : > { %v1048_v3 = vadd.f32 %v1047_v19, %v2730_v47  ;;  %v1049_v20 = vpop.f32.mrb[53].mxu1 }
 0x1fa   : > { %v1050_v21 = vadd.f32 %v1049_v20, %v2733_v15  ;;  %v1051_v25 = vpop.f32.mrb[54].mxu1  ;;  %1528 = vmatprep.mubr.bf16.mxu0 %v1229_v17 }
 0x1fb   : > { %v1052_v29 = vadd.f32 %v1051_v25, %v2730_v47  ;;  %v1053_v30 = vpop.f32.mrb[55].mxu1  ;;  %1529 = vmatmul.mubr.bf16.gmra.mrb[48].mxu0 %v1228_v16  ;;  %v1176_v33 = vmax.f32 %v1048_v3, 0.0 }
 0x1fc   : > { %v1054_v31 = vadd.f32 %v1053_v30, %v2733_v15  ;;  %v1177_v36 = vmax.f32 %v1050_v21, 0.0 }
 0x1fd   : > { %v1178_v34 = vmax.f32 %v1052_v29, 0.0 }
 0x1fe   : > { %v1179_v37 = vmax.f32 %v1054_v31, 0.0 }
 0x1ff   : > { %v1230_v38 = vpack.c.bf16 %v1178_v34, %v1176_v33 }
 0x200   : > { %v1231_v39 = vpack.c.bf16 %v1179_v37, %v1177_v36  ;;  %v1057_v40 = vpop.f32.mrb[56].mxu1 }
 0x201   : > { %v1058_v41 = vadd.f32 %v1057_v40, %v2730_v47  ;;  %v1059_v42 = vpop.f32.mrb[57].mxu1 }
 0x202   : > { %v1060_v43 = vadd.f32 %v1059_v42, %v2733_v15  ;;  %v1061_v45 = vpop.f32.mrb[58].mxu1  ;;  %1538 = vmatprep.mubr.bf16.mxu0 %v1231_v39 }
 0x203   : > { %v1062_v46 = vadd.f32 %v1061_v45, %v2730_v47  ;;  %v1063_v48 = vpop.f32.mrb[59].mxu1  ;;  %1539 = vmatmul.mubr.bf16.gmra.mrb[52].mxu0 %v1230_v38  ;;  %v1180_v50 = vmax.f32 %v1058_v41, 0.0 }
 0x204   : > { %v1064_v49 = vadd.f32 %v1063_v48, %v2733_v15  ;;  %v1181_v52 = vmax.f32 %v1060_v43, 0.0 }
 0x205   : > { %v1182_v51 = vmax.f32 %v1062_v46, 0.0 }
 0x206   : > { %v1183_v53 = vmax.f32 %v1064_v49, 0.0 }
 0x207   : > { %v1232_v55 = vpack.c.bf16 %v1182_v51, %v1180_v50 }
 0x208   : > { %v1233_v56 = vpack.c.bf16 %v1183_v53, %v1181_v52  ;;  %v1067_v58 = vpop.f32.mrb[60].mxu1 }
 0x209   : > { %v1068_v59 = vadd.f32 %v1067_v58, %v2730_v47  ;;  %v1069_v60 = vpop.f32.mrb[61].mxu1 }
 0x20a   : > { %v1070_v61 = vadd.f32 %v1069_v60, %v2733_v15  ;;  %v1071_v62 = vpop.f32.mrb[62].mxu1  ;;  %1548 = vmatprep.mubr.bf16.mxu0 %v1233_v56 }
 0x20b   : > { %v1072_v63 = vadd.f32 %v1071_v62, %v2730_v47  ;;  %v1073_v0 = vpop.f32.mrb[63].mxu1  ;;  %1549 = vmatmul.mubr.bf16.gmra.mrb[56].mxu0 %v1232_v55  ;;  %v1184_v2 = vmax.f32 %v1068_v59, 0.0 }
 0x20c   : > { %v1074_v1 = vadd.f32 %v1073_v0, %v2733_v15  ;;  %v1185_v6 = vmax.f32 %v1070_v61, 0.0 }
 0x20d   : > { %v1186_v4 = vmax.f32 %v1072_v63, 0.0 }
 0x20e   : > { %v1187_v8 = vmax.f32 %v1074_v1, 0.0 }
 0x20f   : > { %v1234_v11 = vpack.c.bf16 %v1186_v4, %v1184_v2 }
 0x210   : > { %v1235_v27 = vpack.c.bf16 %v1187_v8, %v1185_v6  ;;  %v1077_v28 = vpop.f32.mrb[64].mxu1 }
 0x211   : > { %v1078_v7 = vadd.f32 %v1077_v28, %v2730_v47  ;;  %v1079_v10 = vpop.f32.mrb[65].mxu1 }
 0x212   : > { %v1080_v44 = vadd.f32 %v1079_v10, %v2733_v15  ;;  %v1081_v18 = vpop.f32.mrb[66].mxu1  ;;  %1558 = vmatprep.mubr.bf16.mxu0 %v1235_v27 }
 0x213   : > { %v1082_v54 = vadd.f32 %v1081_v18, %v2730_v47  ;;  %v1083_v57 = vpop.f32.mrb[67].mxu1  ;;  %1559 = vmatmul.mubr.bf16.gmra.mrb[60].mxu0 %v1234_v11  ;;  %v1188_v35 = vmax.f32 %v1078_v7, 0.0 }
 0x214   : > { %v1084_v32 = vadd.f32 %v1083_v57, %v2733_v15  ;;  %v1189_v9 = vmax.f32 %v1080_v44, 0.0 }
 0x215   : > { %v1190_v5 = vmax.f32 %v1082_v54, 0.0 }
 0x216   : > { %v1191_v12 = vmax.f32 %v1084_v32, 0.0 }
 0x217   : > { %v1236_v13 = vpack.c.bf16 %v1190_v5, %v1188_v35 }
 0x218   : > { %v1237_v14 = vpack.c.bf16 %v1191_v12, %v1189_v9  ;;  %v1087_v16 = vpop.f32.mrb[68].mxu1 }
 0x219   : > { %v1088_v17 = vadd.f32 %v1087_v16, %v2730_v47  ;;  %v1089_v19 = vpop.f32.mrb[69].mxu1 }
 0x21a   : > { %v1090_v3 = vadd.f32 %v1089_v19, %v2733_v15  ;;  %v1091_v20 = vpop.f32.mrb[70].mxu1  ;;  %1568 = vmatprep.mubr.bf16.mxu0 %v1237_v14 }
 0x21b   : > { %v1092_v21 = vadd.f32 %v1091_v20, %v2730_v47  ;;  %v1093_v25 = vpop.f32.mrb[71].mxu1  ;;  %1569 = vmatmul.mubr.bf16.gmra.mrb[64].mxu0 %v1236_v13  ;;  %v1192_v30 = vmax.f32 %v1088_v17, 0.0 }
 0x21c   : > { %v1094_v29 = vadd.f32 %v1093_v25, %v2733_v15  ;;  %v1193_v33 = vmax.f32 %v1090_v3, 0.0 }
 0x21d   : > { %v1194_v31 = vmax.f32 %v1092_v21, 0.0 }
 0x21e   : > { %v1195_v34 = vmax.f32 %v1094_v29, 0.0 }
 0x21f   : > { %v1238_v36 = vpack.c.bf16 %v1194_v31, %v1192_v30 }
 0x220   : > { %v1239_v37 = vpack.c.bf16 %v1195_v34, %v1193_v33  ;;  %v1097_v38 = vpop.f32.mrb[72].mxu1 }
 0x221   : > { %v1098_v39 = vadd.f32 %v1097_v38, %v2730_v47  ;;  %v1099_v40 = vpop.f32.mrb[73].mxu1 }
 0x222   : > { %v1100_v41 = vadd.f32 %v1099_v40, %v2733_v15  ;;  %v1101_v42 = vpop.f32.mrb[74].mxu1  ;;  %1578 = vmatprep.mubr.bf16.mxu0 %v1239_v37 }
 0x223   : > { %v1102_v43 = vadd.f32 %v1101_v42, %v2730_v47  ;;  %v1103_v45 = vpop.f32.mrb[75].mxu1  ;;  %1579 = vmatmul.mubr.bf16.gmra.mrb[68].mxu0 %v1238_v36  ;;  %v1196_v48 = vmax.f32 %v1098_v39, 0.0 }
 0x224   : > { %v1104_v46 = vadd.f32 %v1103_v45, %v2733_v15  ;;  %v1197_v50 = vmax.f32 %v1100_v41, 0.0 }
 0x225   : > { %v1198_v49 = vmax.f32 %v1102_v43, 0.0 }
 0x226   : > { %v1199_v51 = vmax.f32 %v1104_v46, 0.0 }
 0x227   : > { %v1240_v52 = vpack.c.bf16 %v1198_v49, %v1196_v48 }
 0x228   : > { %v1241_v53 = vpack.c.bf16 %v1199_v51, %v1197_v50  ;;  %v1107_v55 = vpop.f32.mrb[76].mxu1 }
 0x229   : > { %v1108_v56 = vadd.f32 %v1107_v55, %v2730_v47  ;;  %v1109_v58 = vpop.f32.mrb[77].mxu1 }
 0x22a   : > { %v1110_v59 = vadd.f32 %v1109_v58, %v2733_v15  ;;  %v1111_v60 = vpop.f32.mrb[78].mxu1  ;;  %1588 = vmatprep.mubr.bf16.mxu0 %v1241_v53 }
 0x22b   : > { %v1112_v61 = vadd.f32 %v1111_v60, %v2730_v47  ;;  %v1113_v62 = vpop.f32.mrb[79].mxu1  ;;  %1589 = vmatmul.mubr.bf16.gmra.mrb[72].mxu0 %v1240_v52  ;;  %v1200_v0 = vmax.f32 %v1108_v56, 0.0 }
 0x22c   : > { %v1114_v63 = vadd.f32 %v1113_v62, %v2733_v15  ;;  %v1201_v2 = vmax.f32 %v1110_v59, 0.0 }
 0x22d   : > { %v1202_v1 = vmax.f32 %v1112_v61, 0.0 }
 0x22e   : > { %v1203_v4 = vmax.f32 %v1114_v63, 0.0 }
 0x22f   : > { %v1242_v6 = vpack.c.bf16 %v1202_v1, %v1200_v0 }
 0x230   : > { %v1243_v8 = vpack.c.bf16 %v1203_v4, %v1201_v2  ;;  %v1117_v11 = vpop.f32.mrb[80].mxu1 }
 0x231   : > { %v1118_v27 = vadd.f32 %v1117_v11, %v2730_v47  ;;  %v1119_v28 = vpop.f32.mrb[81].mxu1 }
 0x232   : > { %v1120_v7 = vadd.f32 %v1119_v28, %v2733_v15  ;;  %v1121_v10 = vpop.f32.mrb[82].mxu1  ;;  %1598 = vmatprep.mubr.bf16.mxu0 %v1243_v8  ;;  %v2230_v28 = vmov 1966171168  }
 0x233   : > { %v1122_v44 = vadd.f32 %v1121_v10, %v2730_v47  ;;  %v1123_v18 = vpop.f32.mrb[83].mxu1  ;;  %1599 = vmatmul.mubr.bf16.gmra.mrb[76].mxu0 %v1242_v6  ;;  %v1204_v57 = vmax.f32 %v1118_v27, 0.0  ;;  %v1284_v6 = vld [vmem:[%s2942_s6] sm:$0x3] }
 0x234   : > { %v1124_v54 = vadd.f32 %v1123_v18, %v2733_v15  ;;  %v1205_v35 = vmax.f32 %v1120_v7, 0.0  ;;  %v2803_v8 = vrot.slane %v1284_v6, %v2516_v24  ;;  %v1766_v7 = vunpack.c.l.s4 %v2230_v28 }
 0x235   : > { %v1206_v32 = vmax.f32 %v1122_v44, 0.0 }
 0x236   : > { %v1207_v5 = vmax.f32 %v1124_v54, 0.0 }
 0x237   : > { %v1244_v9 = vpack.c.bf16 %v1206_v32, %v1204_v57  ;;  %v2814_v57 = vld.sshfl [vmem:[%s2943_s7] sm:$0x11 pattern:$0x75316420]  ;;  %v1767_v32 = vunpack.c.0.s8 %v1766_v7 }
 0x238   : > { %v1245_v12 = vpack.c.bf16 %v1207_v5, %v1205_v35  ;;  %v1127_v13 = vpop.f32.mrb[84].mxu1  ;;  %v1764_v35 = vcombine.high %v2814_v57, %v2814_v57 }
 0x239   : > { %v1128_v14 = vadd.f32 %v1127_v13, %v2730_v47  ;;  %v1129_v16 = vpop.f32.mrb[85].mxu1 }
 0x23a   : > { %v1130_v17 = vadd.f32 %v1129_v16, %v2733_v15  ;;  %v1131_v19 = vpop.f32.mrb[86].mxu1  ;;  %1608 = vmatprep.mubr.bf16.mxu0 %v1245_v12  ;;  %v2820_v12 = vsub.s32 %v1767_v32, %v2513_v23 }
 0x23b   : > { %v1132_v3 = vadd.f32 %v1131_v19, %v2730_v47  ;;  %v1133_v20 = vpop.f32.mrb[87].mxu1  ;;  %1609 = vmatmul.mubr.bf16.gmra.mrb[80].mxu0 %v1244_v9  ;;  %v1208_v25 = vmax.f32 %v1128_v14, 0.0 }
 0x23c   : > { %v1134_v21 = vadd.f32 %v1133_v20, %v2733_v15  ;;  %v1209_v30 = vmax.f32 %v1130_v17, 0.0  ;;  %v1778_v17 = vrot.slane %v1764_v35, %v2820_v12 }
 0x23d   : > { %v1210_v29 = vmax.f32 %v1132_v3, 0.0 }
 0x23e   : > { %v1211_v31 = vmax.f32 %v1134_v21, 0.0  ;;  %1813 = vmatprep.mubr.bf16.mxu1 %v1778_v17 }
 0x23f   : > { %v1246_v33 = vpack.c.bf16 %v1210_v29, %v1208_v25 }
 0x240   : > { %v1247_v34 = vpack.c.bf16 %v1211_v31, %v1209_v30  ;;  %v1137_v36 = vpop.f32.mrb[88].mxu1  ;;  %v1746_v30 = vld [vmem:[#allocation2] sm:$0x1] }
 0x241   : > { %v1138_v37 = vadd.f32 %v1137_v36, %v2730_v47  ;;  %v1139_v38 = vpop.f32.mrb[89].mxu1  ;;  %1749 = vperm.xlu0 %2062, %v1746_v30  }
 0x242   : > { %v1140_v39 = vadd.f32 %v1139_v38, %v2733_v15  ;;  %v1141_v40 = vpop.f32.mrb[90].mxu1  ;;  %1618 = vmatprep.mubr.bf16.mxu0 %v1247_v34 }
 0x243   : > { %v1142_v41 = vadd.f32 %v1141_v40, %v2730_v47  ;;  %v1143_v42 = vpop.f32.mrb[91].mxu1  ;;  %1619 = vmatmul.mubr.bf16.gmra.mrb[84].mxu0 %v1246_v33  ;;  %v1212_v45 = vmax.f32 %v1138_v37, 0.0 }
 0x244   : > { %v1144_v43 = vadd.f32 %v1143_v42, %v2733_v15  ;;  %v1213_v48 = vmax.f32 %v1140_v39, 0.0 }
 0x245   : > { %v1214_v46 = vmax.f32 %v1142_v41, 0.0 }
 0x246   : > { %v1215_v49 = vmax.f32 %v1144_v43, 0.0 }
 0x247   : > { %v1248_v50 = vpack.c.bf16 %v1214_v46, %v1212_v45 }
 0x248   : > { %v1249_v51 = vpack.c.bf16 %v1215_v49, %v1213_v48  ;;  %v1147_v52 = vpop.f32.mrb[92].mxu1 }
 0x249   : > { %v1148_v53 = vadd.f32 %v1147_v52, %v2730_v47  ;;  %v1149_v55 = vpop.f32.mrb[93].mxu1 }
 0x24a   : > { %v1150_v56 = vadd.f32 %v1149_v55, %v2733_v15  ;;  %v1151_v58 = vpop.f32.mrb[94].mxu1  ;;  %1628 = vmatprep.mubr.bf16.mxu0 %v1249_v51 }
 0x24b   : > { %v1152_v59 = vadd.f32 %v1151_v58, %v2730_v47  ;;  %v1153_v60 = vpop.f32.mrb[95].mxu1  ;;  %1629 = vmatmul.mubr.bf16.gmra.mrb[88].mxu0 %v1248_v50  ;;  %v1216_v62 = vmax.f32 %v1148_v53, 0.0  ;;  %v2806_v47 = vrot.slane %v1284_v6, %v2522_v26 }
 0x24c   : > { %v1154_v61 = vadd.f32 %v1153_v60, %v2733_v15  ;;  %v1217_v0 = vmax.f32 %v1150_v56, 0.0 }
 0x24d   : > { %v1218_v63 = vmax.f32 %v1152_v59, 0.0 }
 0x24e   : > { %v1219_v1 = vmax.f32 %v1154_v61, 0.0 }
 0x24f   : > { %v1250_v2 = vpack.c.bf16 %v1218_v63, %v1216_v62 }
 0x250   : > { %v1251_v4 = vpack.c.bf16 %v1219_v1, %v1217_v0 }
 0x252   : > { %1638 = vmatprep.mubr.bf16.mxu0 %v1251_v4 }
 0x253   : > { %1639 = vmatmul.mubr.bf16.gmra.mrb[92].mxu0 %v1250_v2 }
 0x2ae   : > { %v1490_v11 = vpop.f32.mrb[32].mxu0 }
 0x2af   : > { %v1491_v15 = vadd.f32 %v1490_v11, %v2803_v8  ;;  %v1492_v27 = vpop.f32.mrb[33].mxu0 }
 0x2b0   : > { %v1493_v10 = vadd.f32 %v1492_v27, %v2806_v47  ;;  %v1494_v44 = vpop.f32.mrb[34].mxu0 }
 0x2b1   : > { %v1495_v18 = vadd.f32 %v1494_v44, %v2803_v8  ;;  %v1496_v54 = vpop.f32.mrb[35].mxu0  ;;  %v1649_v5 = vmax.f32 %v1491_v15, 0.0 }
 0x2b2   : > { %v1497_v26 = vadd.f32 %v1496_v54, %v2806_v47  ;;  %v1650_v13 = vmax.f32 %v1493_v10, 0.0 }
 0x2b3   : > { %v1651_v9 = vmax.f32 %v1495_v18, 0.0 }
 0x2b4   : > { %v1652_v14 = vmax.f32 %v1497_v26, 0.0 }
 0x2b5   : > { %v1713_v16 = vpack.c.bf16 %v1651_v9, %v1649_v5 }
 0x2b6   : > { %v1714_v19 = vpack.c.bf16 %v1652_v14, %v1650_v13  ;;  %v1500_v3 = vpop.f32.mrb[36].mxu0 }
 0x2b7   : > { %v1501_v20 = vadd.f32 %v1500_v3, %v2803_v8  ;;  %v1502_v21 = vpop.f32.mrb[37].mxu0 }
 0x2b8   : > { %v1503_v25 = vadd.f32 %v1502_v21, %v2806_v47  ;;  %v1504_v29 = vpop.f32.mrb[38].mxu0  ;;  %1781 = vmatprep.subr.bf16.mxu1 %v1714_v19 }
 0x2b9   : > { %v1505_v31 = vadd.f32 %v1504_v29, %v2803_v8  ;;  %v1506_v23 = vpop.f32.mrb[39].mxu0  ;;  %1782 = vmatpush1.bf16.xpose.msra.mxu1 %v1713_v16  ;;  %v1653_v34 = vmax.f32 %v1501_v20, 0.0 }
 0x2ba   : > { %v1507_v33 = vadd.f32 %v1506_v23, %v2806_v47  ;;  %v1654_v37 = vmax.f32 %v1503_v25, 0.0 }
 0x2bb   : > { %v1655_v36 = vmax.f32 %v1505_v31, 0.0 }
 0x2bc   : > { %v1656_v38 = vmax.f32 %v1507_v33, 0.0 }
 0x2bd   : > { %v1715_v39 = vpack.c.bf16 %v1655_v36, %v1653_v34 }
 0x2be   : > { %v1716_v40 = vpack.c.bf16 %v1656_v38, %v1654_v37  ;;  %v1510_v41 = vpop.f32.mrb[40].mxu0 }
 0x2bf   : > { %v1511_v42 = vadd.f32 %v1510_v41, %v2803_v8  ;;  %v1512_v43 = vpop.f32.mrb[41].mxu0 }
 0x2c0   : > { %v1513_v45 = vadd.f32 %v1512_v43, %v2806_v47  ;;  %v1514_v46 = vpop.f32.mrb[42].mxu0  ;;  %1783 = vmatprep.subr.bf16.mxu1 %v1716_v40 }
 0x2c1   : > { %v1515_v48 = vadd.f32 %v1514_v46, %v2803_v8  ;;  %v1516_v49 = vpop.f32.mrb[43].mxu0  ;;  %1784 = vmatpush1.bf16.xpose.msra.mxu1 %v1715_v39  ;;  %v1657_v51 = vmax.f32 %v1511_v42, 0.0 }
 0x2c2   : > { %v1517_v50 = vadd.f32 %v1516_v49, %v2806_v47  ;;  %v1658_v53 = vmax.f32 %v1513_v45, 0.0 }
 0x2c3   : > { %v1659_v52 = vmax.f32 %v1515_v48, 0.0 }
 0x2c4   : > { %v1660_v55 = vmax.f32 %v1517_v50, 0.0 }
 0x2c5   : > { %v1717_v56 = vpack.c.bf16 %v1659_v52, %v1657_v51 }
 0x2c6   : > { %v1718_v58 = vpack.c.bf16 %v1660_v55, %v1658_v53  ;;  %v1520_v59 = vpop.f32.mrb[44].mxu0 }
 0x2c7   : > { %v1521_v60 = vadd.f32 %v1520_v59, %v2803_v8  ;;  %v1522_v61 = vpop.f32.mrb[45].mxu0 }
 0x2c8   : > { %v1523_v62 = vadd.f32 %v1522_v61, %v2806_v47  ;;  %v1524_v63 = vpop.f32.mrb[46].mxu0  ;;  %1785 = vmatprep.subr.bf16.mxu1 %v1718_v58 }
 0x2c9   : > { %v1525_v0 = vadd.f32 %v1524_v63, %v2803_v8  ;;  %v1526_v1 = vpop.f32.mrb[47].mxu0  ;;  %1786 = vmatpush1.bf16.xpose.msra.mxu1 %v1717_v56  ;;  %v1661_v4 = vmax.f32 %v1521_v60, 0.0 }
 0x2ca   : > { %v1527_v2 = vadd.f32 %v1526_v1, %v2806_v47  ;;  %v1662_v11 = vmax.f32 %v1523_v62, 0.0 }
 0x2cb   : > { %v1663_v6 = vmax.f32 %v1525_v0, 0.0 }
 0x2cc   : > { %v1664_v15 = vmax.f32 %v1527_v2, 0.0 }
 0x2cd   : > { %v1719_v27 = vpack.c.bf16 %v1663_v6, %v1661_v4 }
 0x2ce   : > { %v1720_v28 = vpack.c.bf16 %v1664_v15, %v1662_v11  ;;  %v1530_v7 = vpop.f32.mrb[48].mxu0 }
 0x2cf   : > { %v1531_v10 = vadd.f32 %v1530_v7, %v2803_v8  ;;  %v1532_v44 = vpop.f32.mrb[49].mxu0 }
 0x2d0   : > { %v1533_v18 = vadd.f32 %v1532_v44, %v2806_v47  ;;  %v1534_v54 = vpop.f32.mrb[50].mxu0  ;;  %1787 = vmatprep.subr.bf16.mxu1 %v1720_v28 }
 0x2d1   : > { %v1535_v32 = vadd.f32 %v1534_v54, %v2803_v8  ;;  %v1536_v26 = vpop.f32.mrb[51].mxu0  ;;  %1788 = vmatpush1.bf16.xpose.msra.mxu1 %v1719_v27  ;;  %v1665_v5 = vmax.f32 %v1531_v10, 0.0 }
 0x2d2   : > { %v1537_v35 = vadd.f32 %v1536_v26, %v2806_v47  ;;  %v1666_v13 = vmax.f32 %v1533_v18, 0.0 }
 0x2d3   : > { %v1667_v9 = vmax.f32 %v1535_v32, 0.0 }
 0x2d4   : > { %v1668_v14 = vmax.f32 %v1537_v35, 0.0 }
 0x2d5   : > { %v1721_v16 = vpack.c.bf16 %v1667_v9, %v1665_v5 }
 0x2d6   : > { %v1722_v17 = vpack.c.bf16 %v1668_v14, %v1666_v13  ;;  %v1540_v19 = vpop.f32.mrb[52].mxu0 }
 0x2d7   : > { %v1541_v3 = vadd.f32 %v1540_v19, %v2803_v8  ;;  %v1542_v20 = vpop.f32.mrb[53].mxu0 }
 0x2d8   : > { %v1543_v21 = vadd.f32 %v1542_v20, %v2806_v47  ;;  %v1544_v25 = vpop.f32.mrb[54].mxu0  ;;  %1789 = vmatprep.subr.bf16.mxu1 %v1722_v17 }
 0x2d9   : > { %v1545_v29 = vadd.f32 %v1544_v25, %v2803_v8  ;;  %v1546_v30 = vpop.f32.mrb[55].mxu0  ;;  %1790 = vmatpush1.bf16.xpose.msra.mxu1 %v1721_v16  ;;  %v1669_v23 = vmax.f32 %v1541_v3, 0.0 }
 0x2da   : > { %v1547_v31 = vadd.f32 %v1546_v30, %v2806_v47  ;;  %v1670_v34 = vmax.f32 %v1543_v21, 0.0 }
 0x2db   : > { %v1671_v33 = vmax.f32 %v1545_v29, 0.0 }
 0x2dc   : > { %v1672_v36 = vmax.f32 %v1547_v31, 0.0 }
 0x2dd   : > { %v1723_v37 = vpack.c.bf16 %v1671_v33, %v1669_v23 }
 0x2de   : > { %v1724_v38 = vpack.c.bf16 %v1672_v36, %v1670_v34  ;;  %v1550_v39 = vpop.f32.mrb[56].mxu0 }
 0x2df   : > { %v1551_v40 = vadd.f32 %v1550_v39, %v2803_v8  ;;  %v1552_v41 = vpop.f32.mrb[57].mxu0 }
 0x2e0   : > { %v1553_v42 = vadd.f32 %v1552_v41, %v2806_v47  ;;  %v1554_v43 = vpop.f32.mrb[58].mxu0  ;;  %1791 = vmatprep.subr.bf16.mxu1 %v1724_v38 }
 0x2e1   : > { %v1555_v45 = vadd.f32 %v1554_v43, %v2803_v8  ;;  %v1556_v46 = vpop.f32.mrb[59].mxu0  ;;  %1792 = vmatpush1.bf16.xpose.msra.mxu1 %v1723_v37  ;;  %v1673_v49 = vmax.f32 %v1551_v40, 0.0 }
 0x2e2   : > { %v1557_v48 = vadd.f32 %v1556_v46, %v2806_v47  ;;  %v1674_v51 = vmax.f32 %v1553_v42, 0.0 }
 0x2e3   : > { %v1675_v50 = vmax.f32 %v1555_v45, 0.0 }
 0x2e4   : > { %v1676_v52 = vmax.f32 %v1557_v48, 0.0 }
 0x2e5   : > { %v1725_v53 = vpack.c.bf16 %v1675_v50, %v1673_v49 }
 0x2e6   : > { %v1726_v55 = vpack.c.bf16 %v1676_v52, %v1674_v51  ;;  %v1560_v56 = vpop.f32.mrb[60].mxu0 }
 0x2e7   : > { %v1561_v58 = vadd.f32 %v1560_v56, %v2803_v8  ;;  %v1562_v59 = vpop.f32.mrb[61].mxu0 }
 0x2e8   : > { %v1563_v60 = vadd.f32 %v1562_v59, %v2806_v47  ;;  %v1564_v61 = vpop.f32.mrb[62].mxu0  ;;  %1793 = vmatprep.subr.bf16.mxu1 %v1726_v55 }
 0x2e9   : > { %v1565_v62 = vadd.f32 %v1564_v61, %v2803_v8  ;;  %v1566_v63 = vpop.f32.mrb[63].mxu0  ;;  %1794 = vmatpush1.bf16.xpose.msra.mxu1 %v1725_v53  ;;  %v1677_v1 = vmax.f32 %v1561_v58, 0.0 }
 0x2ea   : > { %v1567_v0 = vadd.f32 %v1566_v63, %v2806_v47  ;;  %v1678_v4 = vmax.f32 %v1563_v60, 0.0 }
 0x2eb   : > { %v1679_v2 = vmax.f32 %v1565_v62, 0.0 }
 0x2ec   : > { %v1680_v6 = vmax.f32 %v1567_v0, 0.0 }
 0x2ed   : > { %v1727_v11 = vpack.c.bf16 %v1679_v2, %v1677_v1 }
 0x2ee   : > { %v1728_v15 = vpack.c.bf16 %v1680_v6, %v1678_v4  ;;  %v1570_v27 = vpop.f32.mrb[64].mxu0 }
 0x2ef   : > { %v1571_v28 = vadd.f32 %v1570_v27, %v2803_v8  ;;  %v1572_v7 = vpop.f32.mrb[65].mxu0 }
 0x2f0   : > { %v1573_v10 = vadd.f32 %v1572_v7, %v2806_v47  ;;  %v1574_v44 = vpop.f32.mrb[66].mxu0  ;;  %1795 = vmatprep.subr.bf16.mxu1 %v1728_v15 }
 0x2f1   : > { %v1575_v18 = vadd.f32 %v1574_v44, %v2803_v8  ;;  %v1576_v54 = vpop.f32.mrb[67].mxu0  ;;  %1796 = vmatpush1.bf16.xpose.msra.mxu1 %v1727_v11  ;;  %v1681_v26 = vmax.f32 %v1571_v28, 0.0 }
 0x2f2   : > { %v1577_v32 = vadd.f32 %v1576_v54, %v2806_v47  ;;  %v1682_v5 = vmax.f32 %v1573_v10, 0.0 }
 0x2f3   : > { %v1683_v35 = vmax.f32 %v1575_v18, 0.0 }
 0x2f4   : > { %v1684_v9 = vmax.f32 %v1577_v32, 0.0 }
 0x2f5   : > { %v1729_v13 = vpack.c.bf16 %v1683_v35, %v1681_v26 }
 0x2f6   : > { %v1730_v14 = vpack.c.bf16 %v1684_v9, %v1682_v5  ;;  %v1580_v16 = vpop.f32.mrb[68].mxu0 }
 0x2f7   : > { %v1581_v17 = vadd.f32 %v1580_v16, %v2803_v8  ;;  %v1582_v19 = vpop.f32.mrb[69].mxu0 }
 0x2f8   : > { %v1583_v3 = vadd.f32 %v1582_v19, %v2806_v47  ;;  %v1584_v20 = vpop.f32.mrb[70].mxu0  ;;  %1797 = vmatprep.subr.bf16.mxu1 %v1730_v14 }
 0x2f9   : > { %v1585_v21 = vadd.f32 %v1584_v20, %v2803_v8  ;;  %v1586_v25 = vpop.f32.mrb[71].mxu0  ;;  %1798 = vmatpush1.bf16.xpose.msra.mxu1 %v1729_v13  ;;  %v1685_v30 = vmax.f32 %v1581_v17, 0.0 }
 0x2fa   : > { %v1587_v29 = vadd.f32 %v1586_v25, %v2806_v47  ;;  %v1686_v23 = vmax.f32 %v1583_v3, 0.0 }
 0x2fb   : > { %v1687_v31 = vmax.f32 %v1585_v21, 0.0 }
 0x2fc   : > { %v1688_v33 = vmax.f32 %v1587_v29, 0.0 }
 0x2fd   : > { %v1731_v34 = vpack.c.bf16 %v1687_v31, %v1685_v30 }
 0x2fe   : > { %v1732_v36 = vpack.c.bf16 %v1688_v33, %v1686_v23  ;;  %v1590_v37 = vpop.f32.mrb[72].mxu0 }
 0x2ff   : > { %v1591_v38 = vadd.f32 %v1590_v37, %v2803_v8  ;;  %v1592_v39 = vpop.f32.mrb[73].mxu0 }
 0x300   : > { %v1593_v40 = vadd.f32 %v1592_v39, %v2806_v47  ;;  %v1594_v41 = vpop.f32.mrb[74].mxu0  ;;  %1799 = vmatprep.subr.bf16.mxu1 %v1732_v36 }
 0x301   : > { %v1595_v42 = vadd.f32 %v1594_v41, %v2803_v8  ;;  %v1596_v43 = vpop.f32.mrb[75].mxu0  ;;  %1800 = vmatpush1.bf16.xpose.msra.mxu1 %v1731_v34  ;;  %v1689_v46 = vmax.f32 %v1591_v38, 0.0 }
 0x302   : > { %v1597_v45 = vadd.f32 %v1596_v43, %v2806_v47  ;;  %v1690_v49 = vmax.f32 %v1593_v40, 0.0 }
 0x303   : > { %v1691_v48 = vmax.f32 %v1595_v42, 0.0 }
 0x304   : > { %v1692_v50 = vmax.f32 %v1597_v45, 0.0 }
 0x305   : > { %v1733_v51 = vpack.c.bf16 %v1691_v48, %v1689_v46 }
 0x306   : > { %v1734_v52 = vpack.c.bf16 %v1692_v50, %v1690_v49  ;;  %v1600_v53 = vpop.f32.mrb[76].mxu0 }
 0x307   : > { %v1601_v55 = vadd.f32 %v1600_v53, %v2803_v8  ;;  %v1602_v56 = vpop.f32.mrb[77].mxu0 }
 0x308   : > { %v1603_v58 = vadd.f32 %v1602_v56, %v2806_v47  ;;  %v1604_v59 = vpop.f32.mrb[78].mxu0  ;;  %1801 = vmatprep.subr.bf16.mxu1 %v1734_v52 }
 0x309   : > { %v1605_v60 = vadd.f32 %v1604_v59, %v2803_v8  ;;  %v1606_v61 = vpop.f32.mrb[79].mxu0  ;;  %1802 = vmatpush1.bf16.xpose.msra.mxu1 %v1733_v51  ;;  %v1693_v63 = vmax.f32 %v1601_v55, 0.0 }
 0x30a   : > { %v1607_v62 = vadd.f32 %v1606_v61, %v2806_v47  ;;  %v1694_v1 = vmax.f32 %v1603_v58, 0.0 }
 0x30b   : > { %v1695_v0 = vmax.f32 %v1605_v60, 0.0 }
 0x30c   : > { %v1696_v2 = vmax.f32 %v1607_v62, 0.0 }
 0x30d   : > { %v1735_v4 = vpack.c.bf16 %v1695_v0, %v1693_v63 }
 0x30e   : > { %v1736_v6 = vpack.c.bf16 %v1696_v2, %v1694_v1  ;;  %v1610_v11 = vpop.f32.mrb[80].mxu0 }
 0x30f   : > { %v1611_v15 = vadd.f32 %v1610_v11, %v2803_v8  ;;  %v1612_v27 = vpop.f32.mrb[81].mxu0 }
 0x310   : > { %v1613_v28 = vadd.f32 %v1612_v27, %v2806_v47  ;;  %v1614_v7 = vpop.f32.mrb[82].mxu0  ;;  %1803 = vmatprep.subr.bf16.mxu1 %v1736_v6  ;;  %v1750_v6 = vpop.permute.xlu0 %1749 }
 0x311   : > { %v1615_v10 = vadd.f32 %v1614_v7, %v2803_v8  ;;  %v1616_v44 = vpop.f32.mrb[83].mxu0  ;;  %1804 = vmatpush1.bf16.xpose.msra.mxu1 %v1735_v4  ;;  %v1697_v54 = vmax.f32 %v1611_v15, 0.0  ;;  %v1771_v4 = vrot.slane %v2814_v57, %v2820_v12 }
 0x312   : > { %v1617_v18 = vadd.f32 %v1616_v44, %v2806_v47  ;;  %v1698_v26 = vmax.f32 %v1613_v28, 0.0 }
 0x313   : > { %v1699_v32 = vmax.f32 %v1615_v10, 0.0 }
 0x314   : > { %v1700_v35 = vmax.f32 %v1617_v18, 0.0 }
 0x315   : > { %v1737_v5 = vpack.c.bf16 %v1699_v32, %v1697_v54 }
 0x316   : > { %v1738_v9 = vpack.c.bf16 %v1700_v35, %v1698_v26  ;;  %v1620_v13 = vpop.f32.mrb[84].mxu0 }
 0x317   : > { %v1621_v14 = vadd.f32 %v1620_v13, %v2803_v8  ;;  %v1622_v16 = vpop.f32.mrb[85].mxu0 }
 0x318   : > { %v1623_v17 = vadd.f32 %v1622_v16, %v2806_v47  ;;  %v1624_v19 = vpop.f32.mrb[86].mxu0  ;;  %1805 = vmatprep.subr.bf16.mxu1 %v1738_v9 }
 0x319   : > { %v1625_v3 = vadd.f32 %v1624_v19, %v2803_v8  ;;  %v1626_v20 = vpop.f32.mrb[87].mxu0  ;;  %1806 = vmatpush1.bf16.xpose.msra.mxu1 %v1737_v5  ;;  %v1701_v25 = vmax.f32 %v1621_v14, 0.0 }
 0x31a   : > { %v1627_v21 = vadd.f32 %v1626_v20, %v2806_v47  ;;  %v1702_v30 = vmax.f32 %v1623_v17, 0.0 }
 0x31b   : > { %v1703_v29 = vmax.f32 %v1625_v3, 0.0 }
 0x31c   : > { %v1704_v31 = vmax.f32 %v1627_v21, 0.0 }
 0x31d   : > { %v1739_v23 = vpack.c.bf16 %v1703_v29, %v1701_v25 }
 0x31e   : > { %v1740_v33 = vpack.c.bf16 %v1704_v31, %v1702_v30  ;;  %v1630_v34 = vpop.f32.mrb[88].mxu0 }
 0x31f   : > { %v1631_v36 = vadd.f32 %v1630_v34, %v2803_v8  ;;  %v1632_v37 = vpop.f32.mrb[89].mxu0 }
 0x320   : > { %v1633_v38 = vadd.f32 %v1632_v37, %v2806_v47  ;;  %v1634_v39 = vpop.f32.mrb[90].mxu0  ;;  %1807 = vmatprep.subr.bf16.mxu1 %v1740_v33 }
 0x321   : > { %v1635_v40 = vadd.f32 %v1634_v39, %v2803_v8  ;;  %v1636_v41 = vpop.f32.mrb[91].mxu0  ;;  %1808 = vmatpush1.bf16.xpose.msra.mxu1 %v1739_v23  ;;  %v1705_v43 = vmax.f32 %v1631_v36, 0.0 }
 0x322   : > { %v1637_v42 = vadd.f32 %v1636_v41, %v2806_v47  ;;  %v1706_v46 = vmax.f32 %v1633_v38, 0.0 }
 0x323   : > { %v1707_v45 = vmax.f32 %v1635_v40, 0.0 }
 0x324   : > { %v1708_v48 = vmax.f32 %v1637_v42, 0.0 }
 0x325   : > { %v1741_v49 = vpack.c.bf16 %v1707_v45, %v1705_v43 }
 0x326   : > { %v1742_v50 = vpack.c.bf16 %v1708_v48, %v1706_v46  ;;  %v1640_v51 = vpop.f32.mrb[92].mxu0 }
 0x327   : > { %v1641_v52 = vadd.f32 %v1640_v51, %v2803_v8  ;;  %v1642_v53 = vpop.f32.mrb[93].mxu0 }
 0x328   : > { %v1643_v55 = vadd.f32 %v1642_v53, %v2806_v47  ;;  %v1644_v56 = vpop.f32.mrb[94].mxu0  ;;  %1809 = vmatprep.subr.bf16.mxu1 %v1742_v50 }
 0x329   : > { %v1645_v58 = vadd.f32 %v1644_v56, %v2803_v8  ;;  %v1646_v59 = vpop.f32.mrb[95].mxu0  ;;  %1810 = vmatpush1.bf16.xpose.msra.mxu1 %v1741_v49  ;;  %v1709_v61 = vmax.f32 %v1641_v52, 0.0  ;;  %v1755_v8 = vrot.slane %v1750_v6, %v2516_v24 }
 0x32a   : > { %v1647_v60 = vadd.f32 %v1646_v59, %v2806_v47  ;;  %v1710_v63 = vmax.f32 %v1643_v55, 0.0 }
 0x32b   : > { %v1711_v62 = vmax.f32 %v1645_v58, 0.0 }
 0x32c   : > { %v1712_v0 = vmax.f32 %v1647_v60, 0.0 }
 0x32d   : > { %v1743_v1 = vpack.c.bf16 %v1711_v62, %v1709_v61 }
 0x32e   : > { %v1744_v2 = vpack.c.bf16 %v1712_v0, %v1710_v63 }
 0x330   : > { %1811 = vmatprep.subr.bf16.mxu1 %v1744_v2 }
 0x331   : > { %1812 = vmatpush1.bf16.xpose.msra.mxu1 %v1743_v1 }
 0x338   : > { %1814 = vmatmul.mubr.bf16.vlgmr.msra.gmra.mrb[96].mxu1 %v1771_v4 }
 0x40b   : > { %v1815_v11 = vpop.f32.mrb[96].mxu1 }
 0x40c   : > { %v1816_v47 = vadd.f32 %v1815_v11, %v1755_v8  ;;  %v1817_v15 = vpop.f32.mrb[97].mxu1 }
 0x40d   : > { %v1818_v27 = vadd.f32 %v1817_v15, %v1755_v8  ;;  %v1819_v28 = vpop.f32.mrb[98].mxu1 }
 0x40e   : > { %v1820_v7 = vpop.f32.mrb[99].mxu1 }
 0x40f   : > { %v1824_v10 = vcombine.low %v1816_v47, %v1818_v27 }
 0x411   : > { %v1831_v44 = vrot.slane %v1824_v10, %v2820_v12 }
 0x413   : > { %v1838_v57 = vrot.slane %v1831_v44, %v2820_v12 }
 0x415   : > { %1844 = vst.msk [vmem:[%s328_s23] sm:$0x3] %vm1842_vm1, %v1838_v57 }
 0x416   : > { %2178 = shalt.err (!%p2175_p3)
}
 0x417   : > { %s2179_s24 = scalar_lea.hbm %s2894_s26, 32  ;;  %s2183_s17 = scalar_lea.hbm %s2945_s9, 64 }
 0x418   : > { %p2180_p4 = scmp.ne.s32.totalorder %s2894_s26, %s2179_s24  ;;  %p2184_p9 = scmp.lt.u32.totalorder %s2894_s26, %s2945_s9 }
 0x419   : > { %p2185_p10 = scmp.lt.u32.totalorder %s2183_s17, %s2179_s24  ;;  %p2187_p12 = scmp.lt.u32.totalorder %s2179_s24, %s2894_s26 }
 0x41a   : > { %p2181_p7 = pnand %p2180_p4, %p2320_p5 }
 0x41b   : > { %p2186_p11 = por %p2185_p10, %p2184_p9 }
 0x41c   : > { %p2182_p8 = pneg %p2181_p7 }
 0x41d   : > { %p2188_p13 = por %p2187_p12, %p2186_p11 }
 0x41f   : > { %p2189_p0 = pnand %p2188_p13, %p2182_p8 }
 0x421   : > { %2192 = shalt.err (!%p2189_p0)
}
 0x422   : > { %2021 = dma.vmem_to_hbm [thread:$0]  (%p2320_p5), %s2896_s18, 32, %s2894_s26, %s1846_s27  }
 0x423 PF: > { %p2027_p1 = scmp.ge.s32.totalorder %s2227_s14, 2  ;;  %s1872_s25 = sand.u32 1, %s2215_s11  }
 0x424   : > { %s1873_s28 = scalar_lea.sflag [#allocation4], %s1872_s25 }
 0x425   : > { %p2024_p2 = pnand %p2027_p1, %p2324_p6 }
 0x427   : > { %2210 = dma.done.wait (!%p2024_p2), %s1873_s28, 32  }
 0x428   : > { %2212 = vsyncadd (!%p2024_p2), %s1873_s28, 4294967264  ;;  %p21_p3 = scmp.ge.s32.totalorder %s2308_s16, 4   ;;  %s2948_s11 = smov %s2219_s12 }
 0x429   : > { %s2949_s12 = smov %s2223_s13  ;;  %s2950_s13 = smov %s2318_s19 }
 0x42a   : > { %s2951_s14 = smov %s2308_s16  ;;  %23 = sbr.rel (!%p21_p3) target bundleno = 6 (0x6), region = 91 }
 0x431   :  { %1878 = vsyncpa [#allocation4], 1 }
 0x432   :  { %1880 = vsyncpa [#allocation4 + $0x1], 1 }

</bundles_post_ra>
